<compile_context>
chip_gen: v7x
topology: tpu7x:2x2x1
jax: 0.10.0
libtpu: 0.0.40
codegen_flags: <defaults>
</compile_context>

<pallas_src>
import functools

import jax
import jax.numpy as jnp
from jax.experimental import pallas as pl
from jax.experimental.pallas import tpu as pltpu


def _round_up(x, m):
    return ((x + m - 1) // m) * m


@functools.lru_cache(maxsize=None)
def _vmem_limit_bytes():
    # Generation-aware scoped-VMEM budget: half of physical VMEM
    # (-> 64 MiB on v5e/v6e, 32 MiB on v7x). Safe fallback: 32 MiB.
    try:
        cap = int(pltpu.get_tpu_info().vmem_capacity_bytes)
        if cap > 0:
            return cap // 2
    except Exception:
        pass
    return 32 * 1024 * 1024


@functools.lru_cache(maxsize=None)
def _matmul_tiles():
    # (tm_pref, tn_pref, tk_pref): 256x512 for the 256-wide MXUs (v6e/v7x),
    # 128x256 on v5e and older chips.
    try:
        kind = jax.devices()[0].device_kind.lower()
        if any(t in kind for t in ("v2", "v3", "v4", "v5")):
            return 128, 256, 512
    except Exception:
        pass
    return 256, 512, 512


# ----------------------------------------------------------------------------
# Tiled linear:  out = act(x @ w [+ b]) [+ residual]
# ----------------------------------------------------------------------------
def _linear_kernel(x_ref, w_ref, *rest, activation, has_bias, has_residual,
                   single_k):
    rest = list(rest)
    b_ref = rest.pop(0) if has_bias else None
    r_ref = rest.pop(0) if has_residual else None
    o_ref = rest.pop(0)
    acc_ref = rest.pop(0) if not single_k else None

    def _finalize(acc):
        y = acc
        if has_bias:
            y = y + b_ref[...].astype(jnp.float32)
        if activation == "quick_gelu":          # CLIP uses quick_gelu in MLP
            y = y * jax.nn.sigmoid(1.702 * y)
        if has_residual:
            y = y + r_ref[...].astype(jnp.float32)
        o_ref[...] = y.astype(o_ref.dtype)

    if single_k:
        # One k-step: no scratch accumulator, no pl.when phases.
        _finalize(jnp.dot(x_ref[...], w_ref[...],
                          preferred_element_type=jnp.float32))
        return

    k = pl.program_id(2)

    @pl.when(k == 0)
    def _():
        acc_ref[...] = jnp.zeros_like(acc_ref)

    # Operands stay in their native (bf16) dtype; accumulate in f32.
    acc_ref[...] += jnp.dot(x_ref[...], w_ref[...],
                            preferred_element_type=jnp.float32)

    @pl.when(k == pl.num_programs(2) - 1)
    def _():
        _finalize(acc_ref[...])


def linear(x, w, b=None, activation=None, residual=None):
    """x: (M, K) @ w: (K, N) [+ b: (N,)]  [-> act] [+ residual (M, N)]."""
    M, K = x.shape
    Kw, N = w.shape
    assert K == Kw
    tm_pref, tn_pref, tk_pref = _matmul_tiles()

    tm = _round_up(M, 8) if M <= tm_pref else tm_pref
    tn = N if N <= tn_pref else tn_pref
    if K <= tk_pref:
        tk = K                               # one step, no K padding
    else:
        nk = max(1, K // tk_pref)            # even-ish 128-aligned split
        tk = _round_up(-(-K // nk), 128)
    Mp, Np, Kp = _round_up(M, tm), _round_up(N, tn), _round_up(K, tk)
    nk_steps = Kp // tk
    single_k = nk_steps == 1

    if (Mp, Kp) != (M, K):
        x = jnp.pad(x, ((0, Mp - M), (0, Kp - K)))
    if (Kp, Np) != (K, N):
        w = jnp.pad(w, ((0, Kp - K), (0, Np - N)))

    operands = [x, w]
    in_specs = [
        pl.BlockSpec((tm, tk), lambda i, j, k: (i, k)),
        pl.BlockSpec((tk, tn), lambda i, j, k: (k, j)),
    ]
    has_bias = b is not None
    if has_bias:
        b2 = b.reshape(1, N)
        if Np != N:
            b2 = jnp.pad(b2, ((0, 0), (0, Np - N)))
        operands.append(b2)
        in_specs.append(pl.BlockSpec((1, tn), lambda i, j, k: (0, j)))
    has_residual = residual is not None
    if has_residual:
        r = residual
        if (Mp, Np) != r.shape:
            r = jnp.pad(r, ((0, Mp - M), (0, Np - N)))
        operands.append(r)
        in_specs.append(pl.BlockSpec((tm, tn), lambda i, j, k: (i, j)))

    scratch = [] if single_k else [pltpu.VMEM((tm, tn), jnp.float32)]

    out = pl.pallas_call(
        functools.partial(_linear_kernel, activation=activation,
                          has_bias=has_bias, has_residual=has_residual,
                          single_k=single_k),
        out_shape=jax.ShapeDtypeStruct((Mp, Np), x.dtype),
        grid=(Mp // tm, Np // tn, nk_steps),
        in_specs=in_specs,
        out_specs=pl.BlockSpec((tm, tn), lambda i, j, k: (i, j)),
        scratch_shapes=scratch,
        compiler_params=pltpu.CompilerParams(
            dimension_semantics=("parallel", "parallel", "arbitrary"),
            vmem_limit_bytes=_vmem_limit_bytes(),
        ),
    )(*operands)
    if (Mp, Np) != (M, N):
        out = out[:M, :N]
    return out


# ----------------------------------------------------------------------------
# Row-tiled layernorm (stats in f32)
# ----------------------------------------------------------------------------
def _layernorm_kernel(x_ref, g_ref, b_ref, o_ref, *, eps):
    x = x_ref[...].astype(jnp.float32)
    mu = jnp.mean(x, axis=-1, keepdims=True)
    var = jnp.mean(jnp.square(x - mu), axis=-1, keepdims=True)
    y = (x - mu) * jax.lax.rsqrt(var + eps)
    y = y * g_ref[...].astype(jnp.float32) + b_ref[...].astype(jnp.float32)
    o_ref[...] = y.astype(o_ref.dtype)


def layernorm(x, gamma, beta, eps=1e-5, tm_pref=512):
    M, D = x.shape
    tm = _round_up(M, 8) if M <= tm_pref else tm_pref
    Mp = _round_up(M, tm)
    if Mp != M:
        x = jnp.pad(x, ((0, Mp - M), (0, 0)))
    out = pl.pallas_call(
        functools.partial(_layernorm_kernel, eps=eps),
        out_shape=jax.ShapeDtypeStruct((Mp, D), x.dtype),
        grid=(Mp // tm,),
        in_specs=[
            pl.BlockSpec((tm, D), lambda i: (i, 0)),
            pl.BlockSpec((1, D), lambda i: (0, 0)),
            pl.BlockSpec((1, D), lambda i: (0, 0)),
        ],
        out_specs=pl.BlockSpec((tm, D), lambda i: (i, 0)),
        compiler_params=pltpu.CompilerParams(
            dimension_semantics=("parallel",),
            vmem_limit_bytes=_vmem_limit_bytes(),
        ),
    )(x, gamma.reshape(1, D), beta.reshape(1, D))
    return out[:M] if Mp != M else out


# ----------------------------------------------------------------------------
# Multi-head attention on the fused (B, S, 3D) QKV tensor.
# One grid step handles one (batch, head-group) pair; the head group width
# (hg * Dh) is a multiple of 128 lanes, so both inputs and output are
# lane-dense and no XLA head split/merge transposes are needed.
# ----------------------------------------------------------------------------
def _attention_kernel(q_ref, k_ref, v_ref, o_ref, *, n_heads, head_dim, scale):
    # Fold the 1/sqrt(Dh) scale into q before QK^T (O(S*Dh) work).
    q = q_ref[0] * scale                      # (S, hg*Dh), compute dtype
    k = k_ref[0]
    v = v_ref[0]
    for h in range(n_heads):
        lo = h * head_dim
        hi = lo + head_dim
        q_h = q[:, lo:hi]                     # (S, Dh)
        k_h = k[:, lo:hi]
        v_h = v[:, lo:hi]
        s = jax.lax.dot_general(              # q_h @ k_h^T  -> (S, S) f32
            q_h, k_h, (((1,), (1,)), ((), ())),
            preferred_element_type=jnp.float32)
        m = jnp.max(s, axis=-1, keepdims=True)
        # exp kept in f32 for accuracy (v5e has no bf16 EUP anyway);
        # probabilities are fed to the MXU in bf16.
        p = jnp.exp(s - m)
        denom = jnp.sum(p, axis=-1, keepdims=True)
        o_h = jnp.dot(p.astype(v_h.dtype), v_h,
                      preferred_element_type=jnp.float32)      # (S, Dh)
        # Normalize AFTER the PV matmul: O(S*Dh) multiplies, EUP reciprocal.
        o_h = o_h * pl.reciprocal(denom, approx=True)
        o_ref[0, :, lo:hi] = o_h.astype(o_ref.dtype)


def _pick_head_group(n_heads, head_dim):
    # Smallest head group whose fused width is lane-dense (multiple of 128):
    # smaller groups => more grid steps (megacore) and less live VMEM (v7x).
    for hg in range(1, n_heads + 1):
        if n_heads % hg == 0 and (hg * head_dim) % 128 == 0:
            return hg
    return None


def attention(qkv, batch, seq, n_heads, head_dim):
    """qkv: (B, S, 3D) laid out [q | k | v] (each D = n_heads*head_dim wide).
    Returns (B, S, D) with heads already merged in the standard order."""
    D = n_heads * head_dim
    scale = 1.0 / (head_dim ** 0.5)
    hg = _pick_head_group(n_heads, head_dim)
    assert hg is not None, "n_heads * head_dim must allow a 128-lane head group"
    gh = n_heads // hg
    width = hg * head_dim
    # TODO(synk): for very long sequences add a kv-blocked (flash) grid axis so
    # the (hg, S, S) logits never exceed v7x's 64 MiB VMEM.

    return pl.pallas_call(
        functools.partial(_attention_kernel, n_heads=hg, head_dim=head_dim,
                          scale=scale),
        out_shape=jax.ShapeDtypeStruct((batch, seq, D), qkv.dtype),
        grid=(batch, gh),
        in_specs=[
            pl.BlockSpec((1, seq, width), lambda b, g: (b, 0, g)),
            pl.BlockSpec((1, seq, width), lambda b, g: (b, 0, gh + g)),
            pl.BlockSpec((1, seq, width), lambda b, g: (b, 0, 2 * gh + g)),
        ],
        out_specs=pl.BlockSpec((1, seq, width), lambda b, g: (b, 0, g)),
        compiler_params=pltpu.CompilerParams(
            dimension_semantics=("parallel", "parallel"),
            vmem_limit_bytes=_vmem_limit_bytes(),
        ),
    )(qkv, qkv, qkv)


# ----------------------------------------------------------------------------
# CLIP vision model (get_image_features) built from the kernels above
# ----------------------------------------------------------------------------
def init_params(key, cfg, dtype=jnp.float32):
    C, P, D = cfg["channels"], cfg["patch"], cfg["hidden"]
    Np = (cfg["image_size"] // P) ** 2
    S = Np + 1
    I = cfg["mlp"]
    proj = cfg["proj"]
    keys = iter(jax.random.split(key, 4 + 8 * cfg["layers"]))

    def dense(k, shape):
        return (jax.random.normal(k, shape, dtype) * 0.02).astype(dtype)

    params = {
        "patch_w": dense(next(keys), (C * P * P, D)),   # conv (no bias) as matmul
        "class_emb": dense(next(keys), (D,)),
        "pos_emb": dense(next(keys), (S, D)),
        "pre_ln_g": jnp.ones((D,), dtype), "pre_ln_b": jnp.zeros((D,), dtype),
        "post_ln_g": jnp.ones((D,), dtype), "post_ln_b": jnp.zeros((D,), dtype),
        "proj_w": dense(next(keys), (D, proj)),          # visual_projection, no bias
        "layers": [],
    }
    for _ in range(cfg["layers"]):
        params["layers"].append({
            "ln1_g": jnp.ones((D,), dtype), "ln1_b": jnp.zeros((D,), dtype),
            "ln2_g": jnp.ones((D,), dtype), "ln2_b": jnp.zeros((D,), dtype),
            # Fused QKV: columns are [q_proj | k_proj | v_proj].
            "qkv_w": dense(next(keys), (D, 3 * D)),
            "qkv_b": dense(next(keys), (3 * D,)),
            "o_w": dense(next(keys), (D, D)), "o_b": dense(next(keys), (D,)),
            "fc1_w": dense(next(keys), (D, I)), "fc1_b": dense(next(keys), (I,)),
            "fc2_w": dense(next(keys), (I, D)), "fc2_b": dense(next(keys), (D,)),
        })
    return params


def clip_get_image_features(pixel_values, params, cfg,
                            compute_dtype=jnp.bfloat16):
    B, C, H, W = pixel_values.shape
    P, D, nH = cfg["patch"], cfg["hidden"], cfg["heads"]
    Dh = D // nH
    gh, gw = H // P, W // P
    Np_ = gh * gw
    S = Np_ + 1
    out_dtype = pixel_values.dtype

    # bf16 operands for the MXU; all accumulation / LN stats / softmax stay f32.
    p_ = jax.tree.map(lambda t: t.astype(compute_dtype), params)
    pixel_values = pixel_values.astype(compute_dtype)

    # --- patch embedding: stride-P conv == patch extraction + Pallas matmul
    # TODO(synk): patch extraction (space-to-depth reshape/transpose) stays in XLA.
    x = pixel_values.reshape(B, C, gh, P, gw, P)
    x = x.transpose(0, 2, 4, 1, 3, 5).reshape(B * Np_, C * P * P)
    patch_embeds = linear(x, p_["patch_w"]).reshape(B, Np_, D)   # no bias

    # --- class token + positional embeddings (XLA glue)
    cls = jnp.broadcast_to(p_["class_emb"][None, None, :], (B, 1, D))
    h = jnp.concatenate([cls, patch_embeds], axis=1) + p_["pos_emb"][None, :, :]

    # --- pre layernorm
    h = layernorm(h.reshape(B * S, D),
                  p_["pre_ln_g"], p_["pre_ln_b"]).reshape(B, S, D)

    # --- transformer encoder layers
    for lyr in p_["layers"]:
        resid = h.reshape(B * S, D)
        y = layernorm(resid, lyr["ln1_g"], lyr["ln1_b"])

        qkv = linear(y, lyr["qkv_w"], lyr["qkv_b"])              # (B*S, 3D)
        attn = attention(qkv.reshape(B, S, 3 * D), B, S, nH, Dh)  # (B, S, D)
        # out projection with fused residual add
        h = linear(attn.reshape(B * S, D), lyr["o_w"], lyr["o_b"],
                   residual=resid)                               # (B*S, D)

        resid = h
        y = layernorm(h, lyr["ln2_g"], lyr["ln2_b"])
        y = linear(y, lyr["fc1_w"], lyr["fc1_b"], activation="quick_gelu")
        h = linear(y, lyr["fc2_w"], lyr["fc2_b"], residual=resid)  # fused resid
        h = h.reshape(B, S, D)

    # --- pooled CLS token -> post layernorm -> visual projection (no bias)
    pooled = h[:, 0, :]                                          # (B, D)
    pooled = layernorm(pooled, p_["post_ln_g"], p_["post_ln_b"])
    image_features = linear(pooled, p_["proj_w"])                # (B, proj)
    return image_features.astype(out_dtype)


# ----------------------------------------------------------------------------
# Pure-JAX f32 reference (for the numerical check in __main__)
# ----------------------------------------------------------------------------
def _reference_image_features(pixel_values, params, cfg):
    B, C, H, W = pixel_values.shape
    P, D, nH = cfg["patch"], cfg["hidden"], cfg["heads"]
    Dh = D // nH
    gh, gw = H // P, W // P
    Np = gh * gw
    S = Np + 1

    def ln(t, g, b, eps=1e-5):
        mu = t.mean(-1, keepdims=True)
        var = ((t - mu) ** 2).mean(-1, keepdims=True)
        return (t - mu) * jax.lax.rsqrt(var + eps) * g + b

    x = pixel_values.reshape(B, C, gh, P, gw, P)
    x = x.transpose(0, 2, 4, 1, 3, 5).reshape(B * Np, C * P * P)
    patch = (x @ params["patch_w"]).reshape(B, Np, D)
    cls = jnp.broadcast_to(params["class_emb"][None, None, :], (B, 1, D))
    h = jnp.concatenate([cls, patch], axis=1) + params["pos_emb"][None]
    h = ln(h, params["pre_ln_g"], params["pre_ln_b"])
    for lyr in params["layers"]:
        y = ln(h, lyr["ln1_g"], lyr["ln1_b"])
        qkv = (y @ lyr["qkv_w"] + lyr["qkv_b"]).reshape(B, S, 3, nH, Dh)
        q, k, v = (qkv[:, :, c].transpose(0, 2, 1, 3) for c in range(3))
        s = jnp.einsum("bhqd,bhkd->bhqk", q, k) / (Dh ** 0.5)
        p = jax.nn.softmax(s, axis=-1)
        o = jnp.einsum("bhqk,bhkd->bhqd", p, v)
        o = o.transpose(0, 2, 1, 3).reshape(B, S, D)
        h = h + (o @ lyr["o_w"] + lyr["o_b"])
        y = ln(h, lyr["ln2_g"], lyr["ln2_b"])
        y = y @ lyr["fc1_w"] + lyr["fc1_b"]
        y = y * jax.nn.sigmoid(1.702 * y)
        h = h + (y @ lyr["fc2_w"] + lyr["fc2_b"])
    pooled = ln(h[:, 0, :], params["post_ln_g"], params["post_ln_b"])
    return pooled @ params["proj_w"]


if __name__ == "__main__":
    cfg = dict(
        image_size=32,   # 4x4 = 16 patches, seq = 17 with CLS
        patch=8,
        channels=3,
        hidden=128,      # 2 heads x 64 -> exercises the head-pair (128-lane) path
        heads=2,
        mlp=1024,        # fc2 K=1024 -> exercises the multi-k accumulator path
        layers=2,
        proj=64,
    )
    key = jax.random.PRNGKey(0)
    k_in, k_par = jax.random.split(key)
    pixel_values = jax.random.normal(
        k_in, (2, cfg["channels"], cfg["image_size"], cfg["image_size"]),
        jnp.float32)
    params = init_params(k_par, cfg)

    fwd = jax.jit(functools.partial(clip_get_image_features, cfg=cfg))
    feats = jax.block_until_ready(fwd(pixel_values, params))

    assert feats.shape == (2, cfg["proj"]), feats.shape
    assert bool(jnp.all(jnp.isfinite(feats)))

    ref = _reference_image_features(pixel_values, params, cfg)
    max_err = float(jnp.max(jnp.abs(feats.astype(jnp.float32) - ref)))
    # bf16 matmul operands + approx softmax reciprocal vs a pure-f32 reference.
    assert max_err < 5e-2, f"mismatch vs reference: max abs err {max_err}"

    print("KERNEL_OK")
</pallas_src>

<mosaic_0001>
module attributes {stable_mosaic.version = 11 : i64} {
  func.func @_linear_kernel(%arg0: i32, %arg1: i32, %arg2: i32, %arg3: memref<32x192xbf16, #tpu.memory_space<vmem>>, %arg4: memref<192x128xbf16, #tpu.memory_space<vmem>>, %arg5: memref<32x128xbf16, #tpu.memory_space<vmem>>) attributes {dimension_semantics = [#tpu.dimension_semantics<parallel>, #tpu.dimension_semantics<parallel>, #tpu.dimension_semantics<arbitrary>], iteration_bounds = array<i64: 1, 1, 1>, scalar_prefetch = 0 : i64, scratch_operands = 0 : i64, tpu.core_type = #tpu.core_type<tc>, window_params = [{transform_indices = @transform_0, window_bounds = array<i64: 32, 192>}, {transform_indices = @transform_1, window_bounds = array<i64: 192, 128>}, {transform_indices = @transform_2, window_bounds = array<i64: 32, 128>}]} {
    %c0 = arith.constant 0 : index
    %c0_0 = arith.constant 0 : index
    %0 = vector.load %arg3[%c0, %c0_0] : memref<32x192xbf16, #tpu.memory_space<vmem>>, vector<32x192xbf16>
    %c0_1 = arith.constant 0 : index
    %c0_2 = arith.constant 0 : index
    %1 = vector.load %arg4[%c0_1, %c0_2] : memref<192x128xbf16, #tpu.memory_space<vmem>>, vector<192x128xbf16>
    %cst = arith.constant dense<0.000000e+00> : vector<32x128xf32>
    %2 = tpu.matmul %0, %1, %cst {dimension_numbers = #tpu.dot_dimension_numbers<[1], [0], [0], [1], [0, 0, 1, 1], [], []>} : vector<32x192xbf16>, vector<192x128xbf16>, vector<32x128xf32> -> vector<32x128xf32>
    %3 = arith.truncf %2 : vector<32x128xf32> to vector<32x128xbf16>
    %c0_3 = arith.constant 0 : index
    %c0_4 = arith.constant 0 : index
    %4 = vector.load %arg5[%c0_3, %c0_4] : memref<32x128xbf16, #tpu.memory_space<vmem>>, vector<32x128xbf16>
    tpu.vector_store %arg5[%c0_3, %c0_4], %3 {strides = array<i32>} : memref<32x128xbf16, #tpu.memory_space<vmem>>, vector<32x128xbf16>,
    return
  }
  func.func @transform_0(%arg0: i32, %arg1: i32, %arg2: i32) -> (i32, i32) {
    %c0_i32 = arith.constant 0 : i32
    return %arg0, %arg2 : i32, i32
  }
  func.func @transform_1(%arg0: i32, %arg1: i32, %arg2: i32) -> (i32, i32) {
    %c0_i32 = arith.constant 0 : i32
    return %arg2, %arg1 : i32, i32
  }
  func.func @transform_2(%arg0: i32, %arg1: i32, %arg2: i32) -> (i32, i32) {
    %c0_i32 = arith.constant 0 : i32
    return %arg0, %arg1 : i32, i32
  }
}

module attributes {stable_mosaic.version = 11 : i64} {
  func.func @_layernorm_kernel(%arg0: i32, %arg1: memref<40x128xbf16, #tpu.memory_space<vmem>>, %arg2: memref<1x128xbf16, #tpu.memory_space<vmem>>, %arg3: memref<1x128xbf16, #tpu.memory_space<vmem>>, %arg4: memref<40x128xbf16, #tpu.memory_space<vmem>>) attributes {dimension_semantics = [#tpu.dimension_semantics<parallel>], iteration_bounds = array<i64: 1>, scalar_prefetch = 0 : i64, scratch_operands = 0 : i64, tpu.core_type = #tpu.core_type<tc>, window_params = [{transform_indices = @transform_0, window_bounds = array<i64: 40, 128>}, {pipeline_mode = #tpu.pipeline_mode<synchronous>, transform_indices = @transform_1, window_bounds = array<i64: 1, 128>}, {pipeline_mode = #tpu.pipeline_mode<synchronous>, transform_indices = @transform_2, window_bounds = array<i64: 1, 128>}, {transform_indices = @transform_3, window_bounds = array<i64: 40, 128>}]} {
    %c0 = arith.constant 0 : index
    %c0_0 = arith.constant 0 : index
    %0 = vector.load %arg1[%c0, %c0_0] : memref<40x128xbf16, #tpu.memory_space<vmem>>, vector<40x128xbf16>
    %1 = arith.extf %0 : vector<40x128xbf16> to vector<40x128xf32>
    %cst = arith.constant dense<0.000000e+00> : vector<40xf32>
    %2 = vector.multi_reduction <add>, %1, %cst [1] : vector<40x128xf32> to vector<40xf32>
    %3 = vector.shape_cast %2 : vector<40xf32> to vector<40x1xf32>
    %cst_1 = arith.constant 1.280000e+02 : f32
    %4 = vector.broadcast %cst_1 : f32 to vector<40x1xf32>
    %5 = arith.divf %3, %4 : vector<40x1xf32>
    %6 = vector.broadcast %5 : vector<40x1xf32> to vector<40x128xf32>
    %7 = arith.subf %1, %6 : vector<40x128xf32>
    %8 = arith.mulf %7, %7 : vector<40x128xf32>
    %cst_2 = arith.constant dense<0.000000e+00> : vector<40xf32>
    %9 = vector.multi_reduction <add>, %8, %cst_2 [1] : vector<40x128xf32> to vector<40xf32>
    %10 = vector.shape_cast %9 : vector<40xf32> to vector<40x1xf32>
    %cst_3 = arith.constant 1.280000e+02 : f32
    %11 = vector.broadcast %cst_3 : f32 to vector<40x1xf32>
    %12 = arith.divf %10, %11 : vector<40x1xf32>
    %13 = vector.broadcast %5 : vector<40x1xf32> to vector<40x128xf32>
    %14 = arith.subf %1, %13 : vector<40x128xf32>
    %cst_4 = arith.constant 9.99999974E-6 : f32
    %15 = vector.broadcast %cst_4 : f32 to vector<40x1xf32>
    %16 = arith.addf %12, %15 : vector<40x1xf32>
    %17 = math.rsqrt %16 : vector<40x1xf32>
    %18 = vector.broadcast %17 : vector<40x1xf32> to vector<40x128xf32>
    %19 = arith.mulf %14, %18 : vector<40x128xf32>
    %c0_5 = arith.constant 0 : index
    %c0_6 = arith.constant 0 : index
    %20 = vector.load %arg2[%c0_5, %c0_6] : memref<1x128xbf16, #tpu.memory_space<vmem>>, vector<1x128xbf16>
    %21 = arith.extf %20 : vector<1x128xbf16> to vector<1x128xf32>
    %22 = vector.broadcast %21 : vector<1x128xf32> to vector<40x128xf32>
    %23 = arith.mulf %19, %22 : vector<40x128xf32>
    %c0_7 = arith.constant 0 : index
    %c0_8 = arith.constant 0 : index
    %24 = vector.load %arg3[%c0_7, %c0_8] : memref<1x128xbf16, #tpu.memory_space<vmem>>, vector<1x128xbf16>
    %25 = arith.extf %24 : vector<1x128xbf16> to vector<1x128xf32>
    %26 = vector.broadcast %25 : vector<1x128xf32> to vector<40x128xf32>
    %27 = arith.addf %23, %26 : vector<40x128xf32>
    %28 = arith.truncf %27 : vector<40x128xf32> to vector<40x128xbf16>
    %c0_9 = arith.constant 0 : index
    %c0_10 = arith.constant 0 : index
    %29 = vector.load %arg4[%c0_9, %c0_10] : memref<40x128xbf16, #tpu.memory_space<vmem>>, vector<40x128xbf16>
    tpu.vector_store %arg4[%c0_9, %c0_10], %28 {strides = array<i32>} : memref<40x128xbf16, #tpu.memory_space<vmem>>, vector<40x128xbf16>,
    return
  }
  func.func @transform_0(%arg0: i32) -> (i32, i32) {
    %c0_i32 = arith.constant 0 : i32
    %c0_i32_0 = arith.constant 0 : i32
    return %arg0, %c0_i32 : i32, i32
  }
  func.func @transform_1(%arg0: i32) -> (i32, i32) {
    %c0_i32 = arith.constant 0 : i32
    %c0_i32_0 = arith.constant 0 : i32
    %c0_i32_1 = arith.constant 0 : i32
    return %c0_i32, %c0_i32_0 : i32, i32
  }
  func.func @transform_2(%arg0: i32) -> (i32, i32) {
    %c0_i32 = arith.constant 0 : i32
    %c0_i32_0 = arith.constant 0 : i32
    %c0_i32_1 = arith.constant 0 : i32
    return %c0_i32, %c0_i32_0 : i32, i32
  }
  func.func @transform_3(%arg0: i32) -> (i32, i32) {
    %c0_i32 = arith.constant 0 : i32
    %c0_i32_0 = arith.constant 0 : i32
    return %arg0, %c0_i32 : i32, i32
  }
}

module attributes {stable_mosaic.version = 11 : i64} {
  func.func @_attention_kernel(%arg0: i32, %arg1: i32, %arg2: memref<1x17x128xbf16, #tpu.memory_space<vmem>>, %arg3: memref<1x17x128xbf16, #tpu.memory_space<vmem>>, %arg4: memref<1x17x128xbf16, #tpu.memory_space<vmem>>, %arg5: memref<1x17x128xbf16, #tpu.memory_space<vmem>>) attributes {dimension_semantics = [#tpu.dimension_semantics<parallel>, #tpu.dimension_semantics<parallel>], iteration_bounds = array<i64: 2, 1>, scalar_prefetch = 0 : i64, scratch_operands = 0 : i64, tpu.core_type = #tpu.core_type<tc>, window_params = [{transform_indices = @transform_0, window_bounds = array<i64: 1, 17, 128>}, {transform_indices = @transform_1, window_bounds = array<i64: 1, 17, 128>}, {transform_indices = @transform_2, window_bounds = array<i64: 1, 17, 128>}, {transform_indices = @transform_3, window_bounds = array<i64: 1, 17, 128>}]} {
    %c0 = arith.constant 0 : index
    %c0_0 = arith.constant 0 : index
    %c0_1 = arith.constant 0 : index
    %0 = vector.load %arg2[%c0, %c0_0, %c0_1] : memref<1x17x128xbf16, #tpu.memory_space<vmem>>, vector<1x17x128xbf16>
    %1 = vector.shape_cast %0 : vector<1x17x128xbf16> to vector<17x128xbf16>
    %cst = arith.constant 1.250000e-01 : bf16
    %2 = vector.broadcast %cst : bf16 to vector<17x128xbf16>
    %3 = arith.mulf %1, %2 : vector<17x128xbf16>
    %c0_2 = arith.constant 0 : index
    %c0_3 = arith.constant 0 : index
    %c0_4 = arith.constant 0 : index
    %4 = vector.load %arg3[%c0_2, %c0_3, %c0_4] : memref<1x17x128xbf16, #tpu.memory_space<vmem>>, vector<1x17x128xbf16>
    %5 = vector.shape_cast %4 : vector<1x17x128xbf16> to vector<17x128xbf16>
    %c0_5 = arith.constant 0 : index
    %c0_6 = arith.constant 0 : index
    %c0_7 = arith.constant 0 : index
    %6 = vector.load %arg4[%c0_5, %c0_6, %c0_7] : memref<1x17x128xbf16, #tpu.memory_space<vmem>>, vector<1x17x128xbf16>
    %7 = vector.shape_cast %6 : vector<1x17x128xbf16> to vector<17x128xbf16>
    %8 = vector.extract_strided_slice %3 {offsets = [0, 0], sizes = [17, 64], strides = [1, 1]} : vector<17x128xbf16> to vector<17x64xbf16>
    %9 = vector.extract_strided_slice %5 {offsets = [0, 0], sizes = [17, 64], strides = [1, 1]} : vector<17x128xbf16> to vector<17x64xbf16>
    %10 = vector.extract_strided_slice %7 {offsets = [0, 0], sizes = [17, 64], strides = [1, 1]} : vector<17x128xbf16> to vector<17x64xbf16>
    %cst_8 = arith.constant dense<0.000000e+00> : vector<17x17xf32>
    %11 = tpu.matmul %8, %9, %cst_8 {dimension_numbers = #tpu.dot_dimension_numbers<[1], [1], [0], [0], [0, 0, 1, 0], [], []>} : vector<17x64xbf16>, vector<17x64xbf16>, vector<17x17xf32> -> vector<17x17xf32>
    %cst_9 = arith.constant dense<0xFF800000> : vector<17xf32>
    %12 = vector.multi_reduction <maximumf>, %11, %cst_9 [1] : vector<17x17xf32> to vector<17xf32>
    %13 = vector.shape_cast %12 : vector<17xf32> to vector<17x1xf32>
    %14 = vector.broadcast %13 : vector<17x1xf32> to vector<17x17xf32>
    %15 = arith.subf %11, %14 : vector<17x17xf32>
    %16 = math.exp %15 : vector<17x17xf32>
    %cst_10 = arith.constant dense<0.000000e+00> : vector<17xf32>
    %17 = vector.multi_reduction <add>, %16, %cst_10 [1] : vector<17x17xf32> to vector<17xf32>
    %18 = vector.shape_cast %17 : vector<17xf32> to vector<17x1xf32>
    %19 = arith.truncf %16 : vector<17x17xf32> to vector<17x17xbf16>
    %cst_11 = arith.constant dense<0.000000e+00> : vector<17x64xf32>
    %20 = tpu.matmul %19, %10, %cst_11 {dimension_numbers = #tpu.dot_dimension_numbers<[1], [0], [0], [1], [0, 0, 1, 1], [], []>} : vector<17x17xbf16>, vector<17x64xbf16>, vector<17x64xf32> -> vector<17x64xf32>
    %21 = tpu.reciprocal %18 {approx = true} : vector<17x1xf32> -> vector<17x1xf32>
    %22 = vector.broadcast %21 : vector<17x1xf32> to vector<17x64xf32>
    %23 = arith.mulf %20, %22 : vector<17x64xf32>
    %24 = arith.truncf %23 : vector<17x64xf32> to vector<17x64xbf16>
    %c0_12 = arith.constant 0 : index
    %c0_13 = arith.constant 0 : index
    %c0_14 = arith.constant 0 : index
    %25 = vector.load %arg5[%c0_12, %c0_13, %c0_14] : memref<1x17x128xbf16, #tpu.memory_space<vmem>>, vector<1x17x64xbf16>
    %26 = vector.shape_cast %25 : vector<1x17x64xbf16> to vector<17x64xbf16>
    %27 = vector.shape_cast %24 : vector<17x64xbf16> to vector<1x17x64xbf16>
    tpu.vector_store %arg5[%c0_12, %c0_13, %c0_14], %27 {strides = array<i32>} : memref<1x17x128xbf16, #tpu.memory_space<vmem>>, vector<1x17x64xbf16>,
    %28 = vector.extract_strided_slice %3 {offsets = [0, 64], sizes = [17, 64], strides = [1, 1]} : vector<17x128xbf16> to vector<17x64xbf16>
    %29 = vector.extract_strided_slice %5 {offsets = [0, 64], sizes = [17, 64], strides = [1, 1]} : vector<17x128xbf16> to vector<17x64xbf16>
    %30 = vector.extract_strided_slice %7 {offsets = [0, 64], sizes = [17, 64], strides = [1, 1]} : vector<17x128xbf16> to vector<17x64xbf16>
    %cst_15 = arith.constant dense<0.000000e+00> : vector<17x17xf32>
    %31 = tpu.matmul %28, %29, %cst_15 {dimension_numbers = #tpu.dot_dimension_numbers<[1], [1], [0], [0], [0, 0, 1, 0], [], []>} : vector<17x64xbf16>, vector<17x64xbf16>, vector<17x17xf32> -> vector<17x17xf32>
    %cst_16 = arith.constant dense<0xFF800000> : vector<17xf32>
    %32 = vector.multi_reduction <maximumf>, %31, %cst_16 [1] : vector<17x17xf32> to vector<17xf32>
    %33 = vector.shape_cast %32 : vector<17xf32> to vector<17x1xf32>
    %34 = vector.broadcast %33 : vector<17x1xf32> to vector<17x17xf32>
    %35 = arith.subf %31, %34 : vector<17x17xf32>
    %36 = math.exp %35 : vector<17x17xf32>
    %cst_17 = arith.constant dense<0.000000e+00> : vector<17xf32>
    %37 = vector.multi_reduction <add>, %36, %cst_17 [1] : vector<17x17xf32> to vector<17xf32>
    %38 = vector.shape_cast %37 : vector<17xf32> to vector<17x1xf32>
    %39 = arith.truncf %36 : vector<17x17xf32> to vector<17x17xbf16>
    %cst_18 = arith.constant dense<0.000000e+00> : vector<17x64xf32>
    %40 = tpu.matmul %39, %30, %cst_18 {dimension_numbers = #tpu.dot_dimension_numbers<[1], [0], [0], [1], [0, 0, 1, 1], [], []>} : vector<17x17xbf16>, vector<17x64xbf16>, vector<17x64xf32> -> vector<17x64xf32>
    %41 = tpu.reciprocal %38 {approx = true} : vector<17x1xf32> -> vector<17x1xf32>
    %42 = vector.broadcast %41 : vector<17x1xf32> to vector<17x64xf32>
    %43 = arith.mulf %40, %42 : vector<17x64xf32>
    %44 = arith.truncf %43 : vector<17x64xf32> to vector<17x64xbf16>
    %c0_19 = arith.constant 0 : index
    %c0_20 = arith.constant 0 : index
    %c64 = arith.constant 64 : index
    %45 = vector.load %arg5[%c0_19, %c0_20, %c64] : memref<1x17x128xbf16, #tpu.memory_space<vmem>>, vector<1x17x64xbf16>
    %46 = vector.shape_cast %45 : vector<1x17x64xbf16> to vector<17x64xbf16>
    %47 = vector.shape_cast %44 : vector<17x64xbf16> to vector<1x17x64xbf16>
    tpu.vector_store %arg5[%c0_19, %c0_20, %c64], %47 {strides = array<i32>} : memref<1x17x128xbf16, #tpu.memory_space<vmem>>, vector<1x17x64xbf16>,
    return
  }
  func.func @transform_0(%arg0: i32, %arg1: i32) -> (i32, i32, i32) {
    %c0_i32 = arith.constant 0 : i32
    %c0_i32_0 = arith.constant 0 : i32
    return %arg0, %c0_i32, %arg1 : i32, i32, i32
  }
  func.func @transform_1(%arg0: i32, %arg1: i32) -> (i32, i32, i32) {
    %c1_i32 = arith.constant 1 : i32
    %0 = arith.addi %c1_i32, %arg1 : i32
    %c0_i32 = arith.constant 0 : i32
    %c0_i32_0 = arith.constant 0 : i32
    return %arg0, %c0_i32, %0 : i32, i32, i32
  }
  func.func @transform_2(%arg0: i32, %arg1: i32) -> (i32, i32, i32) {
    %c2_i32 = arith.constant 2 : i32
    %0 = arith.addi %c2_i32, %arg1 : i32
    %c0_i32 = arith.constant 0 : i32
    %c0_i32_0 = arith.constant 0 : i32
    return %arg0, %c0_i32, %0 : i32, i32, i32
  }
  func.func @transform_3(%arg0: i32, %arg1: i32) -> (i32, i32, i32) {
    %c0_i32 = arith.constant 0 : i32
    %c0_i32_0 = arith.constant 0 : i32
    return %arg0, %c0_i32, %arg1 : i32, i32, i32
  }
}

module attributes {stable_mosaic.version = 11 : i64} {
  func.func @_linear_kernel(%arg0: i32, %arg1: i32, %arg2: i32, %arg3: memref<40x128xbf16, #tpu.memory_space<vmem>>, %arg4: memref<128x384xbf16, #tpu.memory_space<vmem>>, %arg5: memref<1x384xbf16, #tpu.memory_space<vmem>>, %arg6: memref<40x384xbf16, #tpu.memory_space<vmem>>) attributes {dimension_semantics = [#tpu.dimension_semantics<parallel>, #tpu.dimension_semantics<parallel>, #tpu.dimension_semantics<arbitrary>], iteration_bounds = array<i64: 1, 1, 1>, scalar_prefetch = 0 : i64, scratch_operands = 0 : i64, tpu.core_type = #tpu.core_type<tc>, window_params = [{transform_indices = @transform_0, window_bounds = array<i64: 40, 128>}, {transform_indices = @transform_1, window_bounds = array<i64: 128, 384>}, {transform_indices = @transform_2, window_bounds = array<i64: 1, 384>}, {transform_indices = @transform_3, window_bounds = array<i64: 40, 384>}]} {
    %c0 = arith.constant 0 : index
    %c0_0 = arith.constant 0 : index
    %0 = vector.load %arg3[%c0, %c0_0] : memref<40x128xbf16, #tpu.memory_space<vmem>>, vector<40x128xbf16>
    %c0_1 = arith.constant 0 : index
    %c0_2 = arith.constant 0 : index
    %1 = vector.load %arg4[%c0_1, %c0_2] : memref<128x384xbf16, #tpu.memory_space<vmem>>, vector<128x384xbf16>
    %cst = arith.constant dense<0.000000e+00> : vector<40x384xf32>
    %2 = tpu.matmul %0, %1, %cst {dimension_numbers = #tpu.dot_dimension_numbers<[1], [0], [0], [1], [0, 0, 1, 1], [], []>} : vector<40x128xbf16>, vector<128x384xbf16>, vector<40x384xf32> -> vector<40x384xf32>
    %c0_3 = arith.constant 0 : index
    %c0_4 = arith.constant 0 : index
    %3 = vector.load %arg5[%c0_3, %c0_4] : memref<1x384xbf16, #tpu.memory_space<vmem>>, vector<1x384xbf16>
    %4 = arith.extf %3 : vector<1x384xbf16> to vector<1x384xf32>
    %5 = vector.broadcast %4 : vector<1x384xf32> to vector<40x384xf32>
    %6 = arith.addf %2, %5 : vector<40x384xf32>
    %7 = arith.truncf %6 : vector<40x384xf32> to vector<40x384xbf16>
    %c0_5 = arith.constant 0 : index
    %c0_6 = arith.constant 0 : index
    %8 = vector.load %arg6[%c0_5, %c0_6] : memref<40x384xbf16, #tpu.memory_space<vmem>>, vector<40x384xbf16>
    tpu.vector_store %arg6[%c0_5, %c0_6], %7 {strides = array<i32>} : memref<40x384xbf16, #tpu.memory_space<vmem>>, vector<40x384xbf16>,
    return
  }
  func.func @transform_0(%arg0: i32, %arg1: i32, %arg2: i32) -> (i32, i32) {
    %c0_i32 = arith.constant 0 : i32
    return %arg0, %arg2 : i32, i32
  }
  func.func @transform_1(%arg0: i32, %arg1: i32, %arg2: i32) -> (i32, i32) {
    %c0_i32 = arith.constant 0 : i32
    return %arg2, %arg1 : i32, i32
  }
  func.func @transform_2(%arg0: i32, %arg1: i32, %arg2: i32) -> (i32, i32) {
    %c0_i32 = arith.constant 0 : i32
    %c0_i32_0 = arith.constant 0 : i32
    return %c0_i32, %arg1 : i32, i32
  }
  func.func @transform_3(%arg0: i32, %arg1: i32, %arg2: i32) -> (i32, i32) {
    %c0_i32 = arith.constant 0 : i32
    return %arg0, %arg1 : i32, i32
  }
}

module attributes {stable_mosaic.version = 11 : i64} {
  func.func @_linear_kernel(%arg0: i32, %arg1: i32, %arg2: i32, %arg3: memref<40x128xbf16, #tpu.memory_space<vmem>>, %arg4: memref<128x128xbf16, #tpu.memory_space<vmem>>, %arg5: memref<1x128xbf16, #tpu.memory_space<vmem>>, %arg6: memref<40x128xbf16, #tpu.memory_space<vmem>>, %arg7: memref<40x128xbf16, #tpu.memory_space<vmem>>) attributes {dimension_semantics = [#tpu.dimension_semantics<parallel>, #tpu.dimension_semantics<parallel>, #tpu.dimension_semantics<arbitrary>], iteration_bounds = array<i64: 1, 1, 1>, scalar_prefetch = 0 : i64, scratch_operands = 0 : i64, tpu.core_type = #tpu.core_type<tc>, window_params = [{transform_indices = @transform_0, window_bounds = array<i64: 40, 128>}, {transform_indices = @transform_1, window_bounds = array<i64: 128, 128>}, {transform_indices = @transform_2, window_bounds = array<i64: 1, 128>}, {transform_indices = @transform_3, window_bounds = array<i64: 40, 128>}, {transform_indices = @transform_4, window_bounds = array<i64: 40, 128>}]} {
    %c0 = arith.constant 0 : index
    %c0_0 = arith.constant 0 : index
    %0 = vector.load %arg3[%c0, %c0_0] : memref<40x128xbf16, #tpu.memory_space<vmem>>, vector<40x128xbf16>
    %c0_1 = arith.constant 0 : index
    %c0_2 = arith.constant 0 : index
    %1 = vector.load %arg4[%c0_1, %c0_2] : memref<128x128xbf16, #tpu.memory_space<vmem>>, vector<128x128xbf16>
    %cst = arith.constant dense<0.000000e+00> : vector<40x128xf32>
    %2 = tpu.matmul %0, %1, %cst {dimension_numbers = #tpu.dot_dimension_numbers<[1], [0], [0], [1], [0, 0, 1, 1], [], []>} : vector<40x128xbf16>, vector<128x128xbf16>, vector<40x128xf32> -> vector<40x128xf32>
    %c0_3 = arith.constant 0 : index
    %c0_4 = arith.constant 0 : index
    %3 = vector.load %arg5[%c0_3, %c0_4] : memref<1x128xbf16, #tpu.memory_space<vmem>>, vector<1x128xbf16>
    %4 = arith.extf %3 : vector<1x128xbf16> to vector<1x128xf32>
    %5 = vector.broadcast %4 : vector<1x128xf32> to vector<40x128xf32>
    %6 = arith.addf %2, %5 : vector<40x128xf32>
    %c0_5 = arith.constant 0 : index
    %c0_6 = arith.constant 0 : index
    %7 = vector.load %arg6[%c0_5, %c0_6] : memref<40x128xbf16, #tpu.memory_space<vmem>>, vector<40x128xbf16>
    %8 = arith.extf %7 : vector<40x128xbf16> to vector<40x128xf32>
    %9 = arith.addf %6, %8 : vector<40x128xf32>
    %10 = arith.truncf %9 : vector<40x128xf32> to vector<40x128xbf16>
    %c0_7 = arith.constant 0 : index
    %c0_8 = arith.constant 0 : index
    %11 = vector.load %arg7[%c0_7, %c0_8] : memref<40x128xbf16, #tpu.memory_space<vmem>>, vector<40x128xbf16>
    tpu.vector_store %arg7[%c0_7, %c0_8], %10 {strides = array<i32>} : memref<40x128xbf16, #tpu.memory_space<vmem>>, vector<40x128xbf16>,
    return
  }
  func.func @transform_0(%arg0: i32, %arg1: i32, %arg2: i32) -> (i32, i32) {
    %c0_i32 = arith.constant 0 : i32
    return %arg0, %arg2 : i32, i32
  }
  func.func @transform_1(%arg0: i32, %arg1: i32, %arg2: i32) -> (i32, i32) {
    %c0_i32 = arith.constant 0 : i32
    return %arg2, %arg1 : i32, i32
  }
  func.func @transform_2(%arg0: i32, %arg1: i32, %arg2: i32) -> (i32, i32) {
    %c0_i32 = arith.constant 0 : i32
    %c0_i32_0 = arith.constant 0 : i32
    return %c0_i32, %arg1 : i32, i32
  }
  func.func @transform_3(%arg0: i32, %arg1: i32, %arg2: i32) -> (i32, i32) {
    %c0_i32 = arith.constant 0 : i32
    return %arg0, %arg1 : i32, i32
  }
  func.func @transform_4(%arg0: i32, %arg1: i32, %arg2: i32) -> (i32, i32) {
    %c0_i32 = arith.constant 0 : i32
    return %arg0, %arg1 : i32, i32
  }
}

module attributes {stable_mosaic.version = 11 : i64} {
  func.func @_linear_kernel(%arg0: i32, %arg1: i32, %arg2: i32, %arg3: memref<40x128xbf16, #tpu.memory_space<vmem>>, %arg4: memref<128x512xbf16, #tpu.memory_space<vmem>>, %arg5: memref<1x512xbf16, #tpu.memory_space<vmem>>, %arg6: memref<40x512xbf16, #tpu.memory_space<vmem>>) attributes {dimension_semantics = [#tpu.dimension_semantics<parallel>, #tpu.dimension_semantics<parallel>, #tpu.dimension_semantics<arbitrary>], iteration_bounds = array<i64: 1, 2, 1>, scalar_prefetch = 0 : i64, scratch_operands = 0 : i64, tpu.core_type = #tpu.core_type<tc>, window_params = [{transform_indices = @transform_0, window_bounds = array<i64: 40, 128>}, {transform_indices = @transform_1, window_bounds = array<i64: 128, 512>}, {transform_indices = @transform_2, window_bounds = array<i64: 1, 512>}, {transform_indices = @transform_3, window_bounds = array<i64: 40, 512>}]} {
    %c0 = arith.constant 0 : index
    %c0_0 = arith.constant 0 : index
    %0 = vector.load %arg3[%c0, %c0_0] : memref<40x128xbf16, #tpu.memory_space<vmem>>, vector<40x128xbf16>
    %c0_1 = arith.constant 0 : index
    %c0_2 = arith.constant 0 : index
    %1 = vector.load %arg4[%c0_1, %c0_2] : memref<128x512xbf16, #tpu.memory_space<vmem>>, vector<128x512xbf16>
    %cst = arith.constant dense<0.000000e+00> : vector<40x512xf32>
    %2 = tpu.matmul %0, %1, %cst {dimension_numbers = #tpu.dot_dimension_numbers<[1], [0], [0], [1], [0, 0, 1, 1], [], []>} : vector<40x128xbf16>, vector<128x512xbf16>, vector<40x512xf32> -> vector<40x512xf32>
    %c0_3 = arith.constant 0 : index
    %c0_4 = arith.constant 0 : index
    %3 = vector.load %arg5[%c0_3, %c0_4] : memref<1x512xbf16, #tpu.memory_space<vmem>>, vector<1x512xbf16>
    %4 = arith.extf %3 : vector<1x512xbf16> to vector<1x512xf32>
    %5 = vector.broadcast %4 : vector<1x512xf32> to vector<40x512xf32>
    %6 = arith.addf %2, %5 : vector<40x512xf32>
    %cst_5 = arith.constant 1.702000e+00 : f32
    %7 = vector.broadcast %cst_5 : f32 to vector<40x512xf32>
    %8 = arith.mulf %7, %6 : vector<40x512xf32>
    %9 = arith.negf %8 : vector<40x512xf32>
    %10 = math.exp %9 : vector<40x512xf32>
    %cst_6 = arith.constant 1.000000e+00 : f32
    %11 = vector.broadcast %cst_6 : f32 to vector<40x512xf32>
    %12 = arith.addf %11, %10 : vector<40x512xf32>
    %13 = arith.divf %11, %12 : vector<40x512xf32>
    %14 = arith.mulf %6, %13 : vector<40x512xf32>
    %15 = arith.truncf %14 : vector<40x512xf32> to vector<40x512xbf16>
    %c0_7 = arith.constant 0 : index
    %c0_8 = arith.constant 0 : index
    %16 = vector.load %arg6[%c0_7, %c0_8] : memref<40x512xbf16, #tpu.memory_space<vmem>>, vector<40x512xbf16>
    tpu.vector_store %arg6[%c0_7, %c0_8], %15 {strides = array<i32>} : memref<40x512xbf16, #tpu.memory_space<vmem>>, vector<40x512xbf16>,
    return
  }
  func.func @transform_0(%arg0: i32, %arg1: i32, %arg2: i32) -> (i32, i32) {
    %c0_i32 = arith.constant 0 : i32
    return %arg0, %arg2 : i32, i32
  }
  func.func @transform_1(%arg0: i32, %arg1: i32, %arg2: i32) -> (i32, i32) {
    %c0_i32 = arith.constant 0 : i32
    return %arg2, %arg1 : i32, i32
  }
  func.func @transform_2(%arg0: i32, %arg1: i32, %arg2: i32) -> (i32, i32) {
    %c0_i32 = arith.constant 0 : i32
    %c0_i32_0 = arith.constant 0 : i32
    return %c0_i32, %arg1 : i32, i32
  }
  func.func @transform_3(%arg0: i32, %arg1: i32, %arg2: i32) -> (i32, i32) {
    %c0_i32 = arith.constant 0 : i32
    return %arg0, %arg1 : i32, i32
  }
}

module attributes {stable_mosaic.version = 11 : i64} {
  func.func @_linear_kernel(%arg0: i32, %arg1: i32, %arg2: i32, %arg3: memref<40x512xbf16, #tpu.memory_space<vmem>>, %arg4: memref<512x128xbf16, #tpu.memory_space<vmem>>, %arg5: memref<1x128xbf16, #tpu.memory_space<vmem>>, %arg6: memref<40x128xbf16, #tpu.memory_space<vmem>>, %arg7: memref<40x128xbf16, #tpu.memory_space<vmem>>, %arg8: memref<40x128xf32, #tpu.memory_space<vmem>>) attributes {dimension_semantics = [#tpu.dimension_semantics<parallel>, #tpu.dimension_semantics<parallel>, #tpu.dimension_semantics<arbitrary>], iteration_bounds = array<i64: 1, 1, 2>, scalar_prefetch = 0 : i64, scratch_operands = 1 : i64, tpu.core_type = #tpu.core_type<tc>, window_params = [{transform_indices = @transform_0, window_bounds = array<i64: 40, 512>}, {transform_indices = @transform_1, window_bounds = array<i64: 512, 128>}, {transform_indices = @transform_2, window_bounds = array<i64: 1, 128>}, {transform_indices = @transform_3, window_bounds = array<i64: 40, 128>}, {transform_indices = @transform_4, window_bounds = array<i64: 40, 128>}]} {
    %c0_i32 = arith.constant 0 : i32
    %0 = arith.cmpi eq, %arg2, %c0_i32 : i32
    %1 = arith.extui %0 : i1 to i32
    %c0_i32_0 = arith.constant 0 : i32
    %2 = arith.cmpi ne, %1, %c0_i32_0 : i32
    scf.if %2 {
      %cst_9 = arith.constant 0.000000e+00 : f32
      %12 = vector.broadcast %cst_9 : f32 to vector<40x128xf32>
      %c0_10 = arith.constant 0 : index
      %c0_11 = arith.constant 0 : index
      %13 = vector.load %arg8[%c0_10, %c0_11] : memref<40x128xf32, #tpu.memory_space<vmem>>, vector<40x128xf32>
      tpu.vector_store %arg8[%c0_10, %c0_11], %12 {strides = array<i32>} : memref<40x128xf32, #tpu.memory_space<vmem>>, vector<40x128xf32>,
    } else {
    }
    %c0 = arith.constant 0 : index
    %c0_1 = arith.constant 0 : index
    %3 = vector.load %arg8[%c0, %c0_1] : memref<40x128xf32, #tpu.memory_space<vmem>>, vector<40x128xf32>
    %c0_2 = arith.constant 0 : index
    %c0_3 = arith.constant 0 : index
    %4 = vector.load %arg3[%c0_2, %c0_3] : memref<40x512xbf16, #tpu.memory_space<vmem>>, vector<40x512xbf16>
    %c0_4 = arith.constant 0 : index
    %c0_5 = arith.constant 0 : index
    %5 = vector.load %arg4[%c0_4, %c0_5] : memref<512x128xbf16, #tpu.memory_space<vmem>>, vector<512x128xbf16>
    %cst = arith.constant dense<0.000000e+00> : vector<40x128xf32>
    %6 = tpu.matmul %4, %5, %cst {dimension_numbers = #tpu.dot_dimension_numbers<[1], [0], [0], [1], [0, 0, 1, 1], [], []>} : vector<40x512xbf16>, vector<512x128xbf16>, vector<40x128xf32> -> vector<40x128xf32>
    %7 = arith.addf %3, %6 : vector<40x128xf32>
    %c0_6 = arith.constant 0 : index
    %c0_7 = arith.constant 0 : index
    %8 = vector.load %arg8[%c0_6, %c0_7] : memref<40x128xf32, #tpu.memory_space<vmem>>, vector<40x128xf32>
    tpu.vector_store %arg8[%c0_6, %c0_7], %7 {strides = array<i32>} : memref<40x128xf32, #tpu.memory_space<vmem>>, vector<40x128xf32>,
    %c1_i32 = arith.constant 1 : i32
    %9 = arith.cmpi eq, %arg2, %c1_i32 : i32
    %10 = arith.extui %9 : i1 to i32
    %c0_i32_8 = arith.constant 0 : i32
    %11 = arith.cmpi ne, %10, %c0_i32_8 : i32
    scf.if %11 {
      %c0_9 = arith.constant 0 : index
      %c0_10 = arith.constant 0 : index
      %12 = vector.load %arg8[%c0_9, %c0_10] : memref<40x128xf32, #tpu.memory_space<vmem>>, vector<40x128xf32>
      %c0_11 = arith.constant 0 : index
      %c0_12 = arith.constant 0 : index
      %13 = vector.load %arg5[%c0_11, %c0_12] : memref<1x128xbf16, #tpu.memory_space<vmem>>, vector<1x128xbf16>
      %14 = arith.extf %13 : vector<1x128xbf16> to vector<1x128xf32>
      %15 = vector.broadcast %14 : vector<1x128xf32> to vector<40x128xf32>
      %16 = arith.addf %12, %15 : vector<40x128xf32>
      %c0_13 = arith.constant 0 : index
      %c0_14 = arith.constant 0 : index
      %17 = vector.load %arg6[%c0_13, %c0_14] : memref<40x128xbf16, #tpu.memory_space<vmem>>, vector<40x128xbf16>
      %18 = arith.extf %17 : vector<40x128xbf16> to vector<40x128xf32>
      %19 = arith.addf %16, %18 : vector<40x128xf32>
      %20 = arith.truncf %19 : vector<40x128xf32> to vector<40x128xbf16>
      %c0_15 = arith.constant 0 : index
      %c0_16 = arith.constant 0 : index
      %21 = vector.load %arg7[%c0_15, %c0_16] : memref<40x128xbf16, #tpu.memory_space<vmem>>, vector<40x128xbf16>
      tpu.vector_store %arg7[%c0_15, %c0_16], %20 {strides = array<i32>} : memref<40x128xbf16, #tpu.memory_space<vmem>>, vector<40x128xbf16>,
    } else {
    }
    return
  }
  func.func @transform_0(%arg0: i32, %arg1: i32, %arg2: i32) -> (i32, i32) {
    %c0_i32 = arith.constant 0 : i32
    return %arg0, %arg2 : i32, i32
  }
  func.func @transform_1(%arg0: i32, %arg1: i32, %arg2: i32) -> (i32, i32) {
    %c0_i32 = arith.constant 0 : i32
    return %arg2, %arg1 : i32, i32
  }
  func.func @transform_2(%arg0: i32, %arg1: i32, %arg2: i32) -> (i32, i32) {
    %c0_i32 = arith.constant 0 : i32
    %c0_i32_0 = arith.constant 0 : i32
    return %c0_i32, %arg1 : i32, i32
  }
  func.func @transform_3(%arg0: i32, %arg1: i32, %arg2: i32) -> (i32, i32) {
    %c0_i32 = arith.constant 0 : i32
    return %arg0, %arg1 : i32, i32
  }
  func.func @transform_4(%arg0: i32, %arg1: i32, %arg2: i32) -> (i32, i32) {
    %c0_i32 = arith.constant 0 : i32
    return %arg0, %arg1 : i32, i32
  }
}

module attributes {stable_mosaic.version = 11 : i64} {
  func.func @_layernorm_kernel(%arg0: i32, %arg1: memref<8x128xbf16, #tpu.memory_space<vmem>>, %arg2: memref<1x128xbf16, #tpu.memory_space<vmem>>, %arg3: memref<1x128xbf16, #tpu.memory_space<vmem>>, %arg4: memref<8x128xbf16, #tpu.memory_space<vmem>>) attributes {dimension_semantics = [#tpu.dimension_semantics<parallel>], iteration_bounds = array<i64: 1>, scalar_prefetch = 0 : i64, scratch_operands = 0 : i64, tpu.core_type = #tpu.core_type<tc>, window_params = [{transform_indices = @transform_0, window_bounds = array<i64: 8, 128>}, {pipeline_mode = #tpu.pipeline_mode<synchronous>, transform_indices = @transform_1, window_bounds = array<i64: 1, 128>}, {pipeline_mode = #tpu.pipeline_mode<synchronous>, transform_indices = @transform_2, window_bounds = array<i64: 1, 128>}, {transform_indices = @transform_3, window_bounds = array<i64: 8, 128>}]} {
    %c0 = arith.constant 0 : index
    %c0_0 = arith.constant 0 : index
    %0 = vector.load %arg1[%c0, %c0_0] : memref<8x128xbf16, #tpu.memory_space<vmem>>, vector<8x128xbf16>
    %1 = arith.extf %0 : vector<8x128xbf16> to vector<8x128xf32>
    %cst = arith.constant dense<0.000000e+00> : vector<8xf32>
    %2 = vector.multi_reduction <add>, %1, %cst [1] : vector<8x128xf32> to vector<8xf32>
    %3 = vector.shape_cast %2 : vector<8xf32> to vector<8x1xf32>
    %cst_1 = arith.constant 1.280000e+02 : f32
    %4 = vector.broadcast %cst_1 : f32 to vector<8x1xf32>
    %5 = arith.divf %3, %4 : vector<8x1xf32>
    %6 = vector.broadcast %5 : vector<8x1xf32> to vector<8x128xf32>
    %7 = arith.subf %1, %6 : vector<8x128xf32>
    %8 = arith.mulf %7, %7 : vector<8x128xf32>
    %cst_2 = arith.constant dense<0.000000e+00> : vector<8xf32>
    %9 = vector.multi_reduction <add>, %8, %cst_2 [1] : vector<8x128xf32> to vector<8xf32>
    %10 = vector.shape_cast %9 : vector<8xf32> to vector<8x1xf32>
    %cst_3 = arith.constant 1.280000e+02 : f32
    %11 = vector.broadcast %cst_3 : f32 to vector<8x1xf32>
    %12 = arith.divf %10, %11 : vector<8x1xf32>
    %13 = vector.broadcast %5 : vector<8x1xf32> to vector<8x128xf32>
    %14 = arith.subf %1, %13 : vector<8x128xf32>
    %cst_4 = arith.constant 9.99999974E-6 : f32
    %15 = vector.broadcast %cst_4 : f32 to vector<8x1xf32>
    %16 = arith.addf %12, %15 : vector<8x1xf32>
    %17 = math.rsqrt %16 : vector<8x1xf32>
    %18 = vector.broadcast %17 : vector<8x1xf32> to vector<8x128xf32>
    %19 = arith.mulf %14, %18 : vector<8x128xf32>
    %c0_5 = arith.constant 0 : index
    %c0_6 = arith.constant 0 : index
    %20 = vector.load %arg2[%c0_5, %c0_6] : memref<1x128xbf16, #tpu.memory_space<vmem>>, vector<1x128xbf16>
    %21 = arith.extf %20 : vector<1x128xbf16> to vector<1x128xf32>
    %22 = vector.broadcast %21 : vector<1x128xf32> to vector<8x128xf32>
    %23 = arith.mulf %19, %22 : vector<8x128xf32>
    %c0_7 = arith.constant 0 : index
    %c0_8 = arith.constant 0 : index
    %24 = vector.load %arg3[%c0_7, %c0_8] : memref<1x128xbf16, #tpu.memory_space<vmem>>, vector<1x128xbf16>
    %25 = arith.extf %24 : vector<1x128xbf16> to vector<1x128xf32>
    %26 = vector.broadcast %25 : vector<1x128xf32> to vector<8x128xf32>
    %27 = arith.addf %23, %26 : vector<8x128xf32>
    %28 = arith.truncf %27 : vector<8x128xf32> to vector<8x128xbf16>
    %c0_9 = arith.constant 0 : index
    %c0_10 = arith.constant 0 : index
    %29 = vector.load %arg4[%c0_9, %c0_10] : memref<8x128xbf16, #tpu.memory_space<vmem>>, vector<8x128xbf16>
    tpu.vector_store %arg4[%c0_9, %c0_10], %28 {strides = array<i32>} : memref<8x128xbf16, #tpu.memory_space<vmem>>, vector<8x128xbf16>,
    return
  }
  func.func @transform_0(%arg0: i32) -> (i32, i32) {
    %c0_i32 = arith.constant 0 : i32
    %c0_i32_0 = arith.constant 0 : i32
    return %arg0, %c0_i32 : i32, i32
  }
  func.func @transform_1(%arg0: i32) -> (i32, i32) {
    %c0_i32 = arith.constant 0 : i32
    %c0_i32_0 = arith.constant 0 : i32
    %c0_i32_1 = arith.constant 0 : i32
    return %c0_i32, %c0_i32_0 : i32, i32
  }
  func.func @transform_2(%arg0: i32) -> (i32, i32) {
    %c0_i32 = arith.constant 0 : i32
    %c0_i32_0 = arith.constant 0 : i32
    %c0_i32_1 = arith.constant 0 : i32
    return %c0_i32, %c0_i32_0 : i32, i32
  }
  func.func @transform_3(%arg0: i32) -> (i32, i32) {
    %c0_i32 = arith.constant 0 : i32
    %c0_i32_0 = arith.constant 0 : i32
    return %arg0, %c0_i32 : i32, i32
  }
}

module attributes {stable_mosaic.version = 11 : i64} {
  func.func @_linear_kernel(%arg0: i32, %arg1: i32, %arg2: i32, %arg3: memref<8x128xbf16, #tpu.memory_space<vmem>>, %arg4: memref<128x64xbf16, #tpu.memory_space<vmem>>, %arg5: memref<8x64xbf16, #tpu.memory_space<vmem>>) attributes {dimension_semantics = [#tpu.dimension_semantics<parallel>, #tpu.dimension_semantics<parallel>, #tpu.dimension_semantics<arbitrary>], iteration_bounds = array<i64: 1, 1, 1>, scalar_prefetch = 0 : i64, scratch_operands = 0 : i64, tpu.core_type = #tpu.core_type<tc>, window_params = [{transform_indices = @transform_0, window_bounds = array<i64: 8, 128>}, {transform_indices = @transform_1, window_bounds = array<i64: 128, 64>}, {transform_indices = @transform_2, window_bounds = array<i64: 8, 64>}]} {
    %c0 = arith.constant 0 : index
    %c0_0 = arith.constant 0 : index
    %0 = vector.load %arg3[%c0, %c0_0] : memref<8x128xbf16, #tpu.memory_space<vmem>>, vector<8x128xbf16>
    %c0_1 = arith.constant 0 : index
    %c0_2 = arith.constant 0 : index
    %1 = vector.load %arg4[%c0_1, %c0_2] : memref<128x64xbf16, #tpu.memory_space<vmem>>, vector<128x64xbf16>
    %cst = arith.constant dense<0.000000e+00> : vector<8x64xf32>
    %2 = tpu.matmul %0, %1, %cst {dimension_numbers = #tpu.dot_dimension_numbers<[1], [0], [0], [1], [0, 0, 1, 1], [], []>} : vector<8x128xbf16>, vector<128x64xbf16>, vector<8x64xf32> -> vector<8x64xf32>
    %3 = arith.truncf %2 : vector<8x64xf32> to vector<8x64xbf16>
    %c0_3 = arith.constant 0 : index
    %c0_4 = arith.constant 0 : index
    %4 = vector.load %arg5[%c0_3, %c0_4] : memref<8x64xbf16, #tpu.memory_space<vmem>>, vector<8x64xbf16>
    tpu.vector_store %arg5[%c0_3, %c0_4], %3 {strides = array<i32>} : memref<8x64xbf16, #tpu.memory_space<vmem>>, vector<8x64xbf16>,
    return
  }
  func.func @transform_0(%arg0: i32, %arg1: i32, %arg2: i32) -> (i32, i32) {
    %c0_i32 = arith.constant 0 : i32
    return %arg0, %arg2 : i32, i32
  }
  func.func @transform_1(%arg0: i32, %arg1: i32, %arg2: i32) -> (i32, i32) {
    %c0_i32 = arith.constant 0 : i32
    return %arg2, %arg1 : i32, i32
  }
  func.func @transform_2(%arg0: i32, %arg1: i32, %arg2: i32) -> (i32, i32) {
    %c0_i32 = arith.constant 0 : i32
    return %arg0, %arg1 : i32, i32
  }
}

</mosaic_0001>

<bundles_post_ra>
// kernel: clip_get_image_features.19
= control target key start
LH: loop header
LB: loop body
LE: loop exit
PB: predicated region body
PF: predicated region fallthrough
CT: control target
= control target key end

     0   :  { %v82_v33 = vlaneseq  ;;  %s216_s0 = inlined_call_operand.vmem [shape: bf16[40,128], index: 0, kind: input, shape index: {}]   ;;  %s217_s1 = inlined_call_operand.vmem [shape: bf16[1,128], index: 1, kind: input, shape index: {}]   ;;  %s218_s2 = inlined_call_operand.vmem [shape: bf16[1,128], index: 2, kind: input, shape index: {}]   ;;  %s219_s3 = inlined_call_operand.vmem [shape: bf16[40,128], index: 3, kind: output, shape index: {}]  }
   0x1   :  { %v143_v0 = vld [vmem:[%s216_s0] sm:$0xff]   ;;  %v160_v1 = vld [vmem:[%s216_s0 + $0x8] sm:$0xff]   ;;  %v18_v6 = vld [vmem:[%s216_s0 + $0x10] sm:$0xf] }
   0x2   :  { %v144_v2 = vunpack.c.l.bf16 %v143_v0  ;;  %v148_v3 = vunpack.c.l.bf16 %v160_v1  ;;  %v145_v4 = vunpack.c.h.bf16 %v143_v0  ;;  %v149_v5 = vunpack.c.h.bf16 %v160_v1  ;;  %v80_v43 = vld [vmem:[%s217_s1] sm:$0x1] }
   0x3   :  { %v23_v7 = vunpack.c.l.bf16 %v18_v6  ;;  %v83_v40 = vshrl.u32 %v82_v33, 7  ;;  %v81_v46 = vunpack.c.l.bf16 %v80_v43  ;;  %v91_v48 = vld [vmem:[%s218_s2] sm:$0x1] }
   0x4   :  { %24 = vadd.xlane.f32.xlu0 %v144_v2  ;;  %28 = vadd.xlane.f32.xlu1 %v148_v3  ;;  %v92_v51 = vunpack.c.l.bf16 %v91_v48 }
   0x5   :  { %v84_v47 = vsub.s32 0, %v83_v40 }
   0x7   :  { %v85_v50 = vrot.slane %v81_v46, %v84_v47  ;;  %v96_v55 = vrot.slane %v92_v51, %v84_v47 }
   0x8   :  { %26 = vadd.xlane.f32.xlu0 %v145_v4  ;;  %30 = vadd.xlane.f32.xlu1 %v149_v5 }
   0xc   :  { %32 = vadd.xlane.f32.xlu0 %v23_v7 }
  0x91   :  { %v25_v8 = vpop.xlane.xlu0 %24  ;;  %v29_v9 = vpop.xlane.xlu1 %28 }
  0x92   :  { %v35_v10 = vmul.f32 0.0078125, %v25_v8  ;;  %v37_v11 = vmul.f32 0.0078125, %v29_v9 }
  0x94   :  { %v40_v12 = vsub.f32 %v144_v2, %v35_v10  ;;  %v42_v13 = vsub.f32 %v148_v3, %v37_v11 }
  0x95   :  { %v27_v14 = vpop.xlane.xlu0 %26  ;;  %v31_v15 = vpop.xlane.xlu1 %30 }
  0x96   :  { %v36_v16 = vmul.f32 0.0078125, %v27_v14  ;;  %v45_v17 = vmul.f32 %v40_v12, %v40_v12  ;;  %v38_v18 = vmul.f32 0.0078125, %v31_v15  ;;  %v47_v21 = vmul.f32 %v42_v13, %v42_v13 }
  0x98   :  { %v41_v19 = vsub.f32 %v145_v4, %v36_v16  ;;  %50 = vadd.xlane.f32.xlu1 %v45_v17  ;;  %v43_v20 = vsub.f32 %v149_v5, %v38_v18 }
  0x99   :  { %v33_v22 = vpop.xlane.xlu0 %32 }
  0x9a   :  { %v39_v23 = vmul.f32 0.0078125, %v33_v22  ;;  %v46_v24 = vmul.f32 %v41_v19, %v41_v19  ;;  %v48_v26 = vmul.f32 %v43_v20, %v43_v20 }
  0x9c   :  { %v44_v25 = vsub.f32 %v23_v7, %v39_v23  ;;  %54 = vadd.xlane.f32.xlu1 %v47_v21  ;;  %52 = vadd.xlane.f32.xlu0 %v46_v24 }
  0x9e   :  { %v49_v27 = vmul.f32 %v44_v25, %v44_v25 }
  0xa0   :  { %56 = vadd.xlane.f32.xlu0 %v48_v26  ;;  %58 = vadd.xlane.f32.xlu1 %v49_v27 }
 0x125   :  { %v51_v28 = vpop.xlane.xlu1 %50 }
 0x126   :  { %v60_v29 = vmul.f32 0.0078125, %v51_v28 }
 0x128   :  { %v65_v30 = vadd.f32 1e-05, %v60_v29 }
 0x129   :  { %v55_v31 = vpop.xlane.xlu1 %54  ;;  %v53_v32 = vpop.xlane.xlu0 %52 }
 0x12a   :  { %162 = vrsqrt.f32 %v65_v30  ;;  %v62_v34 = vmul.f32 0.0078125, %v55_v31  ;;  %v61_v35 = vmul.f32 0.0078125, %v53_v32 }
 0x12c   :  { %v67_v36 = vadd.f32 1e-05, %v62_v34  ;;  %v66_v37 = vadd.f32 1e-05, %v61_v35 }
 0x12d   :  { %v59_v38 = vpop.xlane.xlu1 %58  ;;  %v57_v39 = vpop.xlane.xlu0 %56 }
 0x12e   :  { %164 = vrsqrt.f32 %v67_v36  ;;  %v64_v41 = vmul.f32 0.0078125, %v59_v38  ;;  %v63_v42 = vmul.f32 0.0078125, %v57_v39 }
 0x12f   :  { %166 = vrsqrt.f32 %v66_v37 }
 0x130   :  { %v69_v44 = vadd.f32 1e-05, %v64_v41  ;;  %v68_v45 = vadd.f32 1e-05, %v63_v42 }
 0x132   :  { %168 = vrsqrt.f32 %v69_v44 }
 0x133   :  { %170 = vrsqrt.f32 %v68_v45 }
 0x134   :  { %v163_v49 = vpop.eup %162 }
 0x135   :  { %v75_v52 = vmul.f32 %v163_v49, %v40_v12 }
 0x137   :  { %v86_v56 = vmul.f32 %v85_v50, %v75_v52 }
 0x138   :  { %v165_v53 = vpop.eup %164 }
 0x139   :  { %v167_v54 = vpop.eup %166  ;;  %v77_v57 = vmul.f32 %v165_v53, %v42_v13  ;;  %v97_v63 = vadd.f32 %v96_v55, %v86_v56 }
 0x13a   :  { %v76_v58 = vmul.f32 %v167_v54, %v41_v19 }
 0x13b   :  { %v88_v0 = vmul.f32 %v85_v50, %v77_v57 }
 0x13c   :  { %v169_v59 = vpop.eup %168  ;;  %v87_v60 = vmul.f32 %v85_v50, %v76_v58 }
 0x13d   :  { %v171_v61 = vpop.eup %170  ;;  %v79_v62 = vmul.f32 %v169_v59, %v44_v25  ;;  %v99_v7 = vadd.f32 %v96_v55, %v88_v0 }
 0x13e   :  { %v98_v1 = vadd.f32 %v96_v55, %v87_v60  ;;  %v78_v2 = vmul.f32 %v171_v61, %v43_v20 }
 0x13f   :  { %v90_v3 = vmul.f32 %v85_v50, %v79_v62 }
 0x140   :  { %v153_v4 = vpack.c.bf16 %v98_v1, %v97_v63  ;;  %v89_v5 = vmul.f32 %v85_v50, %v78_v2 }
 0x141   :  { %v101_v6 = vadd.f32 %v96_v55, %v90_v3 }
 0x142   :  { %154 = vst [vmem:[%s219_s3] sm:$0xff] %v153_v4   ;;  %v100_v8 = vadd.f32 %v96_v55, %v89_v5 }
 0x143   :  { %v141_v9 = vpack.c.bf16 %v101_v6, %v101_v6 }
 0x144   :  { %v158_v10 = vpack.c.bf16 %v100_v8, %v99_v7 }
 0x145   :  { %127 = vst [vmem:[%s219_s3 + $0x10] sm:$0xf] %v141_v9 }
 0x146   :  { %161 = vst [vmem:[%s219_s3 + $0x8] sm:$0xff] %v158_v10  }

// kernel: clip_get_image_features.18
= control target key start
LH: loop header
LB: loop body
LE: loop exit
PB: predicated region body
PF: predicated region fallthrough
CT: control target
= control target key end

     0   :  { %v290_v0 = vmov 0   ;;  %vm130_vm0 = vcmask 523264   ;;  %s384_s1 = inlined_call_operand.vmem [shape: bf16[192,128], index: 1, kind: input, shape index: {}]   ;;  %s385_s0 = inlined_call_operand.vmem [shape: bf16[32,192], index: 0, kind: input, shape index: {}]   ;;  %s386_s2 = inlined_call_operand.vmem [shape: bf16[32,128], index: 2, kind: output, shape index: {}]  }
   0x1   :  { %137 = vmatprep.subr.bf16.mxu0 %v290_v0  ;;  %247 = vmatprep.subr.bf16.mxu1 %v290_v0  ;;  %v272_v1 = vld [vmem:[%s384_s1] sm:$0xff]   ;;  %v273_v2 = vld [vmem:[%s384_s1 + $0x8] sm:$0xff]   ;;  %v274_v3 = vld [vmem:[%s384_s1 + $0x10] sm:$0xff]  }
   0x2   :  { %138 = vmatpush1.bf16.msra.mxu0 %v272_v1  ;;  %259 = vmatpush1.bf16.msra.mxu1 %v272_v1  ;;  %v275_v4 = vld [vmem:[%s384_s1 + $0x18] sm:$0xff]   ;;  %v286_v5 = vld [vmem:[%s385_s0 + $0x4] ss:$8 sps:$4 sm:$0xff]   ;;  %v278_v9 = vld [vmem:[%s384_s1 + $0x30] sm:$0xff]  }
   0x3   :  { %139 = vmatprep.subr.bf16.mxu0 %v290_v0  ;;  %248 = vmatprep.subr.bf16.mxu1 %v290_v0  ;;  %v276_v6 = vld [vmem:[%s384_s1 + $0x20] sm:$0xff]   ;;  %v289_v7 = vld [vmem:[%s385_s0 + $0x14] ss:$8 sps:$4 sm:$0xff]   ;;  %v277_v8 = vld [vmem:[%s384_s1 + $0x28] sm:$0xff]  }
   0x4   :  { %226 = vmatprep.mubr.msk.bf16.mxu0 %vm130_vm0, %v286_v5  ;;  %227 = vmatprep.mubr.msk.bf16.mxu1 %vm130_vm0, %v289_v7  ;;  %v279_v10 = vld [vmem:[%s384_s1 + $0x38] sm:$0xff]   ;;  %v280_v11 = vld [vmem:[%s384_s1 + $0x40] sm:$0xff]   ;;  %v281_v12 = vld [vmem:[%s384_s1 + $0x48] sm:$0xff]  }
   0x5   :  { %v282_v13 = vld [vmem:[%s384_s1 + $0x50] sm:$0xff]   ;;  %v283_v14 = vld [vmem:[%s384_s1 + $0x58] sm:$0xff]   ;;  %v284_v15 = vld [vmem:[%s385_s0] ss:$8 sps:$4 sm:$0xff]  }
   0x6   :  { %140 = vmatpush1.bf16.msra.mxu0 %v273_v2  ;;  %260 = vmatpush1.bf16.msra.mxu1 %v273_v2  ;;  %v287_v16 = vld [vmem:[%s385_s0 + $0x10] ss:$8 sps:$4 sm:$0xff]  }
   0x7   :  { %141 = vmatprep.subr.bf16.mxu0 %v290_v0  ;;  %249 = vmatprep.subr.bf16.mxu1 %v290_v0 }
   0xa   :  { %142 = vmatpush1.bf16.msra.mxu0 %v274_v3  ;;  %261 = vmatpush1.bf16.msra.mxu1 %v274_v3 }
   0xb   :  { %143 = vmatprep.subr.bf16.mxu0 %v290_v0  ;;  %250 = vmatprep.subr.bf16.mxu1 %v290_v0 }
   0xe   :  { %144 = vmatpush1.bf16.msra.mxu0 %v275_v4  ;;  %262 = vmatpush1.bf16.msra.mxu1 %v275_v4 }
   0xf   :  { %145 = vmatprep.subr.bf16.mxu0 %v290_v0  ;;  %251 = vmatprep.subr.bf16.mxu1 %v290_v0 }
  0x12   :  { %146 = vmatpush1.bf16.msra.mxu0 %v276_v6  ;;  %263 = vmatpush1.bf16.msra.mxu1 %v276_v6 }
  0x13   :  { %147 = vmatprep.subr.bf16.mxu0 %v290_v0  ;;  %252 = vmatprep.subr.bf16.mxu1 %v290_v0 }
  0x16   :  { %148 = vmatpush1.bf16.msra.mxu0 %v277_v8  ;;  %264 = vmatpush1.bf16.msra.mxu1 %v277_v8 }
  0x17   :  { %149 = vmatprep.subr.bf16.mxu0 %v290_v0  ;;  %253 = vmatprep.subr.bf16.mxu1 %v290_v0 }
  0x1a   :  { %150 = vmatpush1.bf16.msra.mxu0 %v278_v9  ;;  %265 = vmatpush1.bf16.msra.mxu1 %v278_v9 }
  0x1b   :  { %151 = vmatprep.subr.bf16.mxu0 %v290_v0  ;;  %254 = vmatprep.subr.bf16.mxu1 %v290_v0 }
  0x1e   :  { %152 = vmatpush1.bf16.msra.mxu0 %v279_v10  ;;  %266 = vmatpush1.bf16.msra.mxu1 %v279_v10 }
  0x1f   :  { %153 = vmatprep.subr.bf16.mxu0 %v290_v0  ;;  %255 = vmatprep.subr.bf16.mxu1 %v290_v0 }
  0x22   :  { %154 = vmatpush1.bf16.msra.mxu0 %v280_v11  ;;  %267 = vmatpush1.bf16.msra.mxu1 %v280_v11 }
  0x23   :  { %155 = vmatprep.subr.bf16.mxu0 %v290_v0  ;;  %256 = vmatprep.subr.bf16.mxu1 %v290_v0 }
  0x26   :  { %156 = vmatpush1.bf16.msra.mxu0 %v281_v12  ;;  %268 = vmatpush1.bf16.msra.mxu1 %v281_v12 }
  0x27   :  { %157 = vmatprep.subr.bf16.mxu0 %v290_v0  ;;  %257 = vmatprep.subr.bf16.mxu1 %v290_v0 }
  0x2a   :  { %158 = vmatpush1.bf16.msra.mxu0 %v282_v13  ;;  %269 = vmatpush1.bf16.msra.mxu1 %v282_v13 }
  0x2b   :  { %159 = vmatprep.subr.bf16.mxu0 %v290_v0  ;;  %258 = vmatprep.subr.bf16.mxu1 %v290_v0 }
  0x2e   :  { %160 = vmatpush1.bf16.msra.mxu0 %v283_v14  ;;  %270 = vmatpush1.bf16.msra.mxu1 %v283_v14 }
  0x31   :  { %170 = vmatmul.mubr.bf16.vlgmr.msra.gmra.mrb[0].mxu0 %v284_v15  ;;  %178 = vmatmul.mubr.bf16.vlgmr.msra.gmra.mrb[0].mxu1 %v287_v16 }
 0x104   :  { %v171_v17 = vpop.f32.mrb[0].mxu0  ;;  %v179_v18 = vpop.f32.mrb[0].mxu1 }
 0x105   :  { %v173_v19 = vpop.f32.mrb[1].mxu0  ;;  %v181_v20 = vpop.f32.mrb[1].mxu1 }
 0x106   :  { %v174_v21 = vpop.f32.mrb[2].mxu0  ;;  %v182_v22 = vpop.f32.mrb[2].mxu1 }
 0x107   :  { %v239_v23 = vpack.c.bf16 %v174_v21, %v171_v17  ;;  %v244_v24 = vpack.c.bf16 %v182_v22, %v179_v18  ;;  %v176_v25 = vpop.f32.mrb[3].mxu0  ;;  %v184_v26 = vpop.f32.mrb[3].mxu1 }
 0x109   :  { %240 = vst [vmem:[%s386_s2] sm:$0xff] %v239_v23   ;;  %246 = vst [vmem:[%s386_s2 + $0x8] sm:$0xff] %v244_v24  }

// kernel: clip_get_image_features.22
= control target key start
LH: loop header
LB: loop body
LE: loop exit
PB: predicated region body
PF: predicated region fallthrough
CT: control target
= control target key end

     0   :  { %s1169_s12 = smov 0   ;;  %s1171_s13 = smov 0   ;;  %s1330_s0 = inlined_call_operand.vmem [shape: bf16[2,17,384], index: 0, kind: input, shape index: {}, may-alias: {0,1,2}]   ;;  %s1331_s1 = inlined_call_operand.vmem [shape: bf16[2,17,384], index: 1, kind: input, shape index: {}, may-alias: {0,1,2}]   ;;  %s1332_s2 = inlined_call_operand.vmem [shape: bf16[2,17,384], index: 2, kind: input, shape index: {}, may-alias: {0,1,2}]   ;;  %s1333_s3 = inlined_call_operand.vmem [shape: bf16[2,17,128], index: 3, kind: output, shape index: {}]  }
   0x1   :  { %s1173_s14 = smov 0   ;;  %s1175_s15 = smov 0  }
   0x2   :  { %s1177_s16 = smov 0  }
   0x3 LB: > { %s25_s17 = sadd.s32 1, %s1141_s15  ;;  %p41_p1 = scmp.ne.s32.totalorder %s1133_s13, %s1129_s12  ;;  %s1145_s16 = sphi %s1177_s16, %s13_s16   ;;  %s1141_s15 = sphi %s1175_s15, %s1338_s15   ;;  %s1137_s14 = sphi %s1173_s14, %s1337_s14   ;;  %s1133_s13 = sphi %s1171_s13, %s1336_s13   ;;  %s1129_s12 = sphi %s1169_s12, %s1335_s12  }
   0x4   : > { %p27_p0 = scmp.ge.s32.totalorder %s25_s17, 2  ;;  %p42_p2 = scmp.eq.s32.totalorder %s1145_s16, 0 }
   0x5   : > { %s34_s20 = sadd.s32 1, %s1133_s13  ;;  %p939_p5 = scmp.ge.s32.totalorder %s1145_s16, 2 }
   0x6   : > { %s1340_s17 = smov (%p27_p0, %s25_s17), 0  ;;  %p1200_p3 = por %p42_p2, %p41_p1 }
   0x7   : > { %s29_s19 = ssub.s32 %s1141_s15, %s1340_s17  ;;  %155 = sbr.rel (%p939_p5) target bundleno = 35 (0x23), region = 16 }
   0x8   : > { %p32_p4 = scmp.eq.s32.totalorder %s29_s19, 0 }
   0xa   : > { %s1208_s21 = scalar_select %p32_p4, %s1133_s13, %s34_s20  }
   0xe   : > { %158 = sbr.rel (!%p1200_p3) target bundleno = 21 (0x15), region = 20  ;;  %s160_s22 = sand.u32 (%p1200_p3), 1, %s1133_s13  }
   0xf   : > { %s1032_s23 = smul.u32 (%p1200_p3), 36, %s1141_s15 }
  0x10   : > { %s1031_s24 = smul.u32 (%p1200_p3), 12, %s160_s22 }
  0x11   : > { %s166_s27 = scalar_lea.vmem (%p1200_p3), %s1330_s0, %s1032_s23 }
  0x12   : > { %v182_v0 = vld [vmem:[%s166_s27] sm:$0xf] (%p1200_p3)  ;;  %v184_v1 = vld [vmem:[%s166_s27 + $0xc] sm:$0xf] (%p1200_p3)  ;;  %s162_s28 = scalar_lea.vmem (%p1200_p3), [#allocation2], %s1031_s24 }
  0x13   : > { %183 = vst [vmem:[%s162_s28] sm:$0xf] (%p1200_p3), %v182_v0  ;;  %185 = vst [vmem:[%s162_s28 + $0x4] sm:$0xf] (%p1200_p3), %v184_v1  ;;  %v186_v2 = vld [vmem:[%s166_s27 + $0x18] sm:$0xf] (%p1200_p3) }
  0x14   : > { %187 = vst [vmem:[%s162_s28 + $0x8] sm:$0xf] (%p1200_p3), %v186_v2 }
  0x15 PF: > { %216 = sbr.rel (!%p1200_p3) target bundleno = 28 (0x1c), region = 61  ;;  %s218_s29 = sand.u32 (%p1200_p3), 1, %s1133_s13  }
  0x16   : > { %s941_s30 = smul.u32 (%p1200_p3), 36, %s1141_s15 }
  0x17   : > { %s1033_s4 = smul.u32 (%p1200_p3), 12, %s218_s29 }
  0x18   : > { %s847_s7 = scalar_lea.vmem (%p1200_p3), %s1331_s1, %s941_s30 }
  0x19   : > { %v942_v3 = vld [vmem:[%s847_s7 + $0x4] sm:$0xf] (%p1200_p3)  ;;  %v943_v4 = vld [vmem:[%s847_s7 + $0x10] sm:$0xf] (%p1200_p3)  ;;  %s220_s8 = scalar_lea.vmem (%p1200_p3), [#allocation3], %s1033_s4 }
  0x1a   : > { %242 = vst [vmem:[%s220_s8] sm:$0xf] (%p1200_p3), %v942_v3  ;;  %244 = vst [vmem:[%s220_s8 + $0x4] sm:$0xf] (%p1200_p3), %v943_v4  ;;  %v944_v5 = vld [vmem:[%s847_s7 + $0x1c] sm:$0xf] (%p1200_p3) }
  0x1b   : > { %246 = vst [vmem:[%s220_s8 + $0x8] sm:$0xf] (%p1200_p3), %v944_v5 }
  0x1c PF: > { %275 = sbr.rel (!%p1200_p3) target bundleno = 35 (0x23), region = 102  ;;  %s277_s9 = sand.u32 (%p1200_p3), 1, %s1133_s13  }
  0x1d   : > { %s945_s10 = smul.u32 (%p1200_p3), 36, %s1141_s15 }
  0x1e   : > { %s1034_s11 = smul.u32 (%p1200_p3), 12, %s277_s9 }
  0x1f   : > { %s854_s22 = scalar_lea.vmem (%p1200_p3), %s1332_s2, %s945_s10 }
  0x20   : > { %v946_v6 = vld [vmem:[%s854_s22 + $0x8] sm:$0xf] (%p1200_p3)  ;;  %v947_v7 = vld [vmem:[%s854_s22 + $0x14] sm:$0xf] (%p1200_p3)  ;;  %s279_s23 = scalar_lea.vmem (%p1200_p3), [#allocation4], %s1034_s11 }
  0x21   : > { %301 = vst [vmem:[%s279_s23] sm:$0xf] (%p1200_p3), %v946_v6  ;;  %303 = vst [vmem:[%s279_s23 + $0x4] sm:$0xf] (%p1200_p3), %v947_v7  ;;  %v948_v8 = vld [vmem:[%s854_s22 + $0x20] sm:$0xf] (%p1200_p3) }
  0x22   : > { %305 = vst [vmem:[%s279_s23 + $0x8] sm:$0xf] (%p1200_p3), %v948_v8 }
  0x23 PF: > { %p949_p6 = scmp.ge.s32.totalorder %s1145_s16, 1  ;;  %p333_p7 = scmp.lt.s32.totalorder %s1145_s16, 3 }
  0x25   : > { %p334_p8 = pnand %p949_p6, %p333_p7 }
  0x26   : > { %s340_s18 = sand.u32 (!%p334_p8), 1, %s1129_s12   ;;  %vm428_vm0 = vcmask (!%p334_p8), 523264   ;;  %vm496_vm1 = vcmask (!%p334_p8), 131072   ;;  %vm489_vm2 = vcmask (!%p334_p8), 138240   ;;  %s1147_s12 = smov (!%p334_p8), 64   ;;  %vm535_vm3 = vcmask (!%p334_p8), 1040384  }
  0x27   : > { %337 = sbr.rel (%p334_p8) target bundleno = 1168 (0x490), region = 143  ;;  %v1148_v30 = vmov (!%p334_p8), 0   ;;  %p390_p9 = scmp.lt.s32.totalorder (!%p334_p8), %s1137_s14, 1  ;;  %vm611_vm4 = vcmask (!%p334_p8), 516096   ;;  %vm612_vm5 = vsmask.f32 (!%p334_p8), 256 }
  0x28   : > { %s1235_s24 = smul.u32 (!%p334_p8), 12, %s340_s18  ;;  %v1251_v31 = vsel (!%p334_p8), %vm535_vm3, 65535, %v1148_v30  ;;  %vm613_vm6 = vmand (!%p334_p8), %vm611_vm4, %vm612_vm5  ;;  %vm608_vm7 = vcmask (!%p334_p8), 519168   ;;  %vm804_vm8 = vcmask (!%p334_p8), 1040896   ;;  %vm801_vm10 = vcmask (!%p334_p8), 1043968  }
  0x29   : > { %vm805_vm9 = vmand (!%p334_p8), %vm804_vm8, %vm612_vm5 }
  0x2a   : > { %s349_s25 = scalar_lea.vmem (!%p334_p8), [#allocation3], %s1235_s24  ;;  %s342_s26 = scalar_lea.vmem (!%p334_p8), [#allocation2], %s1235_s24 }
  0x2b   : > { %v1079_v9 = vld [vmem:[%s349_s25] sm:$0xff] (!%p334_p8)   ;;  %v1080_v10 = vld [vmem:[%s349_s25 + $0x8] ss:$0 sps:$4 sm:$0x11] (!%p334_p8)   ;;  %v401_v13 = vld [vmem:[%s342_s26 + $0x4] sm:$0xf] (!%p334_p8) }
  0x2c   : > { %1027 = vmatprep.subr.msk.bf16.mxu0 (!%p334_p8), %vm428_vm0, %v1079_v9  ;;  %v436_v11 = vsel (!%p334_p8), %vm428_vm0, %v1079_v9, 0  ;;  %v400_v12 = vld [vmem:[%s342_s26] sm:$0xf] (!%p334_p8)  ;;  %v404_v15 = vmul.bf16 (!%p334_p8), 1040203264, %v401_v13  ;;  %v439_v18 = vsel (!%p334_p8), %vm428_vm0, %v1080_v10, 0 }
  0x2d   : > { %996 = vmatpush3.bf16.xpose.msra.mxu0 (!%p334_p8), %v436_v11  ;;  %v403_v14 = vmul.bf16 (!%p334_p8), 1040203264, %v400_v12  ;;  %v402_v17 = vld [vmem:[%s342_s26 + $0x8] sm:$0x1] (!%p334_p8)  ;;  %s356_s27 = scalar_lea.vmem (!%p334_p8), [#allocation4], %s1235_s24 }
  0x2e   : > { %1028 = vmatprep.subr.msk.bf16.mxu0 %vm428_vm0, %v1080_v10  ;;  %v405_v19 = vmul.bf16 1040203264, %v402_v17  ;;  %v1081_v28 = vld [vmem:[%s356_s27] sm:$0xff]   ;;  %v1082_v29 = vld [vmem:[%s356_s27 + $0x8] ss:$0 sps:$4 sm:$0x11]  }
  0x2f   : > { %v951_v16 = vcombine.low %v403_v14, %v404_v15  ;;  %1003 = vmatprep.subr.bf16.mxu1 %v1081_v28  ;;  %v539_v32 = vand.u32 %v1082_v29, %v1251_v31  ;;  %s1342_s14 = smov (!%p390_p9, %s1137_s14), 1 }
  0x30   : > { %v952_v20 = vcombine.low %v405_v19, %v405_v19  ;;  %1004 = vmatpush3.bf16.msra.mxu1 %v1081_v28  ;;  %s1036_s28 = smul.u32 12, %s1342_s14 }
  0x31   : > { %999 = vmatprep.mubr.msk.bf16.mxu0 %vm428_vm0, %v951_v16  ;;  %1005 = vmatprep.subr.bf16.mxu1 %v539_v32 }
  0x32   : > { %s1297_s4 = scalar_lea.vmem %s1333_s3, %s1036_s28 }
  0x34   : > { %1006 = vmatpush3.bf16.msra.mxu1 %v539_v32 }
  0x35   : > { %998 = vmatpush3.bf16.xpose.msra.mxu0 %v439_v18 }
  0x3c   : > { %1000 = vmatmul.mubr.msk.bf16.vlgmr.msra.gmra.mrb[0].mxu0 %vm428_vm0, %v952_v20 }
 0x10f   : > { %v1001_v21 = vpop.f32.mrb[0].mxu0 }
 0x110   : > { %v475_v22 = vpop.f32.mrb[1].mxu0  ;;  %v497_v23 = vsel %vm496_vm1, %v1001_v21, -inf }
 0x111   : > { %498 = vmax.xlane.f32.xlu1 %v497_v23  ;;  %v1002_v24 = vpop.f32.mrb[2].mxu0  ;;  %v490_v25 = vsel %vm489_vm2, %v475_v22, -inf }
 0x112   : > { %491 = vmax.xlane.f32.xlu0 %v490_v25  ;;  %v478_v26 = vpop.f32.mrb[3].mxu0 }
 0x113   : > { %v493_v27 = vsel %vm489_vm2, %v478_v26, -inf }
 0x116   : > { %494 = vmax.xlane.f32.xlu0 %v493_v27 }
 0x122   : > { %621 = vrot.lane.b32.xlu1 %v1079_v9, %s1147_s12 }
 0x126   : > { %617 = vrot.lane.b32.xlu1 %v951_v16, %s1147_s12 }
 0x12a   : > { %619 = vrot.lane.b32.xlu1 %v952_v20, %s1147_s12 }
 0x12c   : > { %623 = vrot.lane.b32.xlu0 %v1080_v10, %s1147_s12 }
 0x19e   : > { %v499_v33 = vpop.xlane.xlu1 %498 }
 0x19f   : > { %v502_v34 = vsub.f32 %v1001_v21, %v499_v33  ;;  %v492_v35 = vpop.xlane.xlu0 %491 }
 0x1a0   : > { %v500_v36 = vsub.f32 %v475_v22, %v492_v35 }
 0x1a1   : > { %v507_v37 = vmul.f32 1.442695, %v502_v34 }
 0x1a2   : > { %v622_v38 = vpop.permute.xlu1 %621  ;;  %v503_v39 = vmul.f32 1.442695, %v500_v36 }
 0x1a3   : > { %v495_v40 = vpop.xlane.xlu0 %494  ;;  %1029 = vmatprep.subr.msk.bf16.mxu1 %vm428_vm0, %v622_v38  ;;  %1083 = vpow2.f32 %v507_v37  ;;  %v632_v47 = vsel %vm428_vm0, %v622_v38, 0 }
 0x1a4   : > { %v501_v41 = vsub.f32 %v478_v26, %v495_v40  ;;  %1085 = vpow2.f32 %v503_v39 }
 0x1a6   : > { %v505_v42 = vmul.f32 1.442695, %v501_v41  ;;  %v618_v49 = vpop.permute.xlu1 %617 }
 0x1a7   : > { %v624_v50 = vpop.permute.xlu0 %623 }
 0x1a8   : > { %1087 = vpow2.f32 %v505_v42  ;;  %v635_v51 = vsel %vm428_vm0, %v624_v50, 0 }
 0x1aa   : > { %v620_v52 = vpop.permute.xlu1 %619 }
 0x1ad   : > { %v1084_v43 = vpop.eup %1083 }
 0x1ae   : > { %v1257_v44 = vpop.eup %1085  ;;  %v519_v48 = vpack.c.bf16 %v1084_v43, %v1084_v43  ;;  %v515_v17 = vsel %vm496_vm1, %v1084_v43, 0.0 }
 0x1af   : > { %v509_v22 = vsel %vm489_vm2, %v1257_v44, 0.0 }
 0x1b2   : > { %v1259_v45 = vpop.eup %1087 }
 0x1b3   : > { %v518_v46 = vpack.c.bf16 %v1259_v45, %v1257_v44  ;;  %v512_v21 = vsel %vm489_vm2, %v1259_v45, 0.0 }
 0x1b5   : > { %1007 = vmatprep.mubr.msk.bf16.mxu1 %vm489_vm2, %v518_v46 }
 0x1b6   : > { %1008 = vmatmul.mubr.msk.bf16.vlgmr.msra.gmra.mrb[0].mxu1 %vm489_vm2, %v519_v48 }
 0x1b7   : > { %1012 = vmatpush3.bf16.xpose.msra.mxu1 %v632_v47  ;;  %1015 = vmatprep.mubr.msk.bf16.mxu1 %vm428_vm0, %v618_v49 }
 0x1b8   : > { %1030 = vmatprep.subr.msk.bf16.mxu1 %vm428_vm0, %v624_v50 }
 0x1bf   : > { %1014 = vmatpush3.bf16.xpose.msra.mxu1 %v635_v51 }
 0x1c6   : > { %1016 = vmatmul.mubr.msk.bf16.vlgmr.msra.gmra.mrb[4].mxu1 %vm428_vm0, %v620_v52 }
 0x289   : > { %v1270_v53 = vpop.f32.mrb[0].mxu1 }
 0x28a   : > { %v1272_v54 = vpop.f32.mrb[1].mxu1 }
 0x28b   : > { %v1010_v55 = vpop.f32.mrb[2].mxu1 }
 0x28c   : > { %v1274_v56 = vpop.f32.mrb[3].mxu1 }
 0x299   : > { %v1017_v57 = vpop.f32.mrb[4].mxu1 }
 0x29a   : > { %v671_v58 = vpop.f32.mrb[5].mxu1  ;;  %v691_v59 = vsel %vm496_vm1, %v1017_v57, -inf }
 0x29b   : > { %692 = vmax.xlane.f32.xlu0 %v691_v59  ;;  %v1018_v60 = vpop.f32.mrb[6].mxu1  ;;  %v685_v61 = vsel %vm489_vm2, %v671_v58, -inf }
 0x29c   : > { %686 = vmax.xlane.f32.xlu1 %v685_v61  ;;  %v674_v62 = vpop.f32.mrb[7].mxu1 }
 0x29d   : > { %v688_v63 = vsel %vm489_vm2, %v674_v62, -inf }
 0x29f   : > { %689 = vmax.xlane.f32.xlu0 %v688_v63 }
 0x2ad   : > { %716 = vrot.lane.b32.xlu1 %v1082_v29, %s1147_s12 }
 0x2b5   : > { %714 = vrot.lane.b32.xlu0 %v1081_v28, %s1147_s12 }
 0x328   : > { %v693_v0 = vpop.xlane.xlu0 %692 }
 0x329   : > { %v696_v1 = vsub.f32 %v1017_v57, %v693_v0  ;;  %v687_v2 = vpop.xlane.xlu1 %686 }
 0x32a   : > { %v694_v3 = vsub.f32 %v671_v58, %v687_v2 }
 0x32b   : > { %v701_v4 = vmul.f32 1.442695, %v696_v1 }
 0x32c   : > { %v697_v5 = vmul.f32 1.442695, %v694_v3  ;;  %v690_v6 = vpop.xlane.xlu0 %689 }
 0x32d   : > { %1089 = vpow2.f32 %v701_v4  ;;  %v695_v7 = vsub.f32 %v674_v62, %v690_v6  ;;  %v717_v8 = vpop.permute.xlu1 %716 }
 0x32e   : > { %1091 = vpow2.f32 %v697_v5  ;;  %v726_v10 = vand.u32 %v717_v8, %v1251_v31  ;;  %v614_v31 = vld [vmem:[%s1297_s4 + $0x8] sm:$0x1] }
 0x32f   : > { %v699_v9 = vmul.f32 1.442695, %v695_v7 }
 0x330   : > { %v715_v11 = vpop.permute.xlu0 %714 }
 0x331   : > { %1093 = vpow2.f32 %v699_v9  ;;  %1019 = vmatprep.subr.bf16.mxu0 %v715_v11 }
 0x332   : > { %1020 = vmatpush3.bf16.msra.mxu0 %v715_v11 }
 0x333   : > { %1021 = vmatprep.subr.bf16.mxu0 %v726_v10 }
 0x336   : > { %1022 = vmatpush3.bf16.msra.mxu0 %v726_v10 }
 0x337   : > { %v1090_v12 = vpop.eup %1089 }
 0x338   : > { %v1092_v13 = vpop.eup %1091  ;;  %v709_v14 = vsel %vm496_vm1, %v1090_v12, 0.0  ;;  %v713_v20 = vpack.c.bf16 %v1090_v12, %v1090_v12 }
 0x339   : > { %710 = vadd.xlane.f32.xlu1 %v709_v14  ;;  %v703_v15 = vsel %vm489_vm2, %v1092_v13, 0.0 }
 0x33a   : > { %704 = vadd.xlane.f32.xlu0 %v703_v15 }
 0x33b   : > { %v1094_v16 = vpop.eup %1093 }
 0x33c   : > { %v712_v18 = vpack.c.bf16 %v1094_v16, %v1092_v13  ;;  %v706_v19 = vsel %vm489_vm2, %v1094_v16, 0.0 }
 0x33d   : > { %516 = vadd.xlane.f32.xlu1 %v515_v17 }
 0x33e   : > { %1023 = vmatprep.mubr.msk.bf16.mxu0 %vm489_vm2, %v712_v18  ;;  %707 = vadd.xlane.f32.xlu0 %v706_v19 }
 0x33f   : > { %1024 = vmatmul.mubr.msk.bf16.vlgmr.msra.gmra.mrb[4].mxu0 %vm489_vm2, %v713_v20 }
 0x341   : > { %513 = vadd.xlane.f32.xlu1 %v512_v21 }
 0x342   : > { %510 = vadd.xlane.f32.xlu0 %v509_v22 }
 0x3c6   : > { %v711_v23 = vpop.xlane.xlu1 %710 }
 0x3c7   : > { %v705_v24 = vpop.xlane.xlu0 %704 }
 0x3ca   : > { %v517_v25 = vpop.xlane.xlu1 %516 }
 0x3cb   : > { %1095 = vrcp.f32 %v517_v25  ;;  %v708_v26 = vpop.xlane.xlu0 %707 }
 0x3ce   : > { %v514_v27 = vpop.xlane.xlu1 %513 }
 0x3cf   : > { %1097 = vrcp.f32 %v514_v27  ;;  %v511_v28 = vpop.xlane.xlu0 %510 }
 0x3d0   : > { %1099 = vrcp.f32 %v511_v28 }
 0x3d1   : > { %1101 = vrcp.f32 %v711_v23 }
 0x3d2   : > { %1103 = vrcp.f32 %v705_v24 }
 0x3d3   : > { %1105 = vrcp.f32 %v708_v26 }
 0x3d5   : > { %v1096_v29 = vpop.eup %1095 }
 0x3d6   : > { %v594_v30 = vmul.f32 %v1096_v29, %v1270_v53 }
 0x3d8   : > { %v975_v32 = vpack.c.bf16 %v594_v30, %v594_v30 }
 0x3d9   : > { %v1098_v33 = vpop.eup %1097 }
 0x3da   : > { %v1100_v34 = vpop.eup %1099  ;;  %v593_v35 = vmul.f32 %v1098_v33, %v1274_v56  ;;  %v615_v36 = vsel %vm613_vm6, %v975_v32, %v614_v31 }
 0x3db   : > { %v592_v37 = vmul.f32 %v1100_v34, %v1272_v54  ;;  %616 = vst [vmem:[%s1297_s4 + $0x8] sm:$0x1] %v615_v36  ;;  %v1102_v40 = vpop.eup %1101 }
 0x3dc   : > { %v974_v38 = vpack.c.bf16 %v593_v35, %v593_v35  ;;  %v1104_v42 = vpop.eup %1103 }
 0x3dd   : > { %v973_v39 = vpack.c.bf16 %v592_v37, %v592_v37  ;;  %v1106_v47 = vpop.eup %1105 }
 0x3de   : > { %610 = vst.msk [vmem:[%s1297_s4 + $0x4] sm:$0xf] %vm608_vm7, %v974_v38 }
 0x3df   : > { %609 = vst.msk [vmem:[%s1297_s4] sm:$0xf] %vm608_vm7, %v973_v39 }
 0x3e2   : > { %v806_v53 = vld [vmem:[%s1297_s4 + $0x8] sm:$0x1] }
 0x412   : > { %v1025_v41 = vpop.f32.mrb[4].mxu0 }
 0x413   : > { %v781_v43 = vmul.f32 %v1102_v40, %v1025_v41  ;;  %v762_v44 = vpop.f32.mrb[5].mxu0 }
 0x414   : > { %v779_v45 = vmul.f32 %v1104_v42, %v762_v44  ;;  %v1026_v46 = vpop.f32.mrb[6].mxu0 }
 0x415   : > { %v978_v48 = vpack.c.bf16 %v781_v43, %v781_v43  ;;  %v765_v49 = vpop.f32.mrb[7].mxu0 }
 0x416   : > { %v976_v50 = vpack.c.bf16 %v779_v45, %v779_v45  ;;  %v780_v51 = vmul.f32 %v1106_v47, %v765_v49 }
 0x417   : > { %796 = vrot.lane.b32.xlu0 %v978_v48, %s1147_s12 }
 0x418   : > { %792 = vrot.lane.b32.xlu1 %v976_v50, %s1147_s12  ;;  %v977_v52 = vpack.c.bf16 %v780_v51, %v780_v51 }
 0x41c   : > { %794 = vrot.lane.b32.xlu1 %v977_v52, %s1147_s12 }
 0x489   : > { %v797_v54 = vpop.permute.xlu0 %796 }
 0x48a   : > { %v807_v55 = vsel %vm805_vm9, %v797_v54, %v806_v53  ;;  %v793_v56 = vpop.permute.xlu1 %792 }
 0x48b   : > { %808 = vst [vmem:[%s1297_s4 + $0x8] sm:$0x1] %v807_v55  ;;  %802 = vst.msk [vmem:[%s1297_s4] sm:$0xf] %vm801_vm10, %v793_v56 }
 0x48e   : > { %v795_v57 = vpop.permute.xlu1 %794 }
 0x48f   : > { %803 = vst.msk [vmem:[%s1297_s4 + $0x4] sm:$0xf] %vm801_vm10, %v795_v57 }
 0x490 PF: > { %s13_s16 = sadd.s32 1, %s1145_s16   ;;  %s1335_s12 = smov %s1133_s13 }
 0x491   : > { %p10_p10 = scmp.ge.s32.totalorder %s13_s16, 4   ;;  %s1336_s13 = smov %s1208_s21 }
 0x492   : > { %s1337_s14 = smov %s1141_s15  ;;  %s1338_s15 = smov %s1340_s17 }
 0x493   :  { %12 = sbr.rel (!%p10_p10) target bundleno = 3 (0x3), region = 206 }

// kernel: clip_get_image_features.21
= control target key start
LH: loop header
LB: loop body
LE: loop exit
PB: predicated region body
PF: predicated region fallthrough
CT: control target
= control target key end

     0   :  { %v534_v0 = vmov 0.0   ;;  %vm535_vm0 = vmmov 0   ;;  %v536_v3 = vmov 0   ;;  %v55_v29 = vlaneseq  ;;  %s688_s1 = inlined_call_operand.vmem [shape: bf16[128,384], index: 1, kind: input, shape index: {}]   ;;  %s689_s0 = inlined_call_operand.vmem [shape: bf16[40,128], index: 0, kind: input, shape index: {}]   ;;  %s690_s2 = inlined_call_operand.vmem [shape: bf16[1,384], index: 2, kind: input, shape index: {}]   ;;  %s691_s3 = inlined_call_operand.vmem [shape: bf16[40,384], index: 3, kind: output, shape index: {}]  }
   0x1   :  { %468 = vmatprep.subr.bf16.mxu1 %v534_v0  ;;  %v499_v1 = vld [vmem:[%s688_s1 + $0x4] ss:$12 sps:$4 sm:$0xff]   ;;  %484 = vmatprep.mubr.msk.bf16.mxu1 %vm535_vm0, %v534_v0  ;;  %v501_v2 = vld [vmem:[%s688_s1 + $0x8] ss:$12 sps:$4 sm:$0xff]   ;;  %v502_v4 = vld [vmem:[%s688_s1] ss:$12 sps:$4 sm:$0xff]  }
   0x2   :  { %258 = vmatprep.mubr.bf16.mxu0 %v536_v3  ;;  %226 = vmatprep.subr.bf16.mxu0 %v499_v1  ;;  %v503_v5 = vld [vmem:[%s688_s1 + $0x1c] ss:$12 sps:$4 sm:$0xff]   ;;  %v505_v6 = vld [vmem:[%s688_s1 + $0x20] ss:$12 sps:$4 sm:$0xff]   ;;  %v506_v7 = vld [vmem:[%s688_s1 + $0x18] ss:$12 sps:$4 sm:$0xff]  }
   0x3   :  { %469 = vmatpush3.bf16.msra.mxu1 %v501_v2  ;;  %227 = vmatpush1.bf16.msra.mxu0 %v502_v4  ;;  %v507_v8 = vld [vmem:[%s688_s1 + $0x34] ss:$12 sps:$4 sm:$0xff]   ;;  %v509_v9 = vld [vmem:[%s688_s1 + $0x38] ss:$12 sps:$4 sm:$0xff]   ;;  %v510_v10 = vld [vmem:[%s688_s1 + $0x30] ss:$12 sps:$4 sm:$0xff]  }
   0x4   :  { %470 = vmatprep.subr.bf16.mxu1 %v534_v0  ;;  %228 = vmatprep.subr.bf16.mxu0 %v503_v5  ;;  %v511_v11 = vld [vmem:[%s688_s1 + $0x4c] ss:$12 sps:$4 sm:$0xff]   ;;  %v513_v12 = vld [vmem:[%s688_s1 + $0x50] ss:$12 sps:$4 sm:$0xff]   ;;  %v514_v13 = vld [vmem:[%s688_s1 + $0x48] ss:$12 sps:$4 sm:$0xff]  }
   0x5   :  { %v515_v14 = vld [vmem:[%s688_s1 + $0x64] ss:$12 sps:$4 sm:$0xff]   ;;  %v517_v15 = vld [vmem:[%s688_s1 + $0x68] ss:$12 sps:$4 sm:$0xff]   ;;  %v518_v16 = vld [vmem:[%s688_s1 + $0x60] ss:$12 sps:$4 sm:$0xff]  }
   0x6   :  { %v519_v17 = vld [vmem:[%s688_s1 + $0x7c] ss:$12 sps:$4 sm:$0xff]   ;;  %v521_v18 = vld [vmem:[%s688_s1 + $0x80] ss:$12 sps:$4 sm:$0xff]   ;;  %v522_v19 = vld [vmem:[%s688_s1 + $0x78] ss:$12 sps:$4 sm:$0xff]  }
   0x7   :  { %471 = vmatpush3.bf16.msra.mxu1 %v505_v6  ;;  %229 = vmatpush1.bf16.msra.mxu0 %v506_v7  ;;  %v523_v20 = vld [vmem:[%s688_s1 + $0x94] ss:$12 sps:$4 sm:$0xff]   ;;  %v525_v21 = vld [vmem:[%s688_s1 + $0x98] ss:$12 sps:$4 sm:$0xff]   ;;  %v526_v22 = vld [vmem:[%s688_s1 + $0x90] ss:$12 sps:$4 sm:$0xff]  }
   0x8   :  { %472 = vmatprep.subr.bf16.mxu1 %v534_v0  ;;  %230 = vmatprep.subr.bf16.mxu0 %v507_v8  ;;  %v527_v23 = vld [vmem:[%s688_s1 + $0xac] ss:$12 sps:$4 sm:$0xff]   ;;  %v529_v24 = vld [vmem:[%s688_s1 + $0xb0] ss:$12 sps:$4 sm:$0xff]   ;;  %v530_v25 = vld [vmem:[%s688_s1 + $0xa8] ss:$12 sps:$4 sm:$0xff]  }
   0x9   :  { %v531_v26 = vld [vmem:[%s689_s0] sm:$0xff]   ;;  %v532_v27 = vld [vmem:[%s689_s0 + $0x8] sm:$0xff]   ;;  %v533_v28 = vld [vmem:[%s689_s0 + $0x10] ss:$0 sps:$4 sm:$0xff]   ;;  %v56_v30 = vshrl.u32 %v55_v29, 7 }
   0xa   :  { %v52_v31 = vld [vmem:[%s690_s2] sm:$0x7] }
   0xb   :  { %473 = vmatpush3.bf16.msra.mxu1 %v509_v9  ;;  %231 = vmatpush1.bf16.msra.mxu0 %v510_v10  ;;  %v53_v32 = vunpack.c.l.bf16 %v52_v31  ;;  %v65_v33 = vsub.s32 4, %v56_v30  ;;  %v57_v34 = vsub.s32 0, %v56_v30  ;;  %v61_v35 = vsub.s32 2, %v56_v30 }
   0xc   :  { %474 = vmatprep.subr.bf16.mxu1 %v534_v0  ;;  %232 = vmatprep.subr.bf16.mxu0 %v511_v11 }
   0xd   :  { %v66_v36 = vrot.slane %v53_v32, %v65_v33  ;;  %v58_v37 = vrot.slane %v53_v32, %v57_v34  ;;  %v62_v38 = vrot.slane %v53_v32, %v61_v35 }
   0xf   :  { %475 = vmatpush3.bf16.msra.mxu1 %v513_v12  ;;  %233 = vmatpush1.bf16.msra.mxu0 %v514_v13  ;;  %v81_v39 = vrot.slane %v66_v36, %v57_v34  ;;  %v73_v40 = vrot.slane %v58_v37, %v57_v34  ;;  %v77_v41 = vrot.slane %v62_v38, %v57_v34 }
  0x10   :  { %476 = vmatprep.subr.bf16.mxu1 %v534_v0  ;;  %234 = vmatprep.subr.bf16.mxu0 %v515_v14 }
  0x13   :  { %477 = vmatpush3.bf16.msra.mxu1 %v517_v15  ;;  %235 = vmatpush1.bf16.msra.mxu0 %v518_v16 }
  0x14   :  { %478 = vmatprep.subr.bf16.mxu1 %v534_v0  ;;  %236 = vmatprep.subr.bf16.mxu0 %v519_v17 }
  0x17   :  { %479 = vmatpush3.bf16.msra.mxu1 %v521_v18  ;;  %237 = vmatpush1.bf16.msra.mxu0 %v522_v19 }
  0x18   :  { %480 = vmatprep.subr.bf16.mxu1 %v534_v0  ;;  %238 = vmatprep.subr.bf16.mxu0 %v523_v20 }
  0x1b   :  { %481 = vmatpush3.bf16.msra.mxu1 %v525_v21  ;;  %239 = vmatpush1.bf16.msra.mxu0 %v526_v22 }
  0x1c   :  { %482 = vmatprep.subr.bf16.mxu1 %v534_v0  ;;  %240 = vmatprep.subr.bf16.mxu0 %v527_v23 }
  0x1f   :  { %483 = vmatpush3.bf16.msra.mxu1 %v529_v24  ;;  %241 = vmatpush1.bf16.msra.mxu0 %v530_v25 }
  0x22   :  { %485 = vmatmul.mubr.bf16.vlgmr.msra.gmra.mrb[0].mxu1 %v531_v26  ;;  %259 = vmatmul.mubr.bf16.vlgmr.msra.gmra.mrb[0].mxu0 %v531_v26 }
  0x23   :  { %488 = vmatprep.mubr.msk.bf16.mxu1 %vm535_vm0, %v534_v0  ;;  %268 = vmatprep.mubr.bf16.mxu0 %v536_v3 }
  0x2a   :  { %489 = vmatmul.mubr.bf16.gmra.mrb[4].mxu1 %v532_v27  ;;  %269 = vmatmul.mubr.bf16.gmra.mrb[4].mxu0 %v532_v27 }
  0x2b   :  { %492 = vmatprep.mubr.msk.bf16.mxu1 %vm535_vm0, %v534_v0  ;;  %278 = vmatprep.mubr.bf16.mxu0 %v536_v3 }
  0x32   :  { %493 = vmatmul.mubr.bf16.gmra.mrb[8].mxu1 %v533_v28  ;;  %279 = vmatmul.mubr.bf16.gmra.mrb[8].mxu0 %v533_v28 }
  0xf5   :  { %v321_v42 = vpop.f32.mrb[0].mxu1  ;;  %v260_v44 = vpop.f32.mrb[0].mxu0 }
  0xf6   :  { %v322_v43 = vadd.f32 %v321_v42, %v81_v39  ;;  %v486_v45 = vpop.f32.mrb[1].mxu1  ;;  %v261_v46 = vadd.f32 %v260_v44, %v73_v40  ;;  %v262_v47 = vpop.f32.mrb[1].mxu0 }
  0xf7   :  { %v324_v48 = vpop.f32.mrb[2].mxu1  ;;  %v263_v50 = vadd.f32 %v262_v47, %v77_v41  ;;  %v264_v52 = vpop.f32.mrb[2].mxu0 }
  0xf8   :  { %v448_v49 = vpack.c.bf16 %v322_v43, %v322_v43  ;;  %v325_v51 = vadd.f32 %v324_v48, %v81_v39  ;;  %v487_v53 = vpop.f32.mrb[3].mxu1  ;;  %v265_v54 = vadd.f32 %v264_v52, %v73_v40  ;;  %v266_v55 = vpop.f32.mrb[3].mxu0 }
  0xf9   :  { %v447_v56 = vpack.c.bf16 %v263_v50, %v261_v46  ;;  %v267_v58 = vadd.f32 %v266_v55, %v77_v41 }
  0xfa   :  { %397 = vst [vmem:[%s691_s3 + $0x8] sm:$0xf] %v448_v49  ;;  %v450_v57 = vpack.c.bf16 %v325_v51, %v325_v51 }
  0xfb   :  { %396 = vst [vmem:[%s691_s3] sm:$0xff] %v447_v56  ;;  %v449_v59 = vpack.c.bf16 %v267_v58, %v265_v54 }
  0xfc   :  { %399 = vst [vmem:[%s691_s3 + $0x14] sm:$0xf] %v450_v57 }
  0xfd   :  { %v329_v60 = vpop.f32.mrb[4].mxu1  ;;  %398 = vst [vmem:[%s691_s3 + $0xc] sm:$0xff] %v449_v59  ;;  %v270_v62 = vpop.f32.mrb[4].mxu0 }
  0xfe   :  { %v330_v61 = vadd.f32 %v329_v60, %v81_v39  ;;  %v490_v63 = vpop.f32.mrb[5].mxu1  ;;  %v271_v0 = vadd.f32 %v270_v62, %v73_v40  ;;  %v272_v1 = vpop.f32.mrb[5].mxu0 }
  0xff   :  { %v332_v2 = vpop.f32.mrb[6].mxu1  ;;  %v273_v4 = vadd.f32 %v272_v1, %v77_v41  ;;  %v274_v6 = vpop.f32.mrb[6].mxu0 }
 0x100   :  { %v452_v3 = vpack.c.bf16 %v330_v61, %v330_v61  ;;  %v333_v5 = vadd.f32 %v332_v2, %v81_v39  ;;  %v491_v7 = vpop.f32.mrb[7].mxu1  ;;  %v275_v8 = vadd.f32 %v274_v6, %v73_v40  ;;  %v276_v9 = vpop.f32.mrb[7].mxu0 }
 0x101   :  { %v451_v10 = vpack.c.bf16 %v273_v4, %v271_v0  ;;  %v277_v12 = vadd.f32 %v276_v9, %v77_v41 }
 0x102   :  { %401 = vst [vmem:[%s691_s3 + $0x20] sm:$0xf] %v452_v3  ;;  %v454_v11 = vpack.c.bf16 %v333_v5, %v333_v5 }
 0x103   :  { %400 = vst [vmem:[%s691_s3 + $0x18] sm:$0xff] %v451_v10  ;;  %v453_v13 = vpack.c.bf16 %v277_v12, %v275_v8 }
 0x104   :  { %403 = vst [vmem:[%s691_s3 + $0x2c] sm:$0xf] %v454_v11 }
 0x105   :  { %v337_v14 = vpop.f32.mrb[8].mxu1  ;;  %402 = vst [vmem:[%s691_s3 + $0x24] sm:$0xff] %v453_v13  ;;  %v280_v16 = vpop.f32.mrb[8].mxu0 }
 0x106   :  { %v338_v15 = vadd.f32 %v337_v14, %v81_v39  ;;  %v494_v17 = vpop.f32.mrb[9].mxu1  ;;  %v281_v18 = vadd.f32 %v280_v16, %v73_v40  ;;  %v282_v19 = vpop.f32.mrb[9].mxu0 }
 0x107   :  { %v340_v20 = vpop.f32.mrb[10].mxu1  ;;  %v283_v22 = vadd.f32 %v282_v19, %v77_v41  ;;  %v284_v23 = vpop.f32.mrb[10].mxu0 }
 0x108   :  { %v456_v21 = vpack.c.bf16 %v338_v15, %v338_v15  ;;  %v495_v24 = vpop.f32.mrb[11].mxu1  ;;  %v285_v25 = vpop.f32.mrb[11].mxu0 }
 0x109   :  { %v455_v26 = vpack.c.bf16 %v283_v22, %v281_v18 }
 0x10a   :  { %405 = vst [vmem:[%s691_s3 + $0x38] sm:$0xf] %v456_v21 }
 0x10b   :  { %404 = vst [vmem:[%s691_s3 + $0x30] sm:$0xff] %v455_v26 }

// kernel: clip_get_image_features.23
= control target key start
LH: loop header
LB: loop body
LE: loop exit
PB: predicated region body
PF: predicated region fallthrough
CT: control target
= control target key end

     0   :  { %v319_v0 = vmov 0.0   ;;  %vm320_vm0 = vmmov 0   ;;  %v41_v12 = vlaneseq  ;;  %s403_s1 = inlined_call_operand.vmem [shape: bf16[128,128], index: 1, kind: input, shape index: {}]   ;;  %s404_s0 = inlined_call_operand.vmem [shape: bf16[40,128], index: 0, kind: input, shape index: {}]   ;;  %s405_s2 = inlined_call_operand.vmem [shape: bf16[1,128], index: 2, kind: input, shape index: {}]   ;;  %s406_s3 = inlined_call_operand.vmem [shape: bf16[40,128], index: 3, kind: input, shape index: {}]   ;;  %s407_s4 = inlined_call_operand.vmem [shape: bf16[40,128], index: 4, kind: output, shape index: {}]  }
   0x1   :  { %290 = vmatprep.subr.bf16.mxu1 %v319_v0  ;;  %v308_v1 = vld [vmem:[%s403_s1] sm:$0xff]   ;;  %262 = vmatprep.subr.bf16.mxu0 %v319_v0  ;;  %v309_v2 = vld [vmem:[%s403_s1 + $0x8] sm:$0xff]   ;;  %v310_v3 = vld [vmem:[%s403_s1 + $0x10] sm:$0xff]  }
   0x2   :  { %282 = vmatprep.mubr.msk.bf16.mxu1 %vm320_vm0, %v319_v0  ;;  %278 = vmatprep.mubr.msk.bf16.mxu0 %vm320_vm0, %v319_v0  ;;  %v311_v4 = vld [vmem:[%s403_s1 + $0x18] sm:$0xff]   ;;  %v312_v5 = vld [vmem:[%s403_s1 + $0x20] sm:$0xff]   ;;  %v313_v6 = vld [vmem:[%s403_s1 + $0x28] sm:$0xff]   ;;  %v42_v13 = vshrl.u32 %v41_v12, 7 }
   0x3   :  { %298 = vmatpush3.bf16.msra.mxu1 %v308_v1  ;;  %263 = vmatpush3.bf16.msra.mxu0 %v308_v1  ;;  %v314_v7 = vld [vmem:[%s403_s1 + $0x30] sm:$0xff]   ;;  %v315_v8 = vld [vmem:[%s403_s1 + $0x38] sm:$0xff]   ;;  %v316_v9 = vld [vmem:[%s404_s0 + $0x8] sm:$0xff]  }
   0x4   :  { %291 = vmatprep.subr.bf16.mxu1 %v319_v0  ;;  %264 = vmatprep.subr.bf16.mxu0 %v319_v0  ;;  %v317_v10 = vld [vmem:[%s404_s0] sm:$0xff]   ;;  %v318_v11 = vld [vmem:[%s404_s0 + $0x10] ss:$0 sps:$4 sm:$0xff]   ;;  %v43_v16 = vsub.s32 0, %v42_v13  ;;  %v249_v19 = vld [vmem:[%s406_s3 + $0x8] sm:$0xff]  }
   0x5   :  { %v39_v14 = vld [vmem:[%s405_s2] sm:$0x1]  ;;  %v237_v22 = vunpack.c.l.bf16 %v249_v19  ;;  %v238_v26 = vunpack.c.h.bf16 %v249_v19  ;;  %v169_v37 = vld [vmem:[%s406_s3 + $0x10] sm:$0xf] }
   0x6   :  { %v40_v15 = vunpack.c.l.bf16 %v39_v14  ;;  %v232_v17 = vld [vmem:[%s406_s3] sm:$0xff]   ;;  %v174_v43 = vunpack.c.l.bf16 %v169_v37 }
   0x7   :  { %299 = vmatpush3.bf16.msra.mxu1 %v309_v2  ;;  %265 = vmatpush3.bf16.msra.mxu0 %v309_v2  ;;  %v233_v20 = vunpack.c.l.bf16 %v232_v17  ;;  %v234_v29 = vunpack.c.h.bf16 %v232_v17 }
   0x8   :  { %292 = vmatprep.subr.bf16.mxu1 %v319_v0  ;;  %266 = vmatprep.subr.bf16.mxu0 %v319_v0  ;;  %v44_v18 = vrot.slane %v40_v15, %v43_v16 }
   0xb   :  { %300 = vmatpush3.bf16.msra.mxu1 %v310_v3  ;;  %267 = vmatpush3.bf16.msra.mxu0 %v310_v3 }
   0xc   :  { %293 = vmatprep.subr.bf16.mxu1 %v319_v0  ;;  %268 = vmatprep.subr.bf16.mxu0 %v319_v0 }
   0xf   :  { %301 = vmatpush3.bf16.msra.mxu1 %v311_v4  ;;  %269 = vmatpush3.bf16.msra.mxu0 %v311_v4 }
  0x10   :  { %294 = vmatprep.subr.bf16.mxu1 %v319_v0  ;;  %270 = vmatprep.subr.bf16.mxu0 %v319_v0 }
  0x13   :  { %302 = vmatpush3.bf16.msra.mxu1 %v312_v5  ;;  %271 = vmatpush3.bf16.msra.mxu0 %v312_v5 }
  0x14   :  { %295 = vmatprep.subr.bf16.mxu1 %v319_v0  ;;  %272 = vmatprep.subr.bf16.mxu0 %v319_v0 }
  0x17   :  { %303 = vmatpush3.bf16.msra.mxu1 %v313_v6  ;;  %273 = vmatpush3.bf16.msra.mxu0 %v313_v6 }
  0x18   :  { %296 = vmatprep.subr.bf16.mxu1 %v319_v0  ;;  %274 = vmatprep.subr.bf16.mxu0 %v319_v0 }
  0x1b   :  { %304 = vmatpush3.bf16.msra.mxu1 %v314_v7  ;;  %275 = vmatpush3.bf16.msra.mxu0 %v314_v7 }
  0x1c   :  { %297 = vmatprep.subr.bf16.mxu1 %v319_v0  ;;  %276 = vmatprep.subr.bf16.mxu0 %v319_v0 }
  0x1f   :  { %305 = vmatpush3.bf16.msra.mxu1 %v315_v8  ;;  %277 = vmatpush3.bf16.msra.mxu0 %v315_v8 }
  0x22   :  { %283 = vmatmul.mubr.bf16.vlgmr.msra.gmra.mrb[0].mxu1 %v316_v9  ;;  %279 = vmatmul.mubr.bf16.vlgmr.msra.gmra.mrb[0].mxu0 %v317_v10 }
  0x23   :  { %286 = vmatprep.mubr.msk.bf16.mxu1 %vm320_vm0, %v319_v0 }
  0x2a   :  { %287 = vmatmul.mubr.bf16.gmra.mrb[4].mxu1 %v318_v11 }
  0xf5   :  { %v151_v21 = vpop.f32.mrb[0].mxu1  ;;  %v143_v23 = vpop.f32.mrb[0].mxu0 }
  0xf6   :  { %v152_v24 = vadd.f32 %v151_v21, %v44_v18  ;;  %v284_v25 = vpop.f32.mrb[1].mxu1  ;;  %v144_v27 = vadd.f32 %v143_v23, %v44_v18  ;;  %v280_v28 = vpop.f32.mrb[1].mxu0 }
  0xf7   :  { %v154_v30 = vpop.f32.mrb[2].mxu1  ;;  %v146_v31 = vpop.f32.mrb[2].mxu0 }
  0xf8   :  { %v155_v32 = vadd.f32 %v154_v30, %v44_v18  ;;  %v175_v33 = vadd.f32 %v233_v20, %v144_v27  ;;  %v285_v34 = vpop.f32.mrb[3].mxu1  ;;  %v147_v35 = vadd.f32 %v146_v31, %v44_v18  ;;  %v281_v36 = vpop.f32.mrb[3].mxu0  ;;  %v177_v38 = vadd.f32 %v237_v22, %v152_v24 }
  0xfa   :  { %v178_v39 = vadd.f32 %v238_v26, %v155_v32  ;;  %v176_v40 = vadd.f32 %v234_v29, %v147_v35 }
  0xfc   :  { %v247_v41 = vpack.c.bf16 %v178_v39, %v177_v38  ;;  %v242_v42 = vpack.c.bf16 %v176_v40, %v175_v33 }
  0xfd   :  { %v159_v44 = vpop.f32.mrb[4].mxu1 }
  0xfe   :  { %250 = vst [vmem:[%s407_s4 + $0x8] sm:$0xff] %v247_v41   ;;  %243 = vst [vmem:[%s407_s4] sm:$0xff] %v242_v42   ;;  %v160_v45 = vadd.f32 %v159_v44, %v44_v18  ;;  %v288_v46 = vpop.f32.mrb[5].mxu1 }
  0xff   :  { %v162_v47 = vpop.f32.mrb[6].mxu1 }
 0x100   :  { %v179_v48 = vadd.f32 %v174_v43, %v160_v45  ;;  %v289_v49 = vpop.f32.mrb[7].mxu1 }
 0x102   :  { %v230_v50 = vpack.c.bf16 %v179_v48, %v179_v48 }
 0x104   :  { %205 = vst [vmem:[%s407_s4 + $0x10] sm:$0xf] %v230_v50 }

// kernel: clip_get_image_features.34
= control target key start
LH: loop header
LB: loop body
LE: loop exit
PB: predicated region body
PF: predicated region fallthrough
CT: control target
= control target key end

     0   :  { %v30_v8 = vlaneseq  ;;  %s82_s0 = inlined_call_operand.vmem [shape: bf16[8,128], index: 0, kind: input, shape index: {}]   ;;  %s83_s1 = inlined_call_operand.vmem [shape: bf16[1,128], index: 1, kind: input, shape index: {}]   ;;  %s84_s2 = inlined_call_operand.vmem [shape: bf16[1,128], index: 2, kind: input, shape index: {}]   ;;  %s85_s3 = inlined_call_operand.vmem [shape: bf16[8,128], index: 3, kind: output, shape index: {}]  }
   0x1   :  { %v14_v0 = vld [vmem:[%s82_s0] sm:$0xf] }
   0x2   :  { %v15_v1 = vunpack.c.l.bf16 %v14_v0  ;;  %v31_v10 = vshrl.u32 %v30_v8, 7  ;;  %v28_v11 = vld [vmem:[%s83_s1] sm:$0x1] }
   0x3   :  { %v35_v12 = vld [vmem:[%s84_s2] sm:$0x1]  ;;  %v29_v13 = vunpack.c.l.bf16 %v28_v11 }
   0x4   :  { %16 = vadd.xlane.f32.xlu0 %v15_v1  ;;  %v32_v14 = vsub.s32 0, %v31_v10  ;;  %v36_v15 = vunpack.c.l.bf16 %v35_v12 }
   0x6   :  { %v33_v16 = vrot.slane %v29_v13, %v32_v14  ;;  %v40_v18 = vrot.slane %v36_v15, %v32_v14 }
  0x91   :  { %v17_v2 = vpop.xlane.xlu0 %16 }
  0x92   :  { %v19_v3 = vmul.f32 0.0078125, %v17_v2 }
  0x94   :  { %v20_v4 = vsub.f32 %v15_v1, %v19_v3 }
  0x96   :  { %v21_v5 = vmul.f32 %v20_v4, %v20_v4 }
  0x98   :  { %22 = vadd.xlane.f32.xlu0 %v21_v5 }
 0x125   :  { %v23_v6 = vpop.xlane.xlu0 %22 }
 0x126   :  { %v24_v7 = vmul.f32 0.0078125, %v23_v6 }
 0x128   :  { %v25_v9 = vadd.f32 1e-05, %v24_v7 }
 0x12a   :  { %48 = vrsqrt.f32 %v25_v9 }
 0x134   :  { %v49_v17 = vpop.eup %48 }
 0x135   :  { %v27_v19 = vmul.f32 %v49_v17, %v20_v4 }
 0x137   :  { %v34_v20 = vmul.f32 %v33_v16, %v27_v19 }
 0x139   :  { %v41_v21 = vadd.f32 %v40_v18, %v34_v20 }
 0x13b   :  { %v42_v22 = vpack.c.bf16 %v41_v21, %v41_v21 }
 0x13d   :  { %43 = vst [vmem:[%s85_s3] sm:$0xf] %v42_v22 }

// kernel: clip_get_image_features.25
= control target key start
LH: loop header
LB: loop body
LE: loop exit
PB: predicated region body
PF: predicated region fallthrough
CT: control target
= control target key end

     0   :  { %s1413_s12 = smov 0   ;;  %s1415_s13 = smov 0   ;;  %s1740_s0 = inlined_call_operand.vmem [shape: bf16[40,128], index: 0, kind: input, shape index: {}]   ;;  %s1741_s1 = inlined_call_operand.vmem [shape: bf16[128,1024], index: 1, kind: input, shape index: {}]   ;;  %s1742_s2 = inlined_call_operand.vmem [shape: bf16[1,1024], index: 2, kind: input, shape index: {}]   ;;  %s1743_s3 = inlined_call_operand.vmem [shape: bf16[40,1024], index: 3, kind: output, shape index: {}]  }
   0x1   :  { %s1417_s14 = smov 0   ;;  %s1419_s15 = smov 0  }
   0x2   :  { %s1421_s16 = smov 0  }
   0x3 LB: > { %s28_s17 = sadd.s32 1, %s1386_s15  ;;  %s1087_s18 = sadd.s32 4294967295, %s1390_s16   ;;  %s1390_s16 = sphi %s1421_s16, %s13_s16   ;;  %s1386_s15 = sphi %s1419_s15, %s1748_s15   ;;  %s1382_s14 = sphi %s1417_s14, %s1747_s14   ;;  %s1378_s13 = sphi %s1415_s13, %s1746_s13   ;;  %s1374_s12 = sphi %s1413_s12, %s1745_s12  }
   0x4   : > { %p30_p0 = scmp.ge.s32.totalorder %s28_s17, 2  ;;  %p76_p1 = scmp.ne.s32.totalorder %s1378_s13, %s1374_s12 }
   0x5   : > { %p77_p2 = scmp.eq.s32.totalorder %s1390_s16, 0  ;;  %p134_p4 = scmp.eq.s32.totalorder %s1087_s18, 1 }
   0x6   : > { %s1750_s17 = smov (%p30_p0, %s28_s17), 0  ;;  %s69_s20 = sadd.s32 1, %s1378_s13 }
   0x7   : > { %p78_p3 = por %p77_p2, %p76_p1  ;;  %s65_s19 = ssub.s32 %s1386_s15, %s1750_s17 }
   0x8   : > { %p67_p5 = scmp.eq.s32.totalorder %s65_s19, 0  ;;  %p1448_p6 = por %p134_p4, %p76_p1 }
   0x9   : > { %p1091_p7 = scmp.ge.s32.totalorder %s1390_s16, 2 }
   0xa   : > { %s1453_s22 = scalar_select %p67_p5, %s1378_s13, %s69_s20  }
   0xb   : > { %168 = sbr.rel (%p1091_p7) target bundleno = 38 (0x26), region = 20 }
  0x12   : > { %171 = sbr.rel (!%p78_p3) target bundleno = 38 (0x26), region = 24  ;;  %s173_s23 = sand.u32 (%p78_p3), 1, %s1378_s13  }
  0x13   : > { %s1167_s24 = sshll.u32 (%p78_p3), %s1386_s15, 4  ;;  %s1092_s25 = sshll.u32 (%p78_p3), %s173_s23, 8 }
  0x14   : > { %s1461_s28 = scalar_lea.vmem (%p78_p3), %s1741_s1, %s1167_s24  ;;  %s1466_s29 = scalar_lea.vmem (%p78_p3), [#allocation2], %s1092_s25 }
  0x15   : > { %v194_v0 = vld [vmem:[%s1461_s28] sm:$0xff] (%p78_p3)  ;;  %v196_v1 = vld [vmem:[%s1461_s28 + $0x8] sm:$0xff] (%p78_p3) }
  0x16   : > { %v198_v2 = vld [vmem:[%s1461_s28 + $0x20] sm:$0xff] (%p78_p3)  ;;  %195 = vst [vmem:[%s1466_s29] sm:$0xff] (%p78_p3), %v194_v0  ;;  %197 = vst [vmem:[%s1466_s29 + $0x8] sm:$0xff] (%p78_p3), %v196_v1  ;;  %v200_v3 = vld [vmem:[%s1461_s28 + $0x28] sm:$0xff] (%p78_p3) }
  0x17   : > { %199 = vst [vmem:[%s1466_s29 + $0x10] sm:$0xff] (%p78_p3), %v198_v2  ;;  %v202_v4 = vld [vmem:[%s1461_s28 + $0x40] sm:$0xff] (%p78_p3)  ;;  %v204_v5 = vld [vmem:[%s1461_s28 + $0x48] sm:$0xff] (%p78_p3)  ;;  %201 = vst [vmem:[%s1466_s29 + $0x18] sm:$0xff] (%p78_p3), %v200_v3 }
  0x18   : > { %203 = vst [vmem:[%s1466_s29 + $0x20] sm:$0xff] (%p78_p3), %v202_v4  ;;  %205 = vst [vmem:[%s1466_s29 + $0x28] sm:$0xff] (%p78_p3), %v204_v5  ;;  %v206_v6 = vld [vmem:[%s1461_s28 + $0x60] sm:$0xff] (%p78_p3)  ;;  %v208_v7 = vld [vmem:[%s1461_s28 + $0x68] sm:$0xff] (%p78_p3) }
  0x19   : > { %v210_v8 = vld [vmem:[%s1461_s28 + $0x80] sm:$0xff]  ;;  %207 = vst [vmem:[%s1466_s29 + $0x30] sm:$0xff] %v206_v6  ;;  %209 = vst [vmem:[%s1466_s29 + $0x38] sm:$0xff] %v208_v7  ;;  %v212_v9 = vld [vmem:[%s1461_s28 + $0x88] sm:$0xff] }
  0x1a   : > { %211 = vst [vmem:[%s1466_s29 + $0x40] sm:$0xff] %v210_v8  ;;  %v214_v10 = vld [vmem:[%s1461_s28 + $0xa0] sm:$0xff]  ;;  %v216_v11 = vld [vmem:[%s1461_s28 + $0xa8] sm:$0xff]  ;;  %213 = vst [vmem:[%s1466_s29 + $0x48] sm:$0xff] %v212_v9 }
  0x1b   : > { %215 = vst [vmem:[%s1466_s29 + $0x50] sm:$0xff] %v214_v10  ;;  %217 = vst [vmem:[%s1466_s29 + $0x58] sm:$0xff] %v216_v11  ;;  %v218_v12 = vld [vmem:[%s1461_s28 + $0xc0] sm:$0xff]  ;;  %v220_v13 = vld [vmem:[%s1461_s28 + $0xc8] sm:$0xff] }
  0x1c   : > { %v222_v14 = vld [vmem:[%s1461_s28 + $0xe0] sm:$0xff]  ;;  %219 = vst [vmem:[%s1466_s29 + $0x60] sm:$0xff] %v218_v12  ;;  %221 = vst [vmem:[%s1466_s29 + $0x68] sm:$0xff] %v220_v13  ;;  %v224_v15 = vld [vmem:[%s1461_s28 + $0xe8] sm:$0xff] }
  0x1d   : > { %223 = vst [vmem:[%s1466_s29 + $0x70] sm:$0xff] %v222_v14  ;;  %v226_v16 = vld [vmem:[%s1461_s28 + $0x100] sm:$0xff]  ;;  %v228_v17 = vld [vmem:[%s1461_s28 + $0x108] sm:$0xff]  ;;  %225 = vst [vmem:[%s1466_s29 + $0x78] sm:$0xff] %v224_v15 }
  0x1e   : > { %227 = vst [vmem:[%s1466_s29 + $0x80] sm:$0xff] %v226_v16  ;;  %229 = vst [vmem:[%s1466_s29 + $0x88] sm:$0xff] %v228_v17  ;;  %v230_v18 = vld [vmem:[%s1461_s28 + $0x120] sm:$0xff]  ;;  %v232_v19 = vld [vmem:[%s1461_s28 + $0x128] sm:$0xff] }
  0x1f   : > { %v234_v20 = vld [vmem:[%s1461_s28 + $0x140] sm:$0xff]  ;;  %231 = vst [vmem:[%s1466_s29 + $0x90] sm:$0xff] %v230_v18  ;;  %233 = vst [vmem:[%s1466_s29 + $0x98] sm:$0xff] %v232_v19  ;;  %v236_v21 = vld [vmem:[%s1461_s28 + $0x148] sm:$0xff] }
  0x20   : > { %235 = vst [vmem:[%s1466_s29 + $0xa0] sm:$0xff] %v234_v20  ;;  %v238_v22 = vld [vmem:[%s1461_s28 + $0x160] sm:$0xff]  ;;  %v240_v23 = vld [vmem:[%s1461_s28 + $0x168] sm:$0xff]  ;;  %237 = vst [vmem:[%s1466_s29 + $0xa8] sm:$0xff] %v236_v21 }
  0x21   : > { %239 = vst [vmem:[%s1466_s29 + $0xb0] sm:$0xff] %v238_v22  ;;  %241 = vst [vmem:[%s1466_s29 + $0xb8] sm:$0xff] %v240_v23  ;;  %v242_v24 = vld [vmem:[%s1461_s28 + $0x180] sm:$0xff]  ;;  %v244_v25 = vld [vmem:[%s1461_s28 + $0x188] sm:$0xff] }
  0x22   : > { %v246_v26 = vld [vmem:[%s1461_s28 + $0x1a0] sm:$0xff]  ;;  %243 = vst [vmem:[%s1466_s29 + $0xc0] sm:$0xff] %v242_v24  ;;  %245 = vst [vmem:[%s1466_s29 + $0xc8] sm:$0xff] %v244_v25  ;;  %v248_v27 = vld [vmem:[%s1461_s28 + $0x1a8] sm:$0xff] }
  0x23   : > { %247 = vst [vmem:[%s1466_s29 + $0xd0] sm:$0xff] %v246_v26  ;;  %v250_v28 = vld [vmem:[%s1461_s28 + $0x1c0] sm:$0xff]  ;;  %v252_v29 = vld [vmem:[%s1461_s28 + $0x1c8] sm:$0xff]  ;;  %249 = vst [vmem:[%s1466_s29 + $0xd8] sm:$0xff] %v248_v27 }
  0x24   : > { %251 = vst [vmem:[%s1466_s29 + $0xe0] sm:$0xff] %v250_v28  ;;  %253 = vst [vmem:[%s1466_s29 + $0xe8] sm:$0xff] %v252_v29  ;;  %v254_v30 = vld [vmem:[%s1461_s28 + $0x1e0] sm:$0xff]  ;;  %v256_v31 = vld [vmem:[%s1461_s28 + $0x1e8] sm:$0xff] }
  0x25   : > { %255 = vst [vmem:[%s1466_s29 + $0xf0] sm:$0xff] %v254_v30  ;;  %257 = vst [vmem:[%s1466_s29 + $0xf8] sm:$0xff] %v256_v31 }
  0x26 PF: > { %p1095_p8 = scmp.ge.s32.totalorder %s1390_s16, 1  ;;  %p270_p9 = scmp.lt.s32.totalorder %s1390_s16, 3 }
  0x28   : > { %p271_p10 = pnand %p1095_p8, %p270_p9 }
  0x29   : > { %s277_s30 = sand.u32 (!%p271_p10), 1, %s1374_s12   ;;  %v1392_v32 = vmov (!%p271_p10), 0   ;;  %v1269_v1 = vld [vmem:[%s1740_s0] sm:$0xff] (!%p271_p10)   ;;  %v1270_v2 = vld [vmem:[%s1740_s0 + $0x8] sm:$0xff] (!%p271_p10)   ;;  %v1271_v3 = vld [vmem:[%s1740_s0 + $0x10] ss:$0 sps:$4 sm:$0xff] (!%p271_p10)   ;;  %v370_v4 = vlaneseq (!%p271_p10) }
  0x2a   : > { %274 = sbr.rel (%p271_p10) target bundleno = 364 (0x16c), region = 51  ;;  %s1096_s4 = sshll.u32 (!%p271_p10), %s277_s30, 8  ;;  %614 = vmatprep.mubr.bf16.mxu0 (!%p271_p10), %v1392_v32  ;;  %675 = vmatprep.mubr.bf16.mxu1 (!%p271_p10), %v1392_v32 }
  0x2b   : > { %s1536_s5 = scalar_lea.vmem (!%p271_p10), [#allocation2], %s1096_s4  ;;  %s1097_s18 = sshll.u32 (!%p271_p10), %s1382_s14, 2  ;;  %v371_v5 = vshrl.u32 (!%p271_p10), %v370_v4, 7 }
  0x2c   : > { %v1221_v33 = vld [vmem:[%s1536_s5 + $0x4] ss:$16 sps:$4 sm:$0xff] (!%p271_p10)   ;;  %v1223_v34 = vld [vmem:[%s1536_s5 + $0xc] ss:$16 sps:$4 sm:$0xff] (!%p271_p10)   ;;  %v1225_v35 = vld [vmem:[%s1536_s5] ss:$16 sps:$4 sm:$0xff] (!%p271_p10)  }
  0x2d   : > { %582 = vmatprep.subr.bf16.mxu0 (!%p271_p10), %v1221_v33  ;;  %v1226_v36 = vld [vmem:[%s1536_s5 + $0x8] ss:$16 sps:$4 sm:$0xff] (!%p271_p10)   ;;  %643 = vmatprep.subr.bf16.mxu1 (!%p271_p10), %v1223_v34  ;;  %v1227_v37 = vld [vmem:[%s1536_s5 + $0x24] ss:$16 sps:$4 sm:$0xff] (!%p271_p10)   ;;  %v1229_v38 = vld [vmem:[%s1536_s5 + $0x2c] ss:$16 sps:$4 sm:$0xff] (!%p271_p10)  }
  0x2e   : > { %583 = vmatpush1.bf16.msra.mxu0 (!%p271_p10), %v1225_v35  ;;  %644 = vmatpush1.bf16.msra.mxu1 (!%p271_p10), %v1226_v36  ;;  %v1231_v39 = vld [vmem:[%s1536_s5 + $0x20] ss:$16 sps:$4 sm:$0xff] (!%p271_p10)   ;;  %v1232_v40 = vld [vmem:[%s1536_s5 + $0x28] ss:$16 sps:$4 sm:$0xff] (!%p271_p10)   ;;  %v1233_v41 = vld [vmem:[%s1536_s5 + $0x44] ss:$16 sps:$4 sm:$0xff] (!%p271_p10)  }
  0x2f   : > { %584 = vmatprep.subr.bf16.mxu0 (!%p271_p10), %v1227_v37  ;;  %645 = vmatprep.subr.bf16.mxu1 (!%p271_p10), %v1229_v38  ;;  %v1235_v42 = vld [vmem:[%s1536_s5 + $0x4c] ss:$16 sps:$4 sm:$0xff] (!%p271_p10)   ;;  %v1237_v43 = vld [vmem:[%s1536_s5 + $0x40] ss:$16 sps:$4 sm:$0xff] (!%p271_p10)   ;;  %v1238_v44 = vld [vmem:[%s1536_s5 + $0x48] ss:$16 sps:$4 sm:$0xff] (!%p271_p10)  }
  0x30   : > { %v1239_v45 = vld [vmem:[%s1536_s5 + $0x64] ss:$16 sps:$4 sm:$0xff] (!%p271_p10)   ;;  %v1241_v46 = vld [vmem:[%s1536_s5 + $0x6c] ss:$16 sps:$4 sm:$0xff] (!%p271_p10)   ;;  %v1243_v47 = vld [vmem:[%s1536_s5 + $0x60] ss:$16 sps:$4 sm:$0xff] (!%p271_p10)  }
  0x31   : > { %v1244_v48 = vld [vmem:[%s1536_s5 + $0x68] ss:$16 sps:$4 sm:$0xff]   ;;  %v1245_v49 = vld [vmem:[%s1536_s5 + $0x84] ss:$16 sps:$4 sm:$0xff]   ;;  %v1247_v50 = vld [vmem:[%s1536_s5 + $0x8c] ss:$16 sps:$4 sm:$0xff]  }
  0x32   : > { %585 = vmatpush1.bf16.msra.mxu0 %v1231_v39  ;;  %646 = vmatpush1.bf16.msra.mxu1 %v1232_v40  ;;  %v1249_v51 = vld [vmem:[%s1536_s5 + $0x80] ss:$16 sps:$4 sm:$0xff]   ;;  %v1250_v52 = vld [vmem:[%s1536_s5 + $0x88] ss:$16 sps:$4 sm:$0xff]   ;;  %v1251_v53 = vld [vmem:[%s1536_s5 + $0xa4] ss:$16 sps:$4 sm:$0xff]  }
  0x33   : > { %586 = vmatprep.subr.bf16.mxu0 %v1233_v41  ;;  %647 = vmatprep.subr.bf16.mxu1 %v1235_v42  ;;  %v1253_v54 = vld [vmem:[%s1536_s5 + $0xac] ss:$16 sps:$4 sm:$0xff]   ;;  %v1255_v55 = vld [vmem:[%s1536_s5 + $0xa0] ss:$16 sps:$4 sm:$0xff]   ;;  %v1256_v56 = vld [vmem:[%s1536_s5 + $0xa8] ss:$16 sps:$4 sm:$0xff]  }
  0x34   : > { %v1257_v57 = vld [vmem:[%s1536_s5 + $0xc4] ss:$16 sps:$4 sm:$0xff]   ;;  %v1259_v58 = vld [vmem:[%s1536_s5 + $0xcc] ss:$16 sps:$4 sm:$0xff]   ;;  %v1261_v59 = vld [vmem:[%s1536_s5 + $0xc0] ss:$16 sps:$4 sm:$0xff]  }
  0x35   : > { %v1262_v60 = vld [vmem:[%s1536_s5 + $0xc8] ss:$16 sps:$4 sm:$0xff]   ;;  %v1263_v61 = vld [vmem:[%s1536_s5 + $0xe4] ss:$16 sps:$4 sm:$0xff]   ;;  %v1265_v62 = vld [vmem:[%s1536_s5 + $0xec] ss:$16 sps:$4 sm:$0xff]  }
  0x36   : > { %587 = vmatpush1.bf16.msra.mxu0 %v1237_v43  ;;  %648 = vmatpush1.bf16.msra.mxu1 %v1238_v44  ;;  %v1267_v63 = vld [vmem:[%s1536_s5 + $0xe0] ss:$16 sps:$4 sm:$0xff]   ;;  %v1268_v0 = vld [vmem:[%s1536_s5 + $0xe8] ss:$16 sps:$4 sm:$0xff]   ;;  %p323_p11 = scmp.lt.s32.totalorder %s1097_s18, 7  ;;  %v372_v8 = vsub.s32 0, %v371_v5 }
  0x37   : > { %588 = vmatprep.subr.bf16.mxu0 %v1239_v45  ;;  %649 = vmatprep.subr.bf16.mxu1 %v1241_v46  ;;  %v380_v9 = vsub.s32 4, %v371_v5  ;;  %v376_v10 = vsub.s32 2, %v371_v5  ;;  %v384_v11 = vsub.s32 6, %v371_v5  ;;  %s1179_s24 = smul.u32 80, %s277_s30  ;;  %s1178_s25 = sshll.u32 (%p1448_p6), %s1382_s14, 4 }
  0x38   : > { %s1752_s18 = smov (!%p323_p11, %s1097_s18), 7  ;;  %s950_s28 = scalar_lea.vmem (%p1448_p6), %s1743_s3, %s1178_s25 }
  0x39   : > { %s325_s23 = scalar_lea.vmem %s1742_s2, %s1752_s18  ;;  %s1683_s12 = scalar_lea.vmem [#allocation3], %s1179_s24 }
  0x3a   : > { %589 = vmatpush1.bf16.msra.mxu0 %v1243_v47  ;;  %650 = vmatpush1.bf16.msra.mxu1 %v1244_v48  ;;  %v367_v6 = vld [vmem:[%s325_s23] sm:$0xf] }
  0x3b   : > { %590 = vmatprep.subr.bf16.mxu0 %v1245_v49  ;;  %651 = vmatprep.subr.bf16.mxu1 %v1247_v50  ;;  %v368_v7 = vunpack.c.l.bf16 %v367_v6 }
  0x3d   : > { %v373_v12 = vrot.slane %v368_v7, %v372_v8  ;;  %v381_v13 = vrot.slane %v368_v7, %v380_v9  ;;  %v377_v14 = vrot.slane %v368_v7, %v376_v10  ;;  %v385_v15 = vrot.slane %v368_v7, %v384_v11 }
  0x3e   : > { %591 = vmatpush1.bf16.msra.mxu0 %v1249_v51  ;;  %652 = vmatpush1.bf16.msra.mxu1 %v1250_v52 }
  0x3f   : > { %592 = vmatprep.subr.bf16.mxu0 %v1251_v53  ;;  %653 = vmatprep.subr.bf16.mxu1 %v1253_v54  ;;  %v1587_v16 = vrot.slane %v373_v12, %v372_v8  ;;  %v1589_v17 = vrot.slane %v381_v13, %v372_v8  ;;  %v1591_v18 = vrot.slane %v377_v14, %v372_v8 }
  0x40   : > { %v1593_v19 = vrot.slane %v385_v15, %v372_v8 }
  0x42   : > { %593 = vmatpush1.bf16.msra.mxu0 %v1255_v55  ;;  %654 = vmatpush1.bf16.msra.mxu1 %v1256_v56 }
  0x43   : > { %594 = vmatprep.subr.bf16.mxu0 %v1257_v57  ;;  %655 = vmatprep.subr.bf16.mxu1 %v1259_v58 }
  0x46   : > { %595 = vmatpush1.bf16.msra.mxu0 %v1261_v59  ;;  %656 = vmatpush1.bf16.msra.mxu1 %v1262_v60 }
  0x47   : > { %596 = vmatprep.subr.bf16.mxu0 %v1263_v61  ;;  %657 = vmatprep.subr.bf16.mxu1 %v1265_v62 }
  0x4a   : > { %597 = vmatpush1.bf16.msra.mxu0 %v1267_v63  ;;  %658 = vmatpush1.bf16.msra.mxu1 %v1268_v0 }
  0x4d   : > { %615 = vmatmul.mubr.bf16.vlgmr.msra.gmra.mrb[0].mxu0 %v1269_v1  ;;  %676 = vmatmul.mubr.bf16.vlgmr.msra.gmra.mrb[0].mxu1 %v1269_v1 }
  0x4e   : > { %624 = vmatprep.mubr.bf16.mxu0 %v1392_v32  ;;  %685 = vmatprep.mubr.bf16.mxu1 %v1392_v32 }
  0x55   : > { %625 = vmatmul.mubr.bf16.gmra.mrb[4].mxu0 %v1270_v2  ;;  %686 = vmatmul.mubr.bf16.gmra.mrb[4].mxu1 %v1270_v2 }
  0x56   : > { %634 = vmatprep.mubr.bf16.mxu0 %v1392_v32  ;;  %695 = vmatprep.mubr.bf16.mxu1 %v1392_v32 }
  0x5d   : > { %635 = vmatmul.mubr.bf16.gmra.mrb[8].mxu0 %v1271_v3  ;;  %696 = vmatmul.mubr.bf16.gmra.mrb[8].mxu1 %v1271_v3 }
 0x120   : > { %v616_v20 = vpop.f32.mrb[0].mxu0  ;;  %v677_v21 = vpop.f32.mrb[0].mxu1 }
 0x121   : > { %v1596_v22 = vadd.f32 %v616_v20, %v1587_v16  ;;  %v1599_v23 = vadd.f32 %v677_v21, %v1589_v17  ;;  %v618_v24 = vpop.f32.mrb[1].mxu0  ;;  %v679_v25 = vpop.f32.mrb[1].mxu1 }
 0x122   : > { %v1602_v26 = vadd.f32 %v618_v24, %v1591_v18  ;;  %v1605_v27 = vadd.f32 %v679_v25, %v1593_v19  ;;  %v620_v28 = vpop.f32.mrb[2].mxu0  ;;  %v681_v29 = vpop.f32.mrb[2].mxu1 }
 0x123   : > { %v1133_v30 = vmul.f32 -1.702, %v1596_v22  ;;  %v1135_v31 = vmul.f32 -1.702, %v1599_v23  ;;  %v1610_v32 = vadd.f32 %v620_v28, %v1587_v16  ;;  %v1613_v33 = vadd.f32 %v681_v29, %v1589_v17  ;;  %v622_v34 = vpop.f32.mrb[3].mxu0  ;;  %v683_v35 = vpop.f32.mrb[3].mxu1 }
 0x124   : > { %v1134_v36 = vmul.f32 -1.702, %v1602_v26  ;;  %v1136_v37 = vmul.f32 -1.702, %v1605_v27  ;;  %v1618_v38 = vadd.f32 %v622_v34, %v1591_v18  ;;  %v1621_v39 = vadd.f32 %v683_v35, %v1593_v19 }
 0x125   : > { %v744_v40 = vmul.f32 1.442695, %v1133_v30  ;;  %v748_v41 = vmul.f32 1.442695, %v1135_v31  ;;  %v1137_v42 = vmul.f32 -1.702, %v1610_v32 }
 0x126   : > { %v746_v43 = vmul.f32 1.442695, %v1134_v36  ;;  %v750_v44 = vmul.f32 1.442695, %v1136_v37  ;;  %v1139_v45 = vmul.f32 -1.702, %v1613_v33 }
 0x127   : > { %1272 = vpow2.f32 %v744_v40  ;;  %v752_v46 = vmul.f32 1.442695, %v1137_v42  ;;  %v1138_v47 = vmul.f32 -1.702, %v1618_v38  ;;  %v1140_v48 = vmul.f32 -1.702, %v1621_v39 }
 0x128   : > { %1274 = vpow2.f32 %v748_v41  ;;  %v756_v49 = vmul.f32 1.442695, %v1139_v45  ;;  %v626_v50 = vpop.f32.mrb[4].mxu0  ;;  %v687_v51 = vpop.f32.mrb[4].mxu1 }
 0x129   : > { %1276 = vpow2.f32 %v746_v43  ;;  %v754_v52 = vmul.f32 1.442695, %v1138_v47  ;;  %v758_v53 = vmul.f32 1.442695, %v1140_v48  ;;  %v1628_v54 = vadd.f32 %v626_v50, %v1587_v16  ;;  %v628_v55 = vpop.f32.mrb[5].mxu0  ;;  %v689_v56 = vpop.f32.mrb[5].mxu1 }
 0x12a   : > { %1278 = vpow2.f32 %v750_v44  ;;  %v1631_v57 = vadd.f32 %v687_v51, %v1589_v17  ;;  %v1634_v58 = vadd.f32 %v628_v55, %v1591_v18  ;;  %v1637_v59 = vadd.f32 %v689_v56, %v1593_v19  ;;  %v630_v60 = vpop.f32.mrb[6].mxu0  ;;  %v691_v61 = vpop.f32.mrb[6].mxu1 }
 0x12b   : > { %1280 = vpow2.f32 %v752_v46  ;;  %v1141_v62 = vmul.f32 -1.702, %v1628_v54  ;;  %v1641_v63 = vadd.f32 %v630_v60, %v1587_v16  ;;  %v632_v0 = vpop.f32.mrb[7].mxu0  ;;  %v693_v1 = vpop.f32.mrb[7].mxu1  ;;  %v1648_v40 = vadd.f32 %v691_v61, %v1589_v17 }
 0x12c   : > { %1282 = vpow2.f32 %v756_v49  ;;  %v1143_v2 = vmul.f32 -1.702, %v1631_v57  ;;  %v1142_v3 = vmul.f32 -1.702, %v1634_v58  ;;  %v1144_v4 = vmul.f32 -1.702, %v1637_v59 }
 0x12d   : > { %1284 = vpow2.f32 %v754_v52  ;;  %v760_v5 = vmul.f32 1.442695, %v1141_v62  ;;  %v1145_v6 = vmul.f32 -1.702, %v1641_v63  ;;  %v1651_v43 = vadd.f32 %v632_v0, %v1591_v18 }
 0x12e   : > { %1286 = vpow2.f32 %v758_v53  ;;  %v764_v7 = vmul.f32 1.442695, %v1143_v2  ;;  %v762_v8 = vmul.f32 1.442695, %v1142_v3  ;;  %v766_v9 = vmul.f32 1.442695, %v1144_v4 }
 0x12f   : > { %1288 = vpow2.f32 %v760_v5  ;;  %v768_v10 = vmul.f32 1.442695, %v1145_v6  ;;  %v1654_v46 = vadd.f32 %v693_v1, %v1593_v19  ;;  %v1147_v52 = vmul.f32 -1.702, %v1648_v40 }
 0x130   : > { %1290 = vpow2.f32 %v764_v7  ;;  %v636_v11 = vpop.f32.mrb[8].mxu0  ;;  %v697_v12 = vpop.f32.mrb[8].mxu1  ;;  %v1146_v60 = vmul.f32 -1.702, %v1651_v43 }
 0x131   : > { %v1273_v13 = vpop.eup %1272  ;;  %1292 = vpow2.f32 %v762_v8  ;;  %v638_v14 = vpop.f32.mrb[9].mxu0  ;;  %v1657_v49 = vadd.f32 %v636_v11, %v1587_v16  ;;  %v1661_v53 = vadd.f32 %v697_v12, %v1589_v17  ;;  %v1148_v0 = vmul.f32 -1.702, %v1654_v46 }
 0x132   : > { %v699_v15 = vpop.f32.mrb[9].mxu1  ;;  %v1275_v20 = vpop.eup %1274  ;;  %v784_v21 = vadd.f32 1.0, %v1273_v13  ;;  %1294 = vpow2.f32 %v766_v9  ;;  %v1665_v61 = vadd.f32 %v638_v14, %v1591_v18  ;;  %v772_v6 = vmul.f32 1.442695, %v1147_v52 }
 0x133   : > { %v640_v24 = vpop.f32.mrb[10].mxu0  ;;  %v701_v25 = vpop.f32.mrb[10].mxu1  ;;  %v786_v29 = vadd.f32 1.0, %v1275_v20  ;;  %1296 = vpow2.f32 %v768_v10  ;;  %v1669_v1 = vadd.f32 %v699_v15, %v1593_v19  ;;  %v1149_v3 = vmul.f32 -1.702, %v1657_v49 }
 0x134   : > { %v1277_v28 = vpop.eup %1276  ;;  %v641_v30 = vpop.f32.mrb[11].mxu0  ;;  %1298 = vrcp.f32 %v784_v21  ;;  %v1151_v18 = vmul.f32 -1.702, %v1661_v53  ;;  %v770_v8 = vmul.f32 1.442695, %v1146_v60 }
 0x135   : > { %v1279_v31 = vpop.eup %1278  ;;  %v785_v34 = vadd.f32 1.0, %v1277_v28  ;;  %v702_v35 = vpop.f32.mrb[11].mxu1  ;;  %1300 = vrcp.f32 %v786_v29  ;;  %v1150_v9 = vmul.f32 -1.702, %v1665_v61  ;;  %v774_v11 = vmul.f32 1.442695, %v1148_v0 }
 0x136   : > { %v1281_v36 = vpop.eup %1280  ;;  %v787_v37 = vadd.f32 1.0, %v1279_v31  ;;  %v1152_v12 = vmul.f32 -1.702, %v1669_v1  ;;  %v776_v15 = vmul.f32 1.442695, %v1149_v3 }
 0x137   : > { %v1283_v41 = vpop.eup %1282  ;;  %1302 = vrcp.f32 %v785_v34  ;;  %v788_v42 = vadd.f32 1.0, %v1281_v36  ;;  %v780_v24 = vmul.f32 1.442695, %v1151_v18  ;;  %v778_v29 = vmul.f32 1.442695, %v1150_v9 }
 0x138   : > { %v1285_v44 = vpop.eup %1284  ;;  %1304 = vrcp.f32 %v787_v37  ;;  %v790_v45 = vadd.f32 1.0, %v1283_v41  ;;  %v782_v34 = vmul.f32 1.442695, %v1152_v12 }
 0x139   : > { %v1287_v47 = vpop.eup %1286  ;;  %1306 = vrcp.f32 %v788_v42  ;;  %v789_v48 = vadd.f32 1.0, %v1285_v44 }
 0x13a   : > { %v1289_v50 = vpop.eup %1288  ;;  %1308 = vrcp.f32 %v790_v45  ;;  %v791_v51 = vadd.f32 1.0, %v1287_v47 }
 0x13b   : > { %v1291_v55 = vpop.eup %1290  ;;  %1310 = vrcp.f32 %v789_v48  ;;  %v792_v56 = vadd.f32 1.0, %v1289_v50 }
 0x13c   : > { %v1293_v62 = vpop.eup %1292  ;;  %1312 = vrcp.f32 %v791_v51  ;;  %v794_v16 = vadd.f32 1.0, %v1291_v55 }
 0x13d   : > { %v1295_v2 = vpop.eup %1294  ;;  %1314 = vrcp.f32 %v792_v56  ;;  %v793_v17 = vadd.f32 1.0, %v1293_v62 }
 0x13e   : > { %v1297_v4 = vpop.eup %1296  ;;  %1316 = vrcp.f32 %v794_v16  ;;  %v795_v5 = vadd.f32 1.0, %v1295_v2 }
 0x13f   : > { %v1299_v7 = vpop.eup %1298  ;;  %1318 = vrcp.f32 %v793_v17  ;;  %v796_v44 = vadd.f32 1.0, %v1297_v4 }
 0x140   : > { %v1301_v19 = vpop.eup %1300  ;;  %v844_v10 = vmul.f32 %v1299_v7, %v1596_v22  ;;  %1320 = vrcp.f32 %v795_v5 }
 0x141   : > { %v1303_v13 = vpop.eup %1302  ;;  %v846_v14 = vmul.f32 %v1301_v19, %v1599_v23  ;;  %1322 = vpow2.f32 %v772_v6 }
 0x142   : > { %v1305_v20 = vpop.eup %1304  ;;  %v845_v21 = vmul.f32 %v1303_v13, %v1602_v26  ;;  %1324 = vpow2.f32 %v770_v8 }
 0x143   : > { %v1307_v25 = vpop.eup %1306  ;;  %v847_v28 = vmul.f32 %v1305_v20, %v1605_v27  ;;  %1326 = vpow2.f32 %v774_v11 }
 0x144   : > { %v1309_v30 = vpop.eup %1308  ;;  %v1168_v22 = vpack.c.bf16 %v845_v21, %v844_v10  ;;  %v848_v31 = vmul.f32 %v1307_v25, %v1610_v32  ;;  %1328 = vpow2.f32 %v776_v15 }
 0x145   : > { %v1311_v35 = vpop.eup %1310  ;;  %v1169_v36 = vpack.c.bf16 %v847_v28, %v846_v14  ;;  %v850_v23 = vmul.f32 %v1309_v30, %v1613_v33  ;;  %1330 = vpow2.f32 %v780_v24 }
 0x146   : > { %v1313_v37 = vpop.eup %1312  ;;  %928 = vst [vmem:[%s1683_s12] sm:$0xff] %v1168_v22  ;;  %v849_v26 = vmul.f32 %v1311_v35, %v1618_v38  ;;  %1332 = vpow2.f32 %v778_v29 }
 0x147   : > { %v1315_v27 = vpop.eup %1314  ;;  %929 = vst [vmem:[%s1683_s12 + $0x8] sm:$0xff] %v1169_v36  ;;  %v851_v32 = vmul.f32 %v1313_v37, %v1621_v39  ;;  %1334 = vpow2.f32 %v782_v34 }
 0x148   : > { %v1317_v41 = vpop.eup %1316  ;;  %v1170_v42 = vpack.c.bf16 %v849_v26, %v848_v31  ;;  %v852_v33 = vmul.f32 %v1315_v27, %v1628_v54  ;;  %1336 = vrcp.f32 %v796_v44 }
 0x149   : > { %v1319_v45 = vpop.eup %1318  ;;  %v1171_v47 = vpack.c.bf16 %v851_v32, %v850_v23  ;;  %v854_v48 = vmul.f32 %v1317_v41, %v1631_v57 }
 0x14a   : > { %v1321_v38 = vpop.eup %1320  ;;  %930 = vst [vmem:[%s1683_s12 + $0x10] sm:$0xff] %v1170_v42  ;;  %v853_v50 = vmul.f32 %v1319_v45, %v1634_v58 }
 0x14b   : > { %931 = vst [vmem:[%s1683_s12 + $0x18] sm:$0xff] %v1171_v47  ;;  %v855_v39 = vmul.f32 %v1321_v38, %v1637_v59  ;;  %v1323_v51 = vpop.eup %1322 }
 0x14c   : > { %v1172_v52 = vpack.c.bf16 %v853_v50, %v852_v33  ;;  %v1325_v55 = vpop.eup %1324  ;;  %v798_v56 = vadd.f32 1.0, %v1323_v51 }
 0x14d   : > { %v1173_v54 = vpack.c.bf16 %v855_v39, %v854_v48  ;;  %v1327_v60 = vpop.eup %1326  ;;  %v797_v62 = vadd.f32 1.0, %v1325_v55 }
 0x14e   : > { %932 = vst [vmem:[%s1683_s12 + $0x20] sm:$0xff] %v1172_v52  ;;  %v1329_v16 = vpop.eup %1328  ;;  %1338 = vrcp.f32 %v798_v56  ;;  %v799_v57 = vadd.f32 1.0, %v1327_v60 }
 0x14f   : > { %933 = vst [vmem:[%s1683_s12 + $0x28] sm:$0xff] %v1173_v54  ;;  %v1331_v0 = vpop.eup %1330  ;;  %1340 = vrcp.f32 %v797_v62  ;;  %v800_v2 = vadd.f32 1.0, %v1329_v16 }
 0x150   : > { %v1333_v58 = vpop.eup %1332  ;;  %1342 = vrcp.f32 %v799_v57  ;;  %v802_v17 = vadd.f32 1.0, %v1331_v0 }
 0x151   : > { %v1335_v59 = vpop.eup %1334  ;;  %1344 = vrcp.f32 %v800_v2  ;;  %v801_v3 = vadd.f32 1.0, %v1333_v58 }
 0x152   : > { %1346 = vrcp.f32 %v802_v17  ;;  %v803_v4 = vadd.f32 1.0, %v1335_v59  ;;  %v1337_v5 = vpop.eup %1336 }
 0x153   : > { %1348 = vrcp.f32 %v801_v3  ;;  %v856_v18 = vmul.f32 %v1337_v5, %v1641_v63 }
 0x154   : > { %1350 = vrcp.f32 %v803_v4 }
 0x156   : > { %v973_v28 = vld [vmem:[%s1683_s12 + $0x28] sm:$0xff] (%p1448_p6) }
 0x157   : > { %974 = vst [vmem:[%s950_s28 + $0x48] sm:$0xff] (%p1448_p6), %v973_v28 }
 0x158   : > { %v1339_v6 = vpop.eup %1338 }
 0x159   : > { %v1341_v7 = vpop.eup %1340  ;;  %v858_v8 = vmul.f32 %v1339_v6, %v1648_v40 }
 0x15a   : > { %v1343_v9 = vpop.eup %1342  ;;  %v857_v19 = vmul.f32 %v1341_v7, %v1651_v43 }
 0x15b   : > { %v1345_v10 = vpop.eup %1344  ;;  %v859_v11 = vmul.f32 %v1343_v9, %v1654_v46  ;;  %v963_v46 = vld [vmem:[%s1683_s12] sm:$0xff] (%p1448_p6) }
 0x15c   : > { %v1347_v12 = vpop.eup %1346  ;;  %v1174_v13 = vpack.c.bf16 %v857_v19, %v856_v18  ;;  %v860_v14 = vmul.f32 %v1345_v10, %v1657_v49  ;;  %v965_v49 = vld [vmem:[%s1683_s12 + $0x8] sm:$0xff] (%p1448_p6)  ;;  %964 = vst [vmem:[%s950_s28] sm:$0xff] (%p1448_p6), %v963_v46 }
 0x15d   : > { %v1349_v15 = vpop.eup %1348  ;;  %v1175_v20 = vpack.c.bf16 %v859_v11, %v858_v8  ;;  %v862_v63 = vmul.f32 %v1347_v12, %v1661_v53  ;;  %944 = sbr.rel (!%p1448_p6) target bundleno = 364 (0x16c), region = 59  ;;  %v967_v53 = vld [vmem:[%s1683_s12 + $0x10] sm:$0xff] (%p1448_p6)  ;;  %966 = vst [vmem:[%s950_s28 + $0x8] sm:$0xff] (%p1448_p6), %v965_v49 }
 0x15e   : > { %v1351_v21 = vpop.eup %1350  ;;  %934 = vst [vmem:[%s1683_s12 + $0x30] sm:$0xff] %v1174_v13  ;;  %v861_v40 = vmul.f32 %v1349_v15, %v1665_v61  ;;  %v969_v61 = vld [vmem:[%s1683_s12 + $0x18] sm:$0xff] (%p1448_p6)  ;;  %968 = vst [vmem:[%s950_s28 + $0x20] sm:$0xff] (%p1448_p6), %v967_v53 }
 0x15f   : > { %935 = vst [vmem:[%s1683_s12 + $0x38] sm:$0xff] %v1175_v20  ;;  %v863_v43 = vmul.f32 %v1351_v21, %v1669_v1  ;;  %v971_v1 = vld [vmem:[%s1683_s12 + $0x20] sm:$0xff] (%p1448_p6)  ;;  %970 = vst [vmem:[%s950_s28 + $0x28] sm:$0xff] (%p1448_p6), %v969_v61 }
 0x160   : > { %v1176_v24 = vpack.c.bf16 %v861_v40, %v860_v14  ;;  %972 = vst [vmem:[%s950_s28 + $0x40] sm:$0xff] (%p1448_p6), %v971_v1 }
 0x161   : > { %v1177_v25 = vpack.c.bf16 %v863_v43, %v862_v63 }
 0x162   : > { %936 = vst [vmem:[%s1683_s12 + $0x40] sm:$0xff] %v1176_v24 }
 0x163   : > { %937 = vst [vmem:[%s1683_s12 + $0x48] sm:$0xff] %v1177_v25 }
 0x165   : > { %v975_v29 = vld [vmem:[%s1683_s12 + $0x30] sm:$0xff] }
 0x166   : > { %v977_v30 = vld [vmem:[%s1683_s12 + $0x38] sm:$0xff]  ;;  %976 = vst [vmem:[%s950_s28 + $0x60] sm:$0xff] %v975_v29 }
 0x167   : > { %978 = vst [vmem:[%s950_s28 + $0x68] sm:$0xff] %v977_v30 }
 0x169   : > { %v979_v22 = vld [vmem:[%s1683_s12 + $0x40] sm:$0xff] }
 0x16a   : > { %980 = vst [vmem:[%s950_s28 + $0x80] sm:$0xff] %v979_v22  ;;  %v981_v31 = vld [vmem:[%s1683_s12 + $0x48] sm:$0xff] }
 0x16b   : > { %982 = vst [vmem:[%s950_s28 + $0x88] sm:$0xff] %v981_v31 }
 0x16c PF: > { %s13_s16 = sadd.s32 1, %s1390_s16   ;;  %s1745_s12 = smov %s1378_s13 }
 0x16d   : > { %p10_p12 = scmp.ge.s32.totalorder %s13_s16, 4   ;;  %s1746_s13 = smov %s1453_s22 }
 0x16e   : > { %s1747_s14 = smov %s1386_s15  ;;  %s1748_s15 = smov %s1750_s17 }
 0x16f   :  { %12 = sbr.rel (!%p10_p12) target bundleno = 3 (0x3), region = 119 }

// kernel: clip_get_image_features.35
= control target key start
LH: loop header
LB: loop body
LE: loop exit
PB: predicated region body
PF: predicated region fallthrough
CT: control target
= control target key end

     0   :  { %v171_v0 = vmov 0.0   ;;  %vm172_vm0 = vmmov 0   ;;  %vm118_vm1 = vcmask 519168   ;;  %s218_s1 = inlined_call_operand.vmem [shape: bf16[128,64], index: 1, kind: input, shape index: {}]   ;;  %s219_s0 = inlined_call_operand.vmem [shape: bf16[8,128], index: 0, kind: input, shape index: {}]   ;;  %s220_s2 = inlined_call_operand.vmem [shape: bf16[8,64], index: 2, kind: output, shape index: {}]  }
   0x1   :  { %141 = vmatprep.subr.bf16.mxu0 %v171_v0  ;;  %v163_v1 = vld [vmem:[%s218_s1] sm:$0xff]   ;;  %157 = vmatprep.mubr.msk.bf16.mxu0 %vm172_vm0, %v171_v0  ;;  %v164_v2 = vld [vmem:[%s218_s1 + $0x8] sm:$0xff]   ;;  %v165_v3 = vld [vmem:[%s218_s1 + $0x10] sm:$0xff]  }
   0x2   :  { %142 = vmatpush3.bf16.msra.mxu0 %v163_v1  ;;  %v166_v4 = vld [vmem:[%s218_s1 + $0x18] sm:$0xff]   ;;  %v167_v5 = vld [vmem:[%s218_s1 + $0x20] sm:$0xff]   ;;  %v168_v6 = vld [vmem:[%s218_s1 + $0x28] sm:$0xff]  }
   0x3   :  { %143 = vmatprep.subr.bf16.mxu0 %v171_v0  ;;  %v169_v7 = vld [vmem:[%s218_s1 + $0x30] sm:$0xff]   ;;  %v170_v8 = vld [vmem:[%s218_s1 + $0x38] sm:$0xff]   ;;  %v12_v9 = vld [vmem:[%s219_s0] sm:$0xf] }
   0x6   :  { %144 = vmatpush3.bf16.msra.mxu0 %v164_v2 }
   0x7   :  { %145 = vmatprep.subr.bf16.mxu0 %v171_v0 }
   0xa   :  { %146 = vmatpush3.bf16.msra.mxu0 %v165_v3 }
   0xb   :  { %147 = vmatprep.subr.bf16.mxu0 %v171_v0 }
   0xe   :  { %148 = vmatpush3.bf16.msra.mxu0 %v166_v4 }
   0xf   :  { %149 = vmatprep.subr.bf16.mxu0 %v171_v0 }
  0x12   :  { %150 = vmatpush3.bf16.msra.mxu0 %v167_v5 }
  0x13   :  { %151 = vmatprep.subr.bf16.mxu0 %v171_v0 }
  0x16   :  { %152 = vmatpush3.bf16.msra.mxu0 %v168_v6 }
  0x17   :  { %153 = vmatprep.subr.bf16.mxu0 %v171_v0 }
  0x1a   :  { %154 = vmatpush3.bf16.msra.mxu0 %v169_v7 }
  0x1b   :  { %155 = vmatprep.subr.bf16.mxu0 %v171_v0 }
  0x1e   :  { %156 = vmatpush3.bf16.msra.mxu0 %v170_v8 }
  0x21   :  { %158 = vmatmul.mubr.bf16.vlgmr.msra.gmra.mrb[0].mxu0 %v12_v9 }
  0xf4   :  { %v111_v10 = vpop.f32.mrb[0].mxu0 }
  0xf5   :  { %v117_v11 = vpack.c.bf16 %v111_v10, %v111_v10  ;;  %v159_v12 = vpop.f32.mrb[1].mxu0 }
  0xf6   :  { %v114_v13 = vpop.f32.mrb[2].mxu0 }
  0xf7   :  { %119 = vst.msk [vmem:[%s220_s2] sm:$0xf] %vm118_vm1, %v117_v11  ;;  %v160_v14 = vpop.f32.mrb[3].mxu0 }

// kernel: clip_get_image_features.26
= control target key start
LH: loop header
LB: loop body
LE: loop exit
PB: predicated region body
PF: predicated region fallthrough
CT: control target
= control target key end

     0   :  { %s1314_s15 = smov 0   ;;  %s1316_s16 = smov 0   ;;  %s1448_s0 = inlined_call_operand.vmem [shape: bf16[40,1024], index: 0, kind: input, shape index: {}]   ;;  %s1449_s1 = inlined_call_operand.vmem [shape: bf16[1024,128], index: 1, kind: input, shape index: {}]   ;;  %s1450_s2 = inlined_call_operand.vmem [shape: bf16[1,128], index: 2, kind: input, shape index: {}]   ;;  %s1451_s3 = inlined_call_operand.vmem [shape: bf16[40,128], index: 3, kind: input, shape index: {}]   ;;  %s1452_s4 = inlined_call_operand.vmem [shape: bf16[40,128], index: 4, kind: output, shape index: {}]  }
   0x1   :  { %s1318_s17 = smov 0   ;;  %s1320_s18 = smov 0  }
   0x2   :  { %s1322_s19 = smov 0  }
   0x3 LB: > { %s26_s20 = sadd.s32 1, %s1282_s18  ;;  %p49_p1 = scmp.ne.s32.totalorder %s1274_s16, %s1270_s15  ;;  %s1286_s19 = sphi %s1322_s19, %s14_s19   ;;  %s1282_s18 = sphi %s1320_s18, %s1456_s18   ;;  %s1278_s17 = sphi %s1318_s17, %s1455_s17   ;;  %s1274_s16 = sphi %s1316_s16, %s1454_s16   ;;  %s1270_s15 = sphi %s1314_s15, %s1453_s15  }
   0x4   : > { %p27_p0 = scmp.ge.s32.totalorder %s26_s20, 2  ;;  %p50_p2 = scmp.eq.s32.totalorder %s1286_s19, 0 }
   0x5   : > { %s42_s22 = sadd.s32 1, %s1274_s16  ;;  %p1002_p5 = scmp.ge.s32.totalorder %s1286_s19, 2 }
   0x6   : > { %s1458_s20 = smov (%p27_p0, %s26_s20), 0  ;;  %p51_p3 = por %p50_p2, %p49_p1 }
   0x7   : > { %s38_s21 = ssub.s32 %s1282_s18, %s1458_s20  ;;  %203 = sbr.rel (%p1002_p5) target bundleno = 23 (0x17), region = 24 }
   0x8   : > { %p40_p4 = scmp.eq.s32.totalorder %s38_s21, 0 }
   0xa   : > { %s1349_s23 = scalar_select %p40_p4, %s1274_s16, %s42_s22  }
   0xe   : > { %206 = sbr.rel (!%p51_p3) target bundleno = 23 (0x17), region = 28  ;;  %s208_s24 = sand.u32 (%p51_p3), 1, %s1274_s16  }
   0xf   : > { %s1063_s25 = sshll.u32 (%p51_p3), %s1282_s18, 4  ;;  %s1157_s26 = smul.u32 (%p51_p3), 80, %s208_s24 }
  0x10   : > { %s216_s29 = scalar_lea.vmem (%p51_p3), %s1448_s0, %s1063_s25 }
  0x11   : > { %v229_v0 = vld [vmem:[%s216_s29] sm:$0xff] (%p51_p3)  ;;  %v231_v1 = vld [vmem:[%s216_s29 + $0x8] sm:$0xff] (%p51_p3)  ;;  %s210_s30 = scalar_lea.vmem (%p51_p3), [#allocation3], %s1157_s26 }
  0x12   : > { %v233_v2 = vld [vmem:[%s216_s29 + $0x20] sm:$0xff] (%p51_p3)  ;;  %v235_v3 = vld [vmem:[%s216_s29 + $0x28] sm:$0xff] (%p51_p3)  ;;  %230 = vst [vmem:[%s210_s30] sm:$0xff] (%p51_p3), %v229_v0  ;;  %232 = vst [vmem:[%s210_s30 + $0x8] sm:$0xff] (%p51_p3), %v231_v1 }
  0x13   : > { %v237_v4 = vld [vmem:[%s216_s29 + $0x40] sm:$0xff] (%p51_p3)  ;;  %v239_v5 = vld [vmem:[%s216_s29 + $0x48] sm:$0xff] (%p51_p3)  ;;  %234 = vst [vmem:[%s210_s30 + $0x10] sm:$0xff] (%p51_p3), %v233_v2  ;;  %236 = vst [vmem:[%s210_s30 + $0x18] sm:$0xff] (%p51_p3), %v235_v3 }
  0x14   : > { %238 = vst [vmem:[%s210_s30 + $0x20] sm:$0xff] (%p51_p3), %v237_v4  ;;  %240 = vst [vmem:[%s210_s30 + $0x28] sm:$0xff] (%p51_p3), %v239_v5  ;;  %v241_v6 = vld [vmem:[%s216_s29 + $0x60] sm:$0xff] (%p51_p3)  ;;  %v243_v7 = vld [vmem:[%s216_s29 + $0x68] sm:$0xff] (%p51_p3) }
  0x15   : > { %v245_v8 = vld [vmem:[%s216_s29 + $0x80] sm:$0xff]  ;;  %242 = vst [vmem:[%s210_s30 + $0x30] sm:$0xff] %v241_v6  ;;  %244 = vst [vmem:[%s210_s30 + $0x38] sm:$0xff] %v243_v7  ;;  %v247_v9 = vld [vmem:[%s216_s29 + $0x88] sm:$0xff] }
  0x16   : > { %246 = vst [vmem:[%s210_s30 + $0x40] sm:$0xff] %v245_v8  ;;  %248 = vst [vmem:[%s210_s30 + $0x48] sm:$0xff] %v247_v9 }
  0x17 PF: > { %p1005_p6 = scmp.ge.s32.totalorder %s1286_s19, 1  ;;  %p265_p7 = scmp.lt.s32.totalorder %s1286_s19, 3 }
  0x19   : > { %p266_p8 = pnand %p1005_p6, %p265_p7 }
  0x1a   : > { %s272_s5 = sand.u32 (!%p266_p8), 1, %s1270_s15   ;;  %s1006_s6 = sshll.u32 (!%p266_p8), %s1278_s17, 6 }
  0x1b   : > { %269 = sbr.rel (%p266_p8) target bundleno = 326 (0x146), region = 55  ;;  %p322_p9 = scmp.lt.s32.totalorder (!%p266_p8), %s1006_s6, 127 }
  0x1c   : > { %s1158_s7 = smul.u32 (!%p266_p8), 80, %s272_s5  ;;  %p1008_p10 = scmp.ne.s32.totalorder (!%p266_p8), %s1278_s17, 0 }
  0x1e   : > { %s1366_s12 = scalar_lea.vmem (!%p266_p8), [#allocation3], %s1158_s7 }
  0x22   : > { %s1460_s6 = smov (!%p322_p9, %s1006_s6), 127  ;;  %355 = sbr.rel (%p1008_p10) target bundleno = 41 (0x29), region = 63 }
  0x23   : > { %s1007_s8 = sshll.u32 %s1460_s6, 2  ;;  %v1288_v10 = vmov (!%p1008_p10), 0.0  }
  0x24   : > { %s1364_s11 = scalar_lea.vmem %s1449_s1, %s1007_s8  ;;  %356 = vst [vmem:[#allocation2] sm:$0xff] (!%p1008_p10), %v1288_v10  ;;  %357 = vst [vmem:[#allocation2 + $0x8] sm:$0xff] (!%p1008_p10), %v1288_v10 }
  0x25   : > { %358 = vst [vmem:[#allocation2 + $0x10] sm:$0xff] (!%p1008_p10), %v1288_v10  ;;  %359 = vst [vmem:[#allocation2 + $0x18] sm:$0xff] (!%p1008_p10), %v1288_v10 }
  0x26   : > { %360 = vst [vmem:[#allocation2 + $0x20] sm:$0xff] (!%p1008_p10), %v1288_v10 }
  0x29 PF: > { %v1200_v11 = vld [vmem:[%s1364_s11 + $0x40] sm:$0xff]   ;;  %v1204_v15 = vld [vmem:[%s1364_s11 + $0x48] sm:$0xff]   ;;  %v1208_v19 = vld [vmem:[%s1364_s11 + $0x50] sm:$0xff]   ;;  %p1053_p11 = scmp.ne.s32.totalorder %s1278_s17, 1 }
  0x2a   : > { %v1201_v12 = vld [vmem:[%s1364_s11 + $0xc0] sm:$0xff]   ;;  %1089 = vmatprep.subr.bf16.mxu0 %v1200_v11  ;;  %v1205_v16 = vld [vmem:[%s1364_s11 + $0xc8] sm:$0xff]   ;;  %v1209_v20 = vld [vmem:[%s1364_s11 + $0xd0] sm:$0xff]  }
  0x2b   : > { %v1202_v13 = vld [vmem:[%s1364_s11] sm:$0xff]   ;;  %1123 = vmatprep.subr.bf16.mxu1 %v1201_v12  ;;  %v1206_v17 = vld [vmem:[%s1364_s11 + $0x8] sm:$0xff]   ;;  %v1210_v21 = vld [vmem:[%s1364_s11 + $0x10] sm:$0xff]  }
  0x2c   : > { %v1203_v14 = vld [vmem:[%s1364_s11 + $0x80] sm:$0xff]   ;;  %1090 = vmatpush3.bf16.msra.mxu0 %v1202_v13  ;;  %v1207_v18 = vld [vmem:[%s1364_s11 + $0x88] sm:$0xff]   ;;  %v1211_v22 = vld [vmem:[%s1364_s11 + $0x90] sm:$0xff]  }
  0x2d   : > { %1124 = vmatpush3.bf16.msra.mxu1 %v1203_v14  ;;  %1091 = vmatprep.subr.bf16.mxu0 %v1204_v15  ;;  %v1212_v23 = vld [vmem:[%s1364_s11 + $0x58] sm:$0xff]   ;;  %v1216_v27 = vld [vmem:[%s1364_s11 + $0x60] sm:$0xff]   ;;  %v1220_v31 = vld [vmem:[%s1364_s11 + $0x68] sm:$0xff]  }
  0x2e   : > { %1125 = vmatprep.subr.bf16.mxu1 %v1205_v16  ;;  %v1213_v24 = vld [vmem:[%s1364_s11 + $0xd8] sm:$0xff]   ;;  %v1217_v28 = vld [vmem:[%s1364_s11 + $0xe0] sm:$0xff]   ;;  %v1221_v32 = vld [vmem:[%s1364_s11 + $0xe8] sm:$0xff]  }
  0x2f   : > { %v1214_v25 = vld [vmem:[%s1364_s11 + $0x18] sm:$0xff]   ;;  %v1218_v29 = vld [vmem:[%s1364_s11 + $0x20] sm:$0xff]   ;;  %v1222_v33 = vld [vmem:[%s1364_s11 + $0x28] sm:$0xff]  }
  0x30   : > { %1092 = vmatpush3.bf16.msra.mxu0 %v1206_v17  ;;  %v1215_v26 = vld [vmem:[%s1364_s11 + $0x98] sm:$0xff]   ;;  %v1219_v30 = vld [vmem:[%s1364_s11 + $0xa0] sm:$0xff]   ;;  %v1223_v34 = vld [vmem:[%s1364_s11 + $0xa8] sm:$0xff]  }
  0x31   : > { %1126 = vmatpush3.bf16.msra.mxu1 %v1207_v18  ;;  %1093 = vmatprep.subr.bf16.mxu0 %v1208_v19  ;;  %v1224_v35 = vld [vmem:[%s1364_s11 + $0x70] sm:$0xff]   ;;  %v1228_v39 = vld [vmem:[%s1364_s11 + $0x78] sm:$0xff]   ;;  %v361_v2 = vld [vmem:[#allocation2] sm:$0xff] }
  0x32   : > { %1127 = vmatprep.subr.bf16.mxu1 %v1209_v20  ;;  %v1225_v36 = vld [vmem:[%s1364_s11 + $0xf0] sm:$0xff]   ;;  %v1229_v40 = vld [vmem:[%s1364_s11 + $0xf8] sm:$0xff]   ;;  %v362_v7 = vld [vmem:[#allocation2 + $0x8] sm:$0xff] }
  0x33   : > { %v1226_v37 = vld [vmem:[%s1364_s11 + $0x30] sm:$0xff]   ;;  %v1230_v41 = vld [vmem:[%s1364_s11 + $0x38] sm:$0xff]  }
  0x34   : > { %1094 = vmatpush3.bf16.msra.mxu0 %v1210_v21  ;;  %v1227_v38 = vld [vmem:[%s1364_s11 + $0xb0] sm:$0xff]   ;;  %v1231_v42 = vld [vmem:[%s1364_s11 + $0xb8] sm:$0xff]  }
  0x35   : > { %1128 = vmatpush3.bf16.msra.mxu1 %v1211_v22  ;;  %1095 = vmatprep.subr.bf16.mxu0 %v1212_v23  ;;  %v1232_v43 = vld [vmem:[%s1366_s12] ss:$16 sps:$4 sm:$0xff]   ;;  %v1234_v44 = vld [vmem:[%s1366_s12 + $0x4] ss:$16 sps:$4 sm:$0xff]   ;;  %v1235_v45 = vld [vmem:[%s1366_s12 + $0x8] ss:$16 sps:$4 sm:$0xff]  }
  0x36   : > { %1129 = vmatprep.subr.bf16.mxu1 %v1213_v24  ;;  %v1237_v46 = vld [vmem:[%s1366_s12 + $0xc] ss:$16 sps:$4 sm:$0xff]   ;;  %718 = vmatprep.mubr.bf16.mxu0 %v1234_v44  ;;  %v1238_v47 = vld [vmem:[%s1366_s12 + $0x24] ss:$16 sps:$4 sm:$0xff]   ;;  %v1242_v51 = vld [vmem:[%s1366_s12 + $0x20] ss:$16 sps:$4 sm:$0xff]  }
  0x37   : > { %774 = vmatprep.mubr.bf16.mxu1 %v1237_v46  ;;  %v1240_v48 = vld [vmem:[%s1366_s12 + $0x2c] ss:$16 sps:$4 sm:$0xff]   ;;  %v374_v49 = vld [vmem:[%s1366_s12 + $0x40] sm:$0xff]  ;;  %v1243_v52 = vld [vmem:[%s1366_s12 + $0x28] ss:$16 sps:$4 sm:$0xff]  }
  0x38   : > { %1096 = vmatpush3.bf16.msra.mxu0 %v1214_v25  ;;  %v375_v50 = vld [vmem:[%s1366_s12 + $0x48] sm:$0xff]  ;;  %v1018_v53 = vcombine.high %v374_v49, %v374_v49  ;;  %v1017_v55 = vcombine.low %v374_v49, %v374_v49  ;;  %v364_v25 = vld [vmem:[#allocation2 + $0x18] sm:$0xff] }
  0x39   : > { %1130 = vmatpush3.bf16.msra.mxu1 %v1215_v26  ;;  %1097 = vmatprep.subr.bf16.mxu0 %v1216_v27  ;;  %v1020_v54 = vcombine.high %v375_v50, %v375_v50  ;;  %v1019_v56 = vcombine.low %v375_v50, %v375_v50  ;;  %v363_v20 = vld [vmem:[#allocation2 + $0x10] sm:$0xff]  ;;  %v1070_v46 = vld [vmem:[%s1451_s3] sm:$0xff] (!%p1053_p11)  }
  0x3a   : > { %1131 = vmatprep.subr.bf16.mxu1 %v1217_v28  ;;  %v832_v50 = vld [vmem:[%s1451_s3 + $0x10] sm:$0xf] (!%p1053_p11) }
  0x3c   : > { %1098 = vmatpush3.bf16.msra.mxu0 %v1218_v29 }
  0x3d   : > { %1132 = vmatpush3.bf16.msra.mxu1 %v1219_v30  ;;  %1099 = vmatprep.subr.bf16.mxu0 %v1220_v31 }
  0x3e   : > { %1133 = vmatprep.subr.bf16.mxu1 %v1221_v32 }
  0x40   : > { %1100 = vmatpush3.bf16.msra.mxu0 %v1222_v33 }
  0x41   : > { %1134 = vmatpush3.bf16.msra.mxu1 %v1223_v34  ;;  %1101 = vmatprep.subr.bf16.mxu0 %v1224_v35 }
  0x42   : > { %1135 = vmatprep.subr.bf16.mxu1 %v1225_v36 }
  0x44   : > { %1102 = vmatpush3.bf16.msra.mxu0 %v1226_v37 }
  0x45   : > { %1136 = vmatpush3.bf16.msra.mxu1 %v1227_v38  ;;  %1103 = vmatprep.subr.bf16.mxu0 %v1228_v39  ;;  %v365_v38 = vld [vmem:[#allocation2 + $0x20] sm:$0xff] }
  0x46   : > { %1137 = vmatprep.subr.bf16.mxu1 %v1229_v40 }
  0x48   : > { %1104 = vmatpush3.bf16.msra.mxu0 %v1230_v41 }
  0x49   : > { %1138 = vmatpush3.bf16.msra.mxu1 %v1231_v42  ;;  %v817_v42 = vld [vmem:[%s1450_s2] sm:$0x1] (!%p1053_p11) }
  0x4a   : > { %v818_v44 = vunpack.c.l.bf16 (!%p1053_p11), %v817_v42 }
  0x4b   : > { %719 = vmatmul.mubr.bf16.vlgmr.msra.gmra.mrb[0].mxu0 %v1232_v43  ;;  %v819_v43 = vlaneseq (!%p1053_p11) }
  0x4c   : > { %775 = vmatmul.mubr.bf16.vlgmr.msra.gmra.mrb[0].mxu1 %v1235_v45  ;;  %726 = vmatprep.mubr.bf16.mxu0 %v1238_v47  ;;  %v1087_v47 = vld [vmem:[%s1451_s3 + $0x8] sm:$0xff] (!%p1053_p11)  }
  0x4d   : > { %782 = vmatprep.mubr.bf16.mxu1 %v1240_v48  ;;  %v820_v45 = vshrl.u32 (!%p1053_p11), %v819_v43, 7 }
  0x4f   : > { %v821_v49 = vsub.s32 (!%p1053_p11), 0, %v820_v45 }
  0x53   : > { %727 = vmatmul.mubr.bf16.gmra.mrb[4].mxu0 %v1242_v51 }
  0x54   : > { %783 = vmatmul.mubr.bf16.gmra.mrb[4].mxu1 %v1243_v52  ;;  %734 = vmatprep.mubr.bf16.mxu0 %v1018_v53  ;;  %v1071_v52 = vunpack.c.l.bf16 (!%p1053_p11), %v1070_v46 }
  0x55   : > { %790 = vmatprep.mubr.bf16.mxu1 %v1020_v54 }
  0x5b   : > { %735 = vmatmul.mubr.bf16.gmra.mrb[8].mxu0 %v1017_v55  ;;  %v822_v55 = vrot.slane (!%p1053_p11), %v818_v44, %v821_v49 }
  0x5c   : > { %791 = vmatmul.mubr.bf16.gmra.mrb[8].mxu1 %v1019_v56  ;;  %v1072_v56 = vunpack.c.h.bf16 (!%p1053_p11), %v1070_v46 }
 0x11e   : > { %v1105_v57 = vpop.f32.mrb[0].mxu0 }
 0x11f   : > { %v1139_v58 = vpop.f32.mrb[0].mxu1  ;;  %v1106_v59 = vpop.f32.mrb[1].mxu0 }
 0x120   : > { %v1107_v60 = vadd.f32 %v1106_v59, %v1105_v57  ;;  %v1140_v61 = vpop.f32.mrb[1].mxu1  ;;  %v1108_v62 = vpop.f32.mrb[2].mxu0  ;;  %v1075_v57 = vunpack.c.l.bf16 (!%p1053_p11), %v1087_v47 }
 0x121   : > { %v1141_v63 = vadd.f32 %v1140_v61, %v1139_v58  ;;  %v1142_v0 = vpop.f32.mrb[2].mxu1  ;;  %v1109_v1 = vpop.f32.mrb[3].mxu0  ;;  %v1076_v58 = vunpack.c.h.bf16 (!%p1053_p11), %v1087_v47 }
 0x122   : > { %v1110_v3 = vadd.f32 %v1109_v1, %v1108_v62  ;;  %v1143_v4 = vpop.f32.mrb[3].mxu1 }
 0x123   : > { %v777_v5 = vadd.f32 %v1141_v63, %v1107_v60  ;;  %v1144_v6 = vadd.f32 %v1143_v4, %v1142_v0  ;;  %v837_v60 = vunpack.c.l.bf16 (!%p1053_p11), %v832_v50 }
 0x125   : > { %v798_v8 = vadd.f32 %v777_v5, %v361_v2  ;;  %v780_v9 = vadd.f32 %v1144_v6, %v1110_v3 }
 0x126   : > { %v1111_v10 = vpop.f32.mrb[4].mxu0 }
 0x127   : > { %803 = vst [vmem:[#allocation2] sm:$0xff] %v798_v8  ;;  %v799_v11 = vadd.f32 %v780_v9, %v362_v7  ;;  %v1145_v12 = vpop.f32.mrb[4].mxu1  ;;  %v1112_v13 = vpop.f32.mrb[5].mxu0 }
 0x128   : > { %v1113_v14 = vadd.f32 %v1112_v13, %v1111_v10  ;;  %v1146_v15 = vpop.f32.mrb[5].mxu1  ;;  %v1114_v16 = vpop.f32.mrb[6].mxu0 }
 0x129   : > { %804 = vst [vmem:[#allocation2 + $0x8] sm:$0xff] %v799_v11  ;;  %v1147_v17 = vadd.f32 %v1146_v15, %v1145_v12  ;;  %v1148_v18 = vpop.f32.mrb[6].mxu1  ;;  %v1115_v19 = vpop.f32.mrb[7].mxu0 }
 0x12a   : > { %v1116_v21 = vadd.f32 %v1115_v19, %v1114_v16  ;;  %v1149_v22 = vpop.f32.mrb[7].mxu1 }
 0x12b   : > { %v785_v23 = vadd.f32 %v1147_v17, %v1113_v14  ;;  %v1150_v24 = vadd.f32 %v1149_v22, %v1148_v18 }
 0x12d   : > { %v800_v26 = vadd.f32 %v785_v23, %v363_v20  ;;  %v788_v27 = vadd.f32 %v1150_v24, %v1116_v21 }
 0x12e   : > { %v1117_v28 = vpop.f32.mrb[8].mxu0  ;;  %v812_v48 = vld [vmem:[#allocation2] sm:$0xff] (!%p1053_p11) }
 0x12f   : > { %805 = vst [vmem:[#allocation2 + $0x10] sm:$0xff] %v800_v26  ;;  %v801_v29 = vadd.f32 %v788_v27, %v364_v25  ;;  %v1151_v30 = vpop.f32.mrb[8].mxu1  ;;  %v1118_v31 = vpop.f32.mrb[9].mxu0  ;;  %v823_v61 = vadd.f32 (!%p1053_p11), %v822_v55, %v812_v48 }
 0x130   : > { %v1119_v32 = vadd.f32 %v1118_v31, %v1117_v28  ;;  %v1152_v33 = vpop.f32.mrb[9].mxu1  ;;  %v1120_v34 = vpop.f32.mrb[10].mxu0  ;;  %v813_v51 = vld [vmem:[#allocation2 + $0x8] sm:$0xff] (!%p1053_p11) }
 0x131   : > { %806 = vst [vmem:[#allocation2 + $0x18] sm:$0xff] %v801_v29  ;;  %v1153_v35 = vadd.f32 %v1152_v33, %v1151_v30  ;;  %v1154_v36 = vpop.f32.mrb[10].mxu1  ;;  %v1121_v37 = vpop.f32.mrb[11].mxu0  ;;  %811 = sbr.rel (%p1053_p11) target bundleno = 326 (0x146), region = 67  ;;  %v824_v62 = vadd.f32 (!%p1053_p11), %v822_v55, %v813_v51  ;;  %v838_v2 = vadd.f32 (!%p1053_p11), %v1071_v52, %v823_v61 }
 0x132   : > { %v1155_v39 = vpop.f32.mrb[11].mxu1 }
 0x133   : > { %v793_v40 = vadd.f32 %v1153_v35, %v1119_v32  ;;  %v839_v3 = vadd.f32 (!%p1053_p11), %v1072_v56, %v824_v62 }
 0x135   : > { %v802_v41 = vadd.f32 %v793_v40, %v365_v38  ;;  %v1080_v7 = vpack.c.bf16 (!%p1053_p11), %v839_v3, %v838_v2 }
 0x136   : > { %v814_v53 = vld [vmem:[#allocation2 + $0x10] sm:$0xff] (!%p1053_p11) }
 0x137   : > { %807 = vst [vmem:[#allocation2 + $0x20] sm:$0xff] %v802_v41  ;;  %v825_v63 = vadd.f32 (!%p1053_p11), %v822_v55, %v814_v53  ;;  %1081 = vst [vmem:[%s1452_s4] sm:$0xff] (!%p1053_p11), %v1080_v7  }
 0x138   : > { %v815_v54 = vld [vmem:[#allocation2 + $0x18] sm:$0xff] }
 0x139   : > { %v826_v0 = vadd.f32 %v822_v55, %v815_v54  ;;  %v840_v4 = vadd.f32 %v1075_v57, %v825_v63 }
 0x13b   : > { %v841_v5 = vadd.f32 %v1076_v58, %v826_v0 }
 0x13d   : > { %v1085_v8 = vpack.c.bf16 %v841_v5, %v840_v4 }
 0x13e   : > { %v816_v59 = vld [vmem:[#allocation2 + $0x20] sm:$0xff] }
 0x13f   : > { %v827_v1 = vadd.f32 %v822_v55, %v816_v59  ;;  %1088 = vst [vmem:[%s1452_s4 + $0x8] sm:$0xff] %v1085_v8  }
 0x141   : > { %v842_v6 = vadd.f32 %v837_v60, %v827_v1 }
 0x143   : > { %v1068_v9 = vpack.c.bf16 %v842_v6, %v842_v6 }
 0x145   : > { %868 = vst [vmem:[%s1452_s4 + $0x10] sm:$0xf] %v1068_v9 }
 0x146 PF: > { %s14_s19 = sadd.s32 1, %s1286_s19   ;;  %s1453_s15 = smov %s1274_s16 }
 0x147   : > { %p11_p12 = scmp.ge.s32.totalorder %s14_s19, 4   ;;  %s1454_s16 = smov %s1349_s23 }
 0x148   : > { %s1455_s17 = smov %s1282_s18  ;;  %s1456_s18 = smov %s1458_s20 }
 0x149   :  { %13 = sbr.rel (!%p11_p12) target bundleno = 3 (0x3), region = 111 }

</bundles_post_ra>
